<compile_context>
chip_gen: v7x
topology: tpu7x:2x2x1
jax: 0.10.0
libtpu: 0.0.40
codegen_flags: <defaults>
</compile_context>

<pallas_src>
import functools

import jax
import jax.numpy as jnp
from jax import lax
from jax.experimental import pallas as pl
from jax.experimental.pallas import tpu as pltpu

INPUT_MEAN = jnp.array([0.2788, 0.2657, 0.2629], dtype=jnp.float32)
INPUT_STD = jnp.array([0.2064, 0.1944, 0.2252], dtype=jnp.float32)
BN_EPS = 1e-5


def _round_up(v, m):
    return (v + m - 1) // m * m


@functools.lru_cache(maxsize=None)
def _vmem_limit_bytes():
    cap = None
    try:
        info = pltpu.get_tpu_info()
        cap = getattr(info, "vmem_capacity_bytes", None)
    except Exception:
        cap = None
    if not cap:
        cap = 64 * 1024 * 1024          # conservative fallback (v7x-sized)
    # leave headroom for compiler scratch / spills; never exceed ~100 MiB
    return int(min(cap * 3 // 4, 100 * 1024 * 1024))


def _compiler_params():
    return pltpu.CompilerParams(
        dimension_semantics=("parallel",),          # batch grid across TensorCores
        vmem_limit_bytes=_vmem_limit_bytes(),
    )


# ----------------------------- Pallas kernels ------------------------------

def _conv4_kernel(x_ref, w_ref, scale_ref, shift_ref, o_ref, *, stride, M):
    """4-offset fused conv + folded BN + ReLU for one image.

    Works for both the phase-packed stride-2 Conv2d (phases packed into input
    channels) and the sub-pixel ConvTranspose2d (phases packed into output
    channels).

    x_ref : (1, Mp, K) bf16    - flattened activation, row stride `stride`
                                 (multiple of 8), zero tail for OOB-safe taps.
    w_ref : (4, K, N) bf16     - per-offset weight blocks for offsets
                                 {0, 1, stride, stride+1}.
    scale/shift : (1, N) f32   - folded BatchNorm affine (+ conv bias).
    o_ref : (1, M, N)          - output; don't-care rows/cols cropped by wrapper.
    """
    offs = (0, 1, stride, stride + 1)
    acc = None
    for o, off in enumerate(offs):
        lhs = x_ref[0, pl.ds(off, M), :]                       # (M, K) bf16
        t = jnp.dot(lhs, w_ref[o], preferred_element_type=jnp.float32)
        acc = t if acc is None else acc + t
    z = jnp.maximum(acc * scale_ref[...] + shift_ref[...], 0.0)
    o_ref[0] = z.astype(o_ref.dtype)


def _conv4_head_kernel(x_ref, w_ref, scale_ref, shift_ref, hw_ref, hb_ref,
                       o_ref, *, stride, M):
    """up2 + fused (seg ++ depth) 1x1 heads.  hw_ref is the block-diagonal
    (4*Cout, 4*Nh) head weight; the 128-wide decoder activation never leaves
    VMEM, only the (M, 16) head slab is written back."""
    offs = (0, 1, stride, stride + 1)
    acc = None
    for o, off in enumerate(offs):
        lhs = x_ref[0, pl.ds(off, M), :]
        t = jnp.dot(lhs, w_ref[o], preferred_element_type=jnp.float32)
        acc = t if acc is None else acc + t
    z = jnp.maximum(acc * scale_ref[...] + shift_ref[...], 0.0)    # (M, 4*Cout)
    h = jnp.dot(z.astype(jnp.bfloat16), hw_ref[...],
                preferred_element_type=jnp.float32) + hb_ref[...]
    o_ref[0] = h.astype(o_ref.dtype)


# ----------------------------- wrapper glue ---------------------------------

def _bn_fold(p):
    scale = p["gamma"] / jnp.sqrt(p["var"] + BN_EPS)
    shift = p["beta"] + (p["b"] - p["mean"]) * scale
    return scale.astype(jnp.float32), shift.astype(jnp.float32)


# ---- stride-2 down conv: phases packed into input channels -----------------

def _phase_pack_pad(x):
    """x: (B,H,W,C) -> (B, Mp, 4C) with the 4 spatial phases of the 1-padded
    image packed into channels, flattened with an 8-aligned row stride."""
    B, H, W, C = x.shape
    if H % 2:
        x = jnp.pad(x, ((0, 0), (0, 1), (0, 0), (0, 0)))
        H += 1
    if W % 2:
        x = jnp.pad(x, ((0, 0), (0, 0), (0, 1), (0, 0)))
        W += 1
    Ho, Wo = H // 2, W // 2
    He, We = Ho + 1, Wo + 1
    We8 = _round_up(We, 8)
    xp = jnp.pad(x, ((0, 0), (1, 1), (1, 1), (0, 0)))              # (B,2He,2We,C)
    phases = jnp.concatenate(
        [xp[:, 0::2, 0::2], xp[:, 0::2, 1::2],
         xp[:, 1::2, 0::2], xp[:, 1::2, 1::2]], axis=-1)           # (B,He,We,4C)
    phases = jnp.pad(phases, ((0, 0), (0, 0), (0, We8 - We), (0, 0)))
    M = He * We8
    ph = phases.reshape(B, M, 4 * C)
    ph = jnp.pad(ph, ((0, 0), (0, We8 + 8), (0, 0)))               # OOB-safe tail
    return ph, Ho, Wo, He, We8, M


def conv_down(x, w4, scale, shift):
    """Conv2d(3, s=2, p=1) + BN + ReLU.  (B,H,W,Cin) bf16 -> (B,H/2,W/2,Cout) bf16."""
    B = x.shape[0]
    Cout = w4.shape[-1]
    ph, Ho, Wo, He, We8, M = _phase_pack_pad(x)
    Mp, K = ph.shape[1], ph.shape[2]
    out = pl.pallas_call(
        functools.partial(_conv4_kernel, stride=We8, M=M),
        out_shape=jax.ShapeDtypeStruct((B, M, Cout), jnp.bfloat16),
        grid=(B,),
        in_specs=[
            pl.BlockSpec((1, Mp, K), lambda b: (b, 0, 0)),      # one image / step
            pl.BlockSpec((4, K, Cout), lambda b: (0, 0, 0)),    # weights resident
            pl.BlockSpec((1, Cout), lambda b: (0, 0)),
            pl.BlockSpec((1, Cout), lambda b: (0, 0)),
        ],
        out_specs=pl.BlockSpec((1, M, Cout), lambda b: (b, 0, 0)),
        compiler_params=_compiler_params(),
    )(ph, w4, scale.reshape(1, Cout), shift.reshape(1, Cout))
    return out.reshape(B, He, We8, Cout)[:, :Ho, :Wo, :]


# ---- ConvTranspose2d(k3,s2,p1,op1): phases packed into output channels -----

def _flatten_pad_up(x):
    """Pad x by one zero row/col at bottom/right, 8-align the row stride,
    flatten spatially, zero tail-pad."""
    B, H, W, C = x.shape
    Hq = H + 1
    Wq8 = _round_up(W + 1, 8)
    xq = jnp.pad(x, ((0, 0), (0, 1), (0, Wq8 - W), (0, 0)))        # (B,Hq,Wq8,C)
    M = Hq * Wq8
    xf = xq.reshape(B, M, C)
    xf = jnp.pad(xf, ((0, 0), (0, Wq8 + 8), (0, 0)))
    return xf, H, W, Hq, Wq8, M


def _deinterleave_phases(out, B, H, W, Hq, Wq8, C):
    """(B, Hq*Wq8, 4C) phase-packed output -> (B, 2H, 2W, C) image."""
    y = out.reshape(B, Hq, Wq8, 2, 2, C)[:, :H, :W]
    y = jnp.transpose(y, (0, 1, 3, 2, 4, 5))
    return y.reshape(B, 2 * H, 2 * W, C)


def convT_up(x, w4, scale4, shift4):
    """ConvTranspose2d(3, s=2, p=1, op=1) + BN + ReLU.  (B,H,W,Cin) -> (B,2H,2W,Cout)."""
    B, _, _, Cin = x.shape
    Cout4 = w4.shape[-1]                                           # 4 * Cout
    xf, H, W, Hq, Wq8, M = _flatten_pad_up(x)
    Mq = xf.shape[1]
    out = pl.pallas_call(
        functools.partial(_conv4_kernel, stride=Wq8, M=M),
        out_shape=jax.ShapeDtypeStruct((B, M, Cout4), jnp.bfloat16),
        grid=(B,),
        in_specs=[
            pl.BlockSpec((1, Mq, Cin), lambda b: (b, 0, 0)),
            pl.BlockSpec((4, Cin, Cout4), lambda b: (0, 0, 0)),
            pl.BlockSpec((1, Cout4), lambda b: (0, 0)),
            pl.BlockSpec((1, Cout4), lambda b: (0, 0)),
        ],
        out_specs=pl.BlockSpec((1, M, Cout4), lambda b: (b, 0, 0)),
        compiler_params=_compiler_params(),
    )(xf, w4, scale4.reshape(1, Cout4), shift4.reshape(1, Cout4))
    return _deinterleave_phases(out, B, H, W, Hq, Wq8, Cout4 // 4)


def convT_up_fused_heads(x, w4, scale4, shift4, hw_bd, hb4):
    """up2 + merged seg/depth 1x1 heads.  (B,H,W,Cin) -> (B,2H,2W,Nh) f32."""
    B, _, _, Cin = x.shape
    Cout4 = w4.shape[-1]
    Nh4 = hw_bd.shape[-1]                                          # 4 * Nh
    xf, H, W, Hq, Wq8, M = _flatten_pad_up(x)
    Mq = xf.shape[1]
    out = pl.pallas_call(
        functools.partial(_conv4_head_kernel, stride=Wq8, M=M),
        out_shape=jax.ShapeDtypeStruct((B, M, Nh4), jnp.float32),
        grid=(B,),
        in_specs=[
            pl.BlockSpec((1, Mq, Cin), lambda b: (b, 0, 0)),
            pl.BlockSpec((4, Cin, Cout4), lambda b: (0, 0, 0)),
            pl.BlockSpec((1, Cout4), lambda b: (0, 0)),
            pl.BlockSpec((1, Cout4), lambda b: (0, 0)),
            pl.BlockSpec((Cout4, Nh4), lambda b: (0, 0)),
            pl.BlockSpec((1, Nh4), lambda b: (0, 0)),
        ],
        out_specs=pl.BlockSpec((1, M, Nh4), lambda b: (b, 0, 0)),
        compiler_params=_compiler_params(),
    )(xf, w4, scale4.reshape(1, Cout4), shift4.reshape(1, Cout4),
      hw_bd, hb4.reshape(1, Nh4))
    return _deinterleave_phases(out, B, H, W, Hq, Wq8, Nh4 // 4)


# ---------------------------- weight packing --------------------------------

def _down_blocks(p, inv_std=None):
    """Conv2d weight (Cout,Cin,3,3) -> per-offset (4*Cin, Cout) blocks, offsets
    ordered {0, 1, stride, stride+1}; rows grouped by input phase."""
    w = p["w"].astype(jnp.float32)
    if inv_std is not None:
        w = w * inv_std[None, :, None, None]
    cout, cin = w.shape[0], w.shape[1]
    wt = jnp.transpose(w, (2, 3, 1, 0))                            # (3,3,Cin,Cout)
    zero = jnp.zeros((cin, cout), jnp.float32)
    blocks = []
    for o_r in range(2):
        for o_c in range(2):
            parts = []
            for p_r in range(2):
                for p_c in range(2):
                    dh, dw = 2 * o_r + p_r, 2 * o_c + p_c
                    parts.append(wt[dh, dw] if (dh < 3 and dw < 3) else zero)
            blocks.append(jnp.concatenate(parts, axis=0))          # (4*Cin, Cout)
    w4 = jnp.stack(blocks, axis=0).astype(jnp.bfloat16)            # (4,4*Cin,Cout)
    scale, shift = _bn_fold(p)
    return w4, scale, shift


# kidx (= kh*3+kw) feeding each output phase, per lhs offset (0,0),(0,1),(1,0),(1,1)
_CONVT_OFFSET_KIDX = ((4, 5, 7, 8), (-1, 3, -1, 6), (-1, -1, 1, 2), (-1, -1, -1, 0))


def _up_blocks(p):
    """ConvTranspose2d weight (Cin,Cout,3,3) -> per-offset (Cin, 4*Cout) blocks
    (columns grouped by output phase, zeros where a tap doesn't feed a phase)."""
    w = p["w"].astype(jnp.float32)
    cin, cout = w.shape[0], w.shape[1]
    w9 = jnp.transpose(w, (2, 3, 0, 1)).reshape(9, cin, cout)
    zero = jnp.zeros((cin, cout), jnp.float32)
    blocks = []
    for kidxs in _CONVT_OFFSET_KIDX:
        cols = [w9[k] if k >= 0 else zero for k in kidxs]
        blocks.append(jnp.concatenate(cols, axis=1))               # (Cin, 4*Cout)
    w4 = jnp.stack(blocks, axis=0).astype(jnp.bfloat16)            # (4,Cin,4*Cout)
    scale, shift = _bn_fold(p)
    return w4, jnp.tile(scale, 4), jnp.tile(shift, 4)


# ------------------------------- forward ------------------------------------

def detector_forward(params, x):
    """x: (B, 3, H, W) f32 in [0,1] -> (logits (B,3,H,W) f32, depth (B,H,W) f32)."""
    xh = jnp.transpose(x, (0, 2, 3, 1))                            # NCHW -> NHWC

    # Fold normalization into down1: mean-sub here (fused by XLA into the phase
    # pack), 1/std folded into down1's weights.  Exact incl. the zero border.
    xs = (xh - INPUT_MEAN).astype(jnp.bfloat16)

    z = conv_down(xs, *_down_blocks(params["down1"], inv_std=1.0 / INPUT_STD))
    z = conv_down(z, *_down_blocks(params["down2"]))
    z = convT_up(z, *_up_blocks(params["up1"]))

    # merged seg(3)+depth(1) 1x1 heads, block-diag packed for the phase layout
    head_w = jnp.concatenate(
        [params["seg"]["w"].reshape(3, -1), params["depth"]["w"].reshape(1, -1)],
        axis=0).T.astype(jnp.float32)                              # (32, 4)
    head_b = jnp.concatenate([params["seg"]["b"], params["depth"]["b"]])
    hw_bd = jnp.kron(jnp.eye(4, dtype=jnp.float32), head_w).astype(jnp.bfloat16)
    hb4 = jnp.tile(head_b, 4).astype(jnp.float32)

    y = convT_up_fused_heads(z, *_up_blocks(params["up2"]), hw_bd, hb4)  # (B,H,W,4)

    logits = jnp.transpose(y[..., :3], (0, 3, 1, 2))               # NCHW
    depth = y[..., 3]
    return logits, depth


# ----------------------------- parameter init -------------------------------

def init_params(key):
    ks = jax.random.split(key, 6)

    def conv_init(k, cout, cin, ksz):
        kw, kb = jax.random.split(k)
        fan_in = cin * ksz * ksz
        w = jax.random.normal(kw, (cout, cin, ksz, ksz), jnp.float32) / jnp.sqrt(fan_in)
        b = 0.01 * jax.random.normal(kb, (cout,), jnp.float32)
        return w, b

    def convT_init(k, cin, cout, ksz):
        kw, kb = jax.random.split(k)
        fan_in = cin * ksz * ksz
        w = jax.random.normal(kw, (cin, cout, ksz, ksz), jnp.float32) / jnp.sqrt(fan_in)
        b = 0.01 * jax.random.normal(kb, (cout,), jnp.float32)
        return w, b

    def bn_init(k, c):
        k1, k2, k3, k4 = jax.random.split(k, 4)
        return dict(
            gamma=1.0 + 0.1 * jax.random.normal(k1, (c,), jnp.float32),
            beta=0.1 * jax.random.normal(k2, (c,), jnp.float32),
            mean=0.05 * jax.random.normal(k3, (c,), jnp.float32),
            var=1.0 + 0.1 * jax.random.uniform(k4, (c,), jnp.float32),
        )

    params = {}
    w, b = conv_init(ks[0], 32, 3, 3)
    params["down1"] = dict(w=w, b=b, **bn_init(jax.random.fold_in(ks[0], 1), 32))
    w, b = conv_init(ks[1], 64, 32, 3)
    params["down2"] = dict(w=w, b=b, **bn_init(jax.random.fold_in(ks[1], 1), 64))
    w, b = convT_init(ks[2], 64, 32, 3)
    params["up1"] = dict(w=w, b=b, **bn_init(jax.random.fold_in(ks[2], 1), 32))
    w, b = convT_init(ks[3], 32, 32, 3)
    params["up2"] = dict(w=w, b=b, **bn_init(jax.random.fold_in(ks[3], 1), 32))
    w, b = conv_init(ks[4], 3, 32, 1)
    params["seg"] = dict(w=w, b=b)
    w, b = conv_init(ks[5], 1, 32, 1)
    params["depth"] = dict(w=w, b=b)
    return params


# ------------------------- pure-JAX reference check -------------------------

def reference_forward(params, x):
    def bn(y, p):
        s = (p["gamma"] / jnp.sqrt(p["var"] + BN_EPS))[None, :, None, None]
        return (y - p["mean"][None, :, None, None]) * s + p["beta"][None, :, None, None]

    def down(z, p):
        y = lax.conv_general_dilated(z, p["w"], (2, 2), ((1, 1), (1, 1)),
                                     dimension_numbers=("NCHW", "OIHW", "NCHW"))
        y = y + p["b"][None, :, None, None]
        return jnp.maximum(bn(y, p), 0.0)

    def up(z, p):
        w_conv = jnp.transpose(p["w"][:, :, ::-1, ::-1], (1, 0, 2, 3))
        y = lax.conv_general_dilated(z, w_conv, (1, 1), ((1, 2), (1, 2)),
                                     lhs_dilation=(2, 2),
                                     dimension_numbers=("NCHW", "OIHW", "NCHW"))
        y = y + p["b"][None, :, None, None]
        return jnp.maximum(bn(y, p), 0.0)

    def head(z, p):
        y = lax.conv_general_dilated(z, p["w"], (1, 1), ((0, 0), (0, 0)),
                                     dimension_numbers=("NCHW", "OIHW", "NCHW"))
        return y + p["b"][None, :, None, None]

    z = (x - INPUT_MEAN[None, :, None, None]) / INPUT_STD[None, :, None, None]
    z = down(z, params["down1"])
    z = down(z, params["down2"])
    z = up(z, params["up1"])
    z = up(z, params["up2"])
    logits = head(z, params["seg"])
    depth = head(z, params["depth"])[:, 0]
    return logits, depth


# --------------------------------- main --------------------------------------

if __name__ == "__main__":
    key = jax.random.PRNGKey(0)
    kx, kp = jax.random.split(key)
    B, H, W = 2, 16, 16
    x = jax.random.uniform(kx, (B, 3, H, W), jnp.float32)  # vals in [0, 1]
    params = init_params(kp)

    logits, depth = jax.jit(detector_forward)(params, x)
    jax.block_until_ready((logits, depth))

    assert logits.shape == (B, 3, H, W), logits.shape
    assert depth.shape == (B, H, W), depth.shape
    assert logits.dtype == jnp.float32 and depth.dtype == jnp.float32

    # Tolerance sized for bf16 MXU operands / bf16 intermediate activations with
    # f32 accumulation (expected max error ~1e-2; real bugs would be O(1e-1+)).
    ref_logits, ref_depth = reference_forward(params, x)
    assert jnp.allclose(logits, ref_logits, atol=3e-2, rtol=3e-2), \
        float(jnp.max(jnp.abs(logits - ref_logits)))
    assert jnp.allclose(depth, ref_depth, atol=3e-2, rtol=3e-2), \
        float(jnp.max(jnp.abs(depth - ref_depth)))

    print("KERNEL_OK")
</pallas_src>

<mosaic_0001>
module attributes {stable_mosaic.version = 11 : i64} {
  func.func @_conv4_kernel(%arg0: i32, %arg1: memref<1x168x12xbf16, #tpu.memory_space<vmem>>, %arg2: memref<4x12x32xbf16, #tpu.memory_space<vmem>>, %arg3: memref<1x32xf32, #tpu.memory_space<vmem>>, %arg4: memref<1x32xf32, #tpu.memory_space<vmem>>, %arg5: memref<1x144x32xbf16, #tpu.memory_space<vmem>>) attributes {dimension_semantics = [#tpu.dimension_semantics<parallel>], iteration_bounds = array<i64: 2>, scalar_prefetch = 0 : i64, scratch_operands = 0 : i64, tpu.core_type = #tpu.core_type<tc>, window_params = [{transform_indices = @transform_0, window_bounds = array<i64: 1, 168, 12>}, {pipeline_mode = #tpu.pipeline_mode<synchronous>, transform_indices = @transform_1, window_bounds = array<i64: 4, 12, 32>}, {pipeline_mode = #tpu.pipeline_mode<synchronous>, transform_indices = @transform_2, window_bounds = array<i64: 1, 32>}, {pipeline_mode = #tpu.pipeline_mode<synchronous>, transform_indices = @transform_3, window_bounds = array<i64: 1, 32>}, {transform_indices = @transform_4, window_bounds = array<i64: 1, 144, 32>}]} {
    %c0 = arith.constant 0 : index
    %c0_0 = arith.constant 0 : index
    %c0_1 = arith.constant 0 : index
    %0 = vector.load %arg1[%c0, %c0_0, %c0_1] : memref<1x168x12xbf16, #tpu.memory_space<vmem>>, vector<1x144x12xbf16>
    %1 = vector.shape_cast %0 : vector<1x144x12xbf16> to vector<144x12xbf16>
    %c0_2 = arith.constant 0 : index
    %c0_3 = arith.constant 0 : index
    %c0_4 = arith.constant 0 : index
    %2 = vector.load %arg2[%c0_2, %c0_3, %c0_4] : memref<4x12x32xbf16, #tpu.memory_space<vmem>>, vector<1x12x32xbf16>
    %3 = vector.shape_cast %2 : vector<1x12x32xbf16> to vector<12x32xbf16>
    %cst = arith.constant dense<0.000000e+00> : vector<144x32xf32>
    %4 = tpu.matmul %1, %3, %cst {dimension_numbers = #tpu.dot_dimension_numbers<[1], [0], [0], [1], [0, 0, 1, 1], [], []>} : vector<144x12xbf16>, vector<12x32xbf16>, vector<144x32xf32> -> vector<144x32xf32>
    %c0_5 = arith.constant 0 : index
    %c1 = arith.constant 1 : index
    %c0_6 = arith.constant 0 : index
    %5 = vector.load %arg1[%c0_5, %c1, %c0_6] : memref<1x168x12xbf16, #tpu.memory_space<vmem>>, vector<1x144x12xbf16>
    %6 = vector.shape_cast %5 : vector<1x144x12xbf16> to vector<144x12xbf16>
    %c1_7 = arith.constant 1 : index
    %c0_8 = arith.constant 0 : index
    %c0_9 = arith.constant 0 : index
    %7 = vector.load %arg2[%c1_7, %c0_8, %c0_9] : memref<4x12x32xbf16, #tpu.memory_space<vmem>>, vector<1x12x32xbf16>
    %8 = vector.shape_cast %7 : vector<1x12x32xbf16> to vector<12x32xbf16>
    %cst_10 = arith.constant dense<0.000000e+00> : vector<144x32xf32>
    %9 = tpu.matmul %6, %8, %cst_10 {dimension_numbers = #tpu.dot_dimension_numbers<[1], [0], [0], [1], [0, 0, 1, 1], [], []>} : vector<144x12xbf16>, vector<12x32xbf16>, vector<144x32xf32> -> vector<144x32xf32>
    %10 = arith.addf %4, %9 : vector<144x32xf32>
    %c0_11 = arith.constant 0 : index
    %c16 = arith.constant 16 : index
    %c0_12 = arith.constant 0 : index
    %11 = vector.load %arg1[%c0_11, %c16, %c0_12] : memref<1x168x12xbf16, #tpu.memory_space<vmem>>, vector<1x144x12xbf16>
    %12 = vector.shape_cast %11 : vector<1x144x12xbf16> to vector<144x12xbf16>
    %c2 = arith.constant 2 : index
    %c0_13 = arith.constant 0 : index
    %c0_14 = arith.constant 0 : index
    %13 = vector.load %arg2[%c2, %c0_13, %c0_14] : memref<4x12x32xbf16, #tpu.memory_space<vmem>>, vector<1x12x32xbf16>
    %14 = vector.shape_cast %13 : vector<1x12x32xbf16> to vector<12x32xbf16>
    %cst_15 = arith.constant dense<0.000000e+00> : vector<144x32xf32>
    %15 = tpu.matmul %12, %14, %cst_15 {dimension_numbers = #tpu.dot_dimension_numbers<[1], [0], [0], [1], [0, 0, 1, 1], [], []>} : vector<144x12xbf16>, vector<12x32xbf16>, vector<144x32xf32> -> vector<144x32xf32>
    %16 = arith.addf %10, %15 : vector<144x32xf32>
    %c0_16 = arith.constant 0 : index
    %c17 = arith.constant 17 : index
    %c0_17 = arith.constant 0 : index
    %17 = vector.load %arg1[%c0_16, %c17, %c0_17] : memref<1x168x12xbf16, #tpu.memory_space<vmem>>, vector<1x144x12xbf16>
    %18 = vector.shape_cast %17 : vector<1x144x12xbf16> to vector<144x12xbf16>
    %c3 = arith.constant 3 : index
    %c0_18 = arith.constant 0 : index
    %c0_19 = arith.constant 0 : index
    %19 = vector.load %arg2[%c3, %c0_18, %c0_19] : memref<4x12x32xbf16, #tpu.memory_space<vmem>>, vector<1x12x32xbf16>
    %20 = vector.shape_cast %19 : vector<1x12x32xbf16> to vector<12x32xbf16>
    %cst_20 = arith.constant dense<0.000000e+00> : vector<144x32xf32>
    %21 = tpu.matmul %18, %20, %cst_20 {dimension_numbers = #tpu.dot_dimension_numbers<[1], [0], [0], [1], [0, 0, 1, 1], [], []>} : vector<144x12xbf16>, vector<12x32xbf16>, vector<144x32xf32> -> vector<144x32xf32>
    %22 = arith.addf %16, %21 : vector<144x32xf32>
    %c0_21 = arith.constant 0 : index
    %c0_22 = arith.constant 0 : index
    %23 = vector.load %arg3[%c0_21, %c0_22] : memref<1x32xf32, #tpu.memory_space<vmem>>, vector<1x32xf32>
    %24 = vector.broadcast %23 : vector<1x32xf32> to vector<144x32xf32>
    %25 = arith.mulf %22, %24 : vector<144x32xf32>
    %c0_23 = arith.constant 0 : index
    %c0_24 = arith.constant 0 : index
    %26 = vector.load %arg4[%c0_23, %c0_24] : memref<1x32xf32, #tpu.memory_space<vmem>>, vector<1x32xf32>
    %27 = vector.broadcast %26 : vector<1x32xf32> to vector<144x32xf32>
    %28 = arith.addf %25, %27 : vector<144x32xf32>
    %cst_25 = arith.constant 0.000000e+00 : f32
    %29 = vector.broadcast %cst_25 : f32 to vector<144x32xf32>
    %30 = arith.maximumf %28, %29 : vector<144x32xf32>
    %31 = arith.truncf %30 : vector<144x32xf32> to vector<144x32xbf16>
    %c0_26 = arith.constant 0 : index
    %c0_27 = arith.constant 0 : index
    %c0_28 = arith.constant 0 : index
    %32 = vector.load %arg5[%c0_26, %c0_27, %c0_28] : memref<1x144x32xbf16, #tpu.memory_space<vmem>>, vector<1x144x32xbf16>
    %33 = vector.shape_cast %32 : vector<1x144x32xbf16> to vector<144x32xbf16>
    %34 = vector.shape_cast %31 : vector<144x32xbf16> to vector<1x144x32xbf16>
    tpu.vector_store %arg5[%c0_26, %c0_27, %c0_28], %34 {strides = array<i32>} : memref<1x144x32xbf16, #tpu.memory_space<vmem>>, vector<1x144x32xbf16>,
    return
  }
  func.func @transform_0(%arg0: i32) -> (i32, i32, i32) {
    %c0_i32 = arith.constant 0 : i32
    %c0_i32_0 = arith.constant 0 : i32
    %c0_i32_1 = arith.constant 0 : i32
    return %arg0, %c0_i32, %c0_i32_0 : i32, i32, i32
  }
  func.func @transform_1(%arg0: i32) -> (i32, i32, i32) {
    %c0_i32 = arith.constant 0 : i32
    %c0_i32_0 = arith.constant 0 : i32
    %c0_i32_1 = arith.constant 0 : i32
    %c0_i32_2 = arith.constant 0 : i32
    return %c0_i32, %c0_i32_0, %c0_i32_1 : i32, i32, i32
  }
  func.func @transform_2(%arg0: i32) -> (i32, i32) {
    %c0_i32 = arith.constant 0 : i32
    %c0_i32_0 = arith.constant 0 : i32
    %c0_i32_1 = arith.constant 0 : i32
    return %c0_i32, %c0_i32_0 : i32, i32
  }
  func.func @transform_3(%arg0: i32) -> (i32, i32) {
    %c0_i32 = arith.constant 0 : i32
    %c0_i32_0 = arith.constant 0 : i32
    %c0_i32_1 = arith.constant 0 : i32
    return %c0_i32, %c0_i32_0 : i32, i32
  }
  func.func @transform_4(%arg0: i32) -> (i32, i32, i32) {
    %c0_i32 = arith.constant 0 : i32
    %c0_i32_0 = arith.constant 0 : i32
    %c0_i32_1 = arith.constant 0 : i32
    return %arg0, %c0_i32, %c0_i32_0 : i32, i32, i32
  }
}

module attributes {stable_mosaic.version = 11 : i64} {
  func.func @_conv4_kernel(%arg0: i32, %arg1: memref<1x56x128xbf16, #tpu.memory_space<vmem>>, %arg2: memref<4x128x64xbf16, #tpu.memory_space<vmem>>, %arg3: memref<1x64xf32, #tpu.memory_space<vmem>>, %arg4: memref<1x64xf32, #tpu.memory_space<vmem>>, %arg5: memref<1x40x64xbf16, #tpu.memory_space<vmem>>) attributes {dimension_semantics = [#tpu.dimension_semantics<parallel>], iteration_bounds = array<i64: 2>, scalar_prefetch = 0 : i64, scratch_operands = 0 : i64, tpu.core_type = #tpu.core_type<tc>, window_params = [{transform_indices = @transform_0, window_bounds = array<i64: 1, 56, 128>}, {pipeline_mode = #tpu.pipeline_mode<synchronous>, transform_indices = @transform_1, window_bounds = array<i64: 4, 128, 64>}, {pipeline_mode = #tpu.pipeline_mode<synchronous>, transform_indices = @transform_2, window_bounds = array<i64: 1, 64>}, {pipeline_mode = #tpu.pipeline_mode<synchronous>, transform_indices = @transform_3, window_bounds = array<i64: 1, 64>}, {transform_indices = @transform_4, window_bounds = array<i64: 1, 40, 64>}]} {
    %c0 = arith.constant 0 : index
    %c0_0 = arith.constant 0 : index
    %c0_1 = arith.constant 0 : index
    %0 = vector.load %arg1[%c0, %c0_0, %c0_1] : memref<1x56x128xbf16, #tpu.memory_space<vmem>>, vector<1x40x128xbf16>
    %1 = vector.shape_cast %0 : vector<1x40x128xbf16> to vector<40x128xbf16>
    %c0_2 = arith.constant 0 : index
    %c0_3 = arith.constant 0 : index
    %c0_4 = arith.constant 0 : index
    %2 = vector.load %arg2[%c0_2, %c0_3, %c0_4] : memref<4x128x64xbf16, #tpu.memory_space<vmem>>, vector<1x128x64xbf16>
    %3 = vector.shape_cast %2 : vector<1x128x64xbf16> to vector<128x64xbf16>
    %cst = arith.constant dense<0.000000e+00> : vector<40x64xf32>
    %4 = tpu.matmul %1, %3, %cst {dimension_numbers = #tpu.dot_dimension_numbers<[1], [0], [0], [1], [0, 0, 1, 1], [], []>} : vector<40x128xbf16>, vector<128x64xbf16>, vector<40x64xf32> -> vector<40x64xf32>
    %c0_5 = arith.constant 0 : index
    %c1 = arith.constant 1 : index
    %c0_6 = arith.constant 0 : index
    %5 = vector.load %arg1[%c0_5, %c1, %c0_6] : memref<1x56x128xbf16, #tpu.memory_space<vmem>>, vector<1x40x128xbf16>
    %6 = vector.shape_cast %5 : vector<1x40x128xbf16> to vector<40x128xbf16>
    %c1_7 = arith.constant 1 : index
    %c0_8 = arith.constant 0 : index
    %c0_9 = arith.constant 0 : index
    %7 = vector.load %arg2[%c1_7, %c0_8, %c0_9] : memref<4x128x64xbf16, #tpu.memory_space<vmem>>, vector<1x128x64xbf16>
    %8 = vector.shape_cast %7 : vector<1x128x64xbf16> to vector<128x64xbf16>
    %cst_10 = arith.constant dense<0.000000e+00> : vector<40x64xf32>
    %9 = tpu.matmul %6, %8, %cst_10 {dimension_numbers = #tpu.dot_dimension_numbers<[1], [0], [0], [1], [0, 0, 1, 1], [], []>} : vector<40x128xbf16>, vector<128x64xbf16>, vector<40x64xf32> -> vector<40x64xf32>
    %10 = arith.addf %4, %9 : vector<40x64xf32>
    %c0_11 = arith.constant 0 : index
    %c8 = arith.constant 8 : index
    %c0_12 = arith.constant 0 : index
    %11 = vector.load %arg1[%c0_11, %c8, %c0_12] : memref<1x56x128xbf16, #tpu.memory_space<vmem>>, vector<1x40x128xbf16>
    %12 = vector.shape_cast %11 : vector<1x40x128xbf16> to vector<40x128xbf16>
    %c2 = arith.constant 2 : index
    %c0_13 = arith.constant 0 : index
    %c0_14 = arith.constant 0 : index
    %13 = vector.load %arg2[%c2, %c0_13, %c0_14] : memref<4x128x64xbf16, #tpu.memory_space<vmem>>, vector<1x128x64xbf16>
    %14 = vector.shape_cast %13 : vector<1x128x64xbf16> to vector<128x64xbf16>
    %cst_15 = arith.constant dense<0.000000e+00> : vector<40x64xf32>
    %15 = tpu.matmul %12, %14, %cst_15 {dimension_numbers = #tpu.dot_dimension_numbers<[1], [0], [0], [1], [0, 0, 1, 1], [], []>} : vector<40x128xbf16>, vector<128x64xbf16>, vector<40x64xf32> -> vector<40x64xf32>
    %16 = arith.addf %10, %15 : vector<40x64xf32>
    %c0_16 = arith.constant 0 : index
    %c9 = arith.constant 9 : index
    %c0_17 = arith.constant 0 : index
    %17 = vector.load %arg1[%c0_16, %c9, %c0_17] : memref<1x56x128xbf16, #tpu.memory_space<vmem>>, vector<1x40x128xbf16>
    %18 = vector.shape_cast %17 : vector<1x40x128xbf16> to vector<40x128xbf16>
    %c3 = arith.constant 3 : index
    %c0_18 = arith.constant 0 : index
    %c0_19 = arith.constant 0 : index
    %19 = vector.load %arg2[%c3, %c0_18, %c0_19] : memref<4x128x64xbf16, #tpu.memory_space<vmem>>, vector<1x128x64xbf16>
    %20 = vector.shape_cast %19 : vector<1x128x64xbf16> to vector<128x64xbf16>
    %cst_20 = arith.constant dense<0.000000e+00> : vector<40x64xf32>
    %21 = tpu.matmul %18, %20, %cst_20 {dimension_numbers = #tpu.dot_dimension_numbers<[1], [0], [0], [1], [0, 0, 1, 1], [], []>} : vector<40x128xbf16>, vector<128x64xbf16>, vector<40x64xf32> -> vector<40x64xf32>
    %22 = arith.addf %16, %21 : vector<40x64xf32>
    %c0_21 = arith.constant 0 : index
    %c0_22 = arith.constant 0 : index
    %23 = vector.load %arg3[%c0_21, %c0_22] : memref<1x64xf32, #tpu.memory_space<vmem>>, vector<1x64xf32>
    %24 = vector.broadcast %23 : vector<1x64xf32> to vector<40x64xf32>
    %25 = arith.mulf %22, %24 : vector<40x64xf32>
    %c0_23 = arith.constant 0 : index
    %c0_24 = arith.constant 0 : index
    %26 = vector.load %arg4[%c0_23, %c0_24] : memref<1x64xf32, #tpu.memory_space<vmem>>, vector<1x64xf32>
    %27 = vector.broadcast %26 : vector<1x64xf32> to vector<40x64xf32>
    %28 = arith.addf %25, %27 : vector<40x64xf32>
    %cst_25 = arith.constant 0.000000e+00 : f32
    %29 = vector.broadcast %cst_25 : f32 to vector<40x64xf32>
    %30 = arith.maximumf %28, %29 : vector<40x64xf32>
    %31 = arith.truncf %30 : vector<40x64xf32> to vector<40x64xbf16>
    %c0_26 = arith.constant 0 : index
    %c0_27 = arith.constant 0 : index
    %c0_28 = arith.constant 0 : index
    %32 = vector.load %arg5[%c0_26, %c0_27, %c0_28] : memref<1x40x64xbf16, #tpu.memory_space<vmem>>, vector<1x40x64xbf16>
    %33 = vector.shape_cast %32 : vector<1x40x64xbf16> to vector<40x64xbf16>
    %34 = vector.shape_cast %31 : vector<40x64xbf16> to vector<1x40x64xbf16>
    tpu.vector_store %arg5[%c0_26, %c0_27, %c0_28], %34 {strides = array<i32>} : memref<1x40x64xbf16, #tpu.memory_space<vmem>>, vector<1x40x64xbf16>,
    return
  }
  func.func @transform_0(%arg0: i32) -> (i32, i32, i32) {
    %c0_i32 = arith.constant 0 : i32
    %c0_i32_0 = arith.constant 0 : i32
    %c0_i32_1 = arith.constant 0 : i32
    return %arg0, %c0_i32, %c0_i32_0 : i32, i32, i32
  }
  func.func @transform_1(%arg0: i32) -> (i32, i32, i32) {
    %c0_i32 = arith.constant 0 : i32
    %c0_i32_0 = arith.constant 0 : i32
    %c0_i32_1 = arith.constant 0 : i32
    %c0_i32_2 = arith.constant 0 : i32
    return %c0_i32, %c0_i32_0, %c0_i32_1 : i32, i32, i32
  }
  func.func @transform_2(%arg0: i32) -> (i32, i32) {
    %c0_i32 = arith.constant 0 : i32
    %c0_i32_0 = arith.constant 0 : i32
    %c0_i32_1 = arith.constant 0 : i32
    return %c0_i32, %c0_i32_0 : i32, i32
  }
  func.func @transform_3(%arg0: i32) -> (i32, i32) {
    %c0_i32 = arith.constant 0 : i32
    %c0_i32_0 = arith.constant 0 : i32
    %c0_i32_1 = arith.constant 0 : i32
    return %c0_i32, %c0_i32_0 : i32, i32
  }
  func.func @transform_4(%arg0: i32) -> (i32, i32, i32) {
    %c0_i32 = arith.constant 0 : i32
    %c0_i32_0 = arith.constant 0 : i32
    %c0_i32_1 = arith.constant 0 : i32
    return %arg0, %c0_i32, %c0_i32_0 : i32, i32, i32
  }
}

module attributes {stable_mosaic.version = 11 : i64} {
  func.func @_conv4_kernel(%arg0: i32, %arg1: memref<1x56x64xbf16, #tpu.memory_space<vmem>>, %arg2: memref<4x64x128xbf16, #tpu.memory_space<vmem>>, %arg3: memref<1x128xf32, #tpu.memory_space<vmem>>, %arg4: memref<1x128xf32, #tpu.memory_space<vmem>>, %arg5: memref<1x40x128xbf16, #tpu.memory_space<vmem>>) attributes {dimension_semantics = [#tpu.dimension_semantics<parallel>], iteration_bounds = array<i64: 2>, scalar_prefetch = 0 : i64, scratch_operands = 0 : i64, tpu.core_type = #tpu.core_type<tc>, window_params = [{transform_indices = @transform_0, window_bounds = array<i64: 1, 56, 64>}, {pipeline_mode = #tpu.pipeline_mode<synchronous>, transform_indices = @transform_1, window_bounds = array<i64: 4, 64, 128>}, {pipeline_mode = #tpu.pipeline_mode<synchronous>, transform_indices = @transform_2, window_bounds = array<i64: 1, 128>}, {pipeline_mode = #tpu.pipeline_mode<synchronous>, transform_indices = @transform_3, window_bounds = array<i64: 1, 128>}, {transform_indices = @transform_4, window_bounds = array<i64: 1, 40, 128>}]} {
    %c0 = arith.constant 0 : index
    %c0_0 = arith.constant 0 : index
    %c0_1 = arith.constant 0 : index
    %0 = vector.load %arg1[%c0, %c0_0, %c0_1] : memref<1x56x64xbf16, #tpu.memory_space<vmem>>, vector<1x40x64xbf16>
    %1 = vector.shape_cast %0 : vector<1x40x64xbf16> to vector<40x64xbf16>
    %c0_2 = arith.constant 0 : index
    %c0_3 = arith.constant 0 : index
    %c0_4 = arith.constant 0 : index
    %2 = vector.load %arg2[%c0_2, %c0_3, %c0_4] : memref<4x64x128xbf16, #tpu.memory_space<vmem>>, vector<1x64x128xbf16>
    %3 = vector.shape_cast %2 : vector<1x64x128xbf16> to vector<64x128xbf16>
    %cst = arith.constant dense<0.000000e+00> : vector<40x128xf32>
    %4 = tpu.matmul %1, %3, %cst {dimension_numbers = #tpu.dot_dimension_numbers<[1], [0], [0], [1], [0, 0, 1, 1], [], []>} : vector<40x64xbf16>, vector<64x128xbf16>, vector<40x128xf32> -> vector<40x128xf32>
    %c0_5 = arith.constant 0 : index
    %c1 = arith.constant 1 : index
    %c0_6 = arith.constant 0 : index
    %5 = vector.load %arg1[%c0_5, %c1, %c0_6] : memref<1x56x64xbf16, #tpu.memory_space<vmem>>, vector<1x40x64xbf16>
    %6 = vector.shape_cast %5 : vector<1x40x64xbf16> to vector<40x64xbf16>
    %c1_7 = arith.constant 1 : index
    %c0_8 = arith.constant 0 : index
    %c0_9 = arith.constant 0 : index
    %7 = vector.load %arg2[%c1_7, %c0_8, %c0_9] : memref<4x64x128xbf16, #tpu.memory_space<vmem>>, vector<1x64x128xbf16>
    %8 = vector.shape_cast %7 : vector<1x64x128xbf16> to vector<64x128xbf16>
    %cst_10 = arith.constant dense<0.000000e+00> : vector<40x128xf32>
    %9 = tpu.matmul %6, %8, %cst_10 {dimension_numbers = #tpu.dot_dimension_numbers<[1], [0], [0], [1], [0, 0, 1, 1], [], []>} : vector<40x64xbf16>, vector<64x128xbf16>, vector<40x128xf32> -> vector<40x128xf32>
    %10 = arith.addf %4, %9 : vector<40x128xf32>
    %c0_11 = arith.constant 0 : index
    %c8 = arith.constant 8 : index
    %c0_12 = arith.constant 0 : index
    %11 = vector.load %arg1[%c0_11, %c8, %c0_12] : memref<1x56x64xbf16, #tpu.memory_space<vmem>>, vector<1x40x64xbf16>
    %12 = vector.shape_cast %11 : vector<1x40x64xbf16> to vector<40x64xbf16>
    %c2 = arith.constant 2 : index
    %c0_13 = arith.constant 0 : index
    %c0_14 = arith.constant 0 : index
    %13 = vector.load %arg2[%c2, %c0_13, %c0_14] : memref<4x64x128xbf16, #tpu.memory_space<vmem>>, vector<1x64x128xbf16>
    %14 = vector.shape_cast %13 : vector<1x64x128xbf16> to vector<64x128xbf16>
    %cst_15 = arith.constant dense<0.000000e+00> : vector<40x128xf32>
    %15 = tpu.matmul %12, %14, %cst_15 {dimension_numbers = #tpu.dot_dimension_numbers<[1], [0], [0], [1], [0, 0, 1, 1], [], []>} : vector<40x64xbf16>, vector<64x128xbf16>, vector<40x128xf32> -> vector<40x128xf32>
    %16 = arith.addf %10, %15 : vector<40x128xf32>
    %c0_16 = arith.constant 0 : index
    %c9 = arith.constant 9 : index
    %c0_17 = arith.constant 0 : index
    %17 = vector.load %arg1[%c0_16, %c9, %c0_17] : memref<1x56x64xbf16, #tpu.memory_space<vmem>>, vector<1x40x64xbf16>
    %18 = vector.shape_cast %17 : vector<1x40x64xbf16> to vector<40x64xbf16>
    %c3 = arith.constant 3 : index
    %c0_18 = arith.constant 0 : index
    %c0_19 = arith.constant 0 : index
    %19 = vector.load %arg2[%c3, %c0_18, %c0_19] : memref<4x64x128xbf16, #tpu.memory_space<vmem>>, vector<1x64x128xbf16>
    %20 = vector.shape_cast %19 : vector<1x64x128xbf16> to vector<64x128xbf16>
    %cst_20 = arith.constant dense<0.000000e+00> : vector<40x128xf32>
    %21 = tpu.matmul %18, %20, %cst_20 {dimension_numbers = #tpu.dot_dimension_numbers<[1], [0], [0], [1], [0, 0, 1, 1], [], []>} : vector<40x64xbf16>, vector<64x128xbf16>, vector<40x128xf32> -> vector<40x128xf32>
    %22 = arith.addf %16, %21 : vector<40x128xf32>
    %c0_21 = arith.constant 0 : index
    %c0_22 = arith.constant 0 : index
    %23 = vector.load %arg3[%c0_21, %c0_22] : memref<1x128xf32, #tpu.memory_space<vmem>>, vector<1x128xf32>
    %24 = vector.broadcast %23 : vector<1x128xf32> to vector<40x128xf32>
    %25 = arith.mulf %22, %24 : vector<40x128xf32>
    %c0_23 = arith.constant 0 : index
    %c0_24 = arith.constant 0 : index
    %26 = vector.load %arg4[%c0_23, %c0_24] : memref<1x128xf32, #tpu.memory_space<vmem>>, vector<1x128xf32>
    %27 = vector.broadcast %26 : vector<1x128xf32> to vector<40x128xf32>
    %28 = arith.addf %25, %27 : vector<40x128xf32>
    %cst_25 = arith.constant 0.000000e+00 : f32
    %29 = vector.broadcast %cst_25 : f32 to vector<40x128xf32>
    %30 = arith.maximumf %28, %29 : vector<40x128xf32>
    %31 = arith.truncf %30 : vector<40x128xf32> to vector<40x128xbf16>
    %c0_26 = arith.constant 0 : index
    %c0_27 = arith.constant 0 : index
    %c0_28 = arith.constant 0 : index
    %32 = vector.load %arg5[%c0_26, %c0_27, %c0_28] : memref<1x40x128xbf16, #tpu.memory_space<vmem>>, vector<1x40x128xbf16>
    %33 = vector.shape_cast %32 : vector<1x40x128xbf16> to vector<40x128xbf16>
    %34 = vector.shape_cast %31 : vector<40x128xbf16> to vector<1x40x128xbf16>
    tpu.vector_store %arg5[%c0_26, %c0_27, %c0_28], %34 {strides = array<i32>} : memref<1x40x128xbf16, #tpu.memory_space<vmem>>, vector<1x40x128xbf16>,
    return
  }
  func.func @transform_0(%arg0: i32) -> (i32, i32, i32) {
    %c0_i32 = arith.constant 0 : i32
    %c0_i32_0 = arith.constant 0 : i32
    %c0_i32_1 = arith.constant 0 : i32
    return %arg0, %c0_i32, %c0_i32_0 : i32, i32, i32
  }
  func.func @transform_1(%arg0: i32) -> (i32, i32, i32) {
    %c0_i32 = arith.constant 0 : i32
    %c0_i32_0 = arith.constant 0 : i32
    %c0_i32_1 = arith.constant 0 : i32
    %c0_i32_2 = arith.constant 0 : i32
    return %c0_i32, %c0_i32_0, %c0_i32_1 : i32, i32, i32
  }
  func.func @transform_2(%arg0: i32) -> (i32, i32) {
    %c0_i32 = arith.constant 0 : i32
    %c0_i32_0 = arith.constant 0 : i32
    %c0_i32_1 = arith.constant 0 : i32
    return %c0_i32, %c0_i32_0 : i32, i32
  }
  func.func @transform_3(%arg0: i32) -> (i32, i32) {
    %c0_i32 = arith.constant 0 : i32
    %c0_i32_0 = arith.constant 0 : i32
    %c0_i32_1 = arith.constant 0 : i32
    return %c0_i32, %c0_i32_0 : i32, i32
  }
  func.func @transform_4(%arg0: i32) -> (i32, i32, i32) {
    %c0_i32 = arith.constant 0 : i32
    %c0_i32_0 = arith.constant 0 : i32
    %c0_i32_1 = arith.constant 0 : i32
    return %arg0, %c0_i32, %c0_i32_0 : i32, i32, i32
  }
}

module attributes {stable_mosaic.version = 11 : i64} {
  func.func @_conv4_head_kernel(%arg0: i32, %arg1: memref<1x168x32xbf16, #tpu.memory_space<vmem>>, %arg2: memref<4x32x128xbf16, #tpu.memory_space<vmem>>, %arg3: memref<1x128xf32, #tpu.memory_space<vmem>>, %arg4: memref<1x128xf32, #tpu.memory_space<vmem>>, %arg5: memref<128x16xbf16, #tpu.memory_space<vmem>>, %arg6: memref<1x16xf32, #tpu.memory_space<vmem>>, %arg7: memref<1x144x16xf32, #tpu.memory_space<vmem>>) attributes {dimension_semantics = [#tpu.dimension_semantics<parallel>], iteration_bounds = array<i64: 2>, scalar_prefetch = 0 : i64, scratch_operands = 0 : i64, tpu.core_type = #tpu.core_type<tc>, window_params = [{transform_indices = @transform_0, window_bounds = array<i64: 1, 168, 32>}, {pipeline_mode = #tpu.pipeline_mode<synchronous>, transform_indices = @transform_1, window_bounds = array<i64: 4, 32, 128>}, {pipeline_mode = #tpu.pipeline_mode<synchronous>, transform_indices = @transform_2, window_bounds = array<i64: 1, 128>}, {pipeline_mode = #tpu.pipeline_mode<synchronous>, transform_indices = @transform_3, window_bounds = array<i64: 1, 128>}, {pipeline_mode = #tpu.pipeline_mode<synchronous>, transform_indices = @transform_4, window_bounds = array<i64: 128, 16>}, {pipeline_mode = #tpu.pipeline_mode<synchronous>, transform_indices = @transform_5, window_bounds = array<i64: 1, 16>}, {transform_indices = @transform_6, window_bounds = array<i64: 1, 144, 16>}]} {
    %c0 = arith.constant 0 : index
    %c0_0 = arith.constant 0 : index
    %c0_1 = arith.constant 0 : index
    %0 = vector.load %arg1[%c0, %c0_0, %c0_1] : memref<1x168x32xbf16, #tpu.memory_space<vmem>>, vector<1x144x32xbf16>
    %1 = vector.shape_cast %0 : vector<1x144x32xbf16> to vector<144x32xbf16>
    %c0_2 = arith.constant 0 : index
    %c0_3 = arith.constant 0 : index
    %c0_4 = arith.constant 0 : index
    %2 = vector.load %arg2[%c0_2, %c0_3, %c0_4] : memref<4x32x128xbf16, #tpu.memory_space<vmem>>, vector<1x32x128xbf16>
    %3 = vector.shape_cast %2 : vector<1x32x128xbf16> to vector<32x128xbf16>
    %cst = arith.constant dense<0.000000e+00> : vector<144x128xf32>
    %4 = tpu.matmul %1, %3, %cst {dimension_numbers = #tpu.dot_dimension_numbers<[1], [0], [0], [1], [0, 0, 1, 1], [], []>} : vector<144x32xbf16>, vector<32x128xbf16>, vector<144x128xf32> -> vector<144x128xf32>
    %c0_5 = arith.constant 0 : index
    %c1 = arith.constant 1 : index
    %c0_6 = arith.constant 0 : index
    %5 = vector.load %arg1[%c0_5, %c1, %c0_6] : memref<1x168x32xbf16, #tpu.memory_space<vmem>>, vector<1x144x32xbf16>
    %6 = vector.shape_cast %5 : vector<1x144x32xbf16> to vector<144x32xbf16>
    %c1_7 = arith.constant 1 : index
    %c0_8 = arith.constant 0 : index
    %c0_9 = arith.constant 0 : index
    %7 = vector.load %arg2[%c1_7, %c0_8, %c0_9] : memref<4x32x128xbf16, #tpu.memory_space<vmem>>, vector<1x32x128xbf16>
    %8 = vector.shape_cast %7 : vector<1x32x128xbf16> to vector<32x128xbf16>
    %cst_10 = arith.constant dense<0.000000e+00> : vector<144x128xf32>
    %9 = tpu.matmul %6, %8, %cst_10 {dimension_numbers = #tpu.dot_dimension_numbers<[1], [0], [0], [1], [0, 0, 1, 1], [], []>} : vector<144x32xbf16>, vector<32x128xbf16>, vector<144x128xf32> -> vector<144x128xf32>
    %10 = arith.addf %4, %9 : vector<144x128xf32>
    %c0_11 = arith.constant 0 : index
    %c16 = arith.constant 16 : index
    %c0_12 = arith.constant 0 : index
    %11 = vector.load %arg1[%c0_11, %c16, %c0_12] : memref<1x168x32xbf16, #tpu.memory_space<vmem>>, vector<1x144x32xbf16>
    %12 = vector.shape_cast %11 : vector<1x144x32xbf16> to vector<144x32xbf16>
    %c2 = arith.constant 2 : index
    %c0_13 = arith.constant 0 : index
    %c0_14 = arith.constant 0 : index
    %13 = vector.load %arg2[%c2, %c0_13, %c0_14] : memref<4x32x128xbf16, #tpu.memory_space<vmem>>, vector<1x32x128xbf16>
    %14 = vector.shape_cast %13 : vector<1x32x128xbf16> to vector<32x128xbf16>
    %cst_15 = arith.constant dense<0.000000e+00> : vector<144x128xf32>
    %15 = tpu.matmul %12, %14, %cst_15 {dimension_numbers = #tpu.dot_dimension_numbers<[1], [0], [0], [1], [0, 0, 1, 1], [], []>} : vector<144x32xbf16>, vector<32x128xbf16>, vector<144x128xf32> -> vector<144x128xf32>
    %16 = arith.addf %10, %15 : vector<144x128xf32>
    %c0_16 = arith.constant 0 : index
    %c17 = arith.constant 17 : index
    %c0_17 = arith.constant 0 : index
    %17 = vector.load %arg1[%c0_16, %c17, %c0_17] : memref<1x168x32xbf16, #tpu.memory_space<vmem>>, vector<1x144x32xbf16>
    %18 = vector.shape_cast %17 : vector<1x144x32xbf16> to vector<144x32xbf16>
    %c3 = arith.constant 3 : index
    %c0_18 = arith.constant 0 : index
    %c0_19 = arith.constant 0 : index
    %19 = vector.load %arg2[%c3, %c0_18, %c0_19] : memref<4x32x128xbf16, #tpu.memory_space<vmem>>, vector<1x32x128xbf16>
    %20 = vector.shape_cast %19 : vector<1x32x128xbf16> to vector<32x128xbf16>
    %cst_20 = arith.constant dense<0.000000e+00> : vector<144x128xf32>
    %21 = tpu.matmul %18, %20, %cst_20 {dimension_numbers = #tpu.dot_dimension_numbers<[1], [0], [0], [1], [0, 0, 1, 1], [], []>} : vector<144x32xbf16>, vector<32x128xbf16>, vector<144x128xf32> -> vector<144x128xf32>
    %22 = arith.addf %16, %21 : vector<144x128xf32>
    %c0_21 = arith.constant 0 : index
    %c0_22 = arith.constant 0 : index
    %23 = vector.load %arg3[%c0_21, %c0_22] : memref<1x128xf32, #tpu.memory_space<vmem>>, vector<1x128xf32>
    %24 = vector.broadcast %23 : vector<1x128xf32> to vector<144x128xf32>
    %25 = arith.mulf %22, %24 : vector<144x128xf32>
    %c0_23 = arith.constant 0 : index
    %c0_24 = arith.constant 0 : index
    %26 = vector.load %arg4[%c0_23, %c0_24] : memref<1x128xf32, #tpu.memory_space<vmem>>, vector<1x128xf32>
    %27 = vector.broadcast %26 : vector<1x128xf32> to vector<144x128xf32>
    %28 = arith.addf %25, %27 : vector<144x128xf32>
    %cst_25 = arith.constant 0.000000e+00 : f32
    %29 = vector.broadcast %cst_25 : f32 to vector<144x128xf32>
    %30 = arith.maximumf %28, %29 : vector<144x128xf32>
    %31 = arith.truncf %30 : vector<144x128xf32> to vector<144x128xbf16>
    %c0_26 = arith.constant 0 : index
    %c0_27 = arith.constant 0 : index
    %32 = vector.load %arg5[%c0_26, %c0_27] : memref<128x16xbf16, #tpu.memory_space<vmem>>, vector<128x16xbf16>
    %cst_28 = arith.constant dense<0.000000e+00> : vector<144x16xf32>
    %33 = tpu.matmul %31, %32, %cst_28 {dimension_numbers = #tpu.dot_dimension_numbers<[1], [0], [0], [1], [0, 0, 1, 1], [], []>} : vector<144x128xbf16>, vector<128x16xbf16>, vector<144x16xf32> -> vector<144x16xf32>
    %c0_29 = arith.constant 0 : index
    %c0_30 = arith.constant 0 : index
    %34 = vector.load %arg6[%c0_29, %c0_30] : memref<1x16xf32, #tpu.memory_space<vmem>>, vector<1x16xf32>
    %35 = vector.broadcast %34 : vector<1x16xf32> to vector<144x16xf32>
    %36 = arith.addf %33, %35 : vector<144x16xf32>
    %c0_31 = arith.constant 0 : index
    %c0_32 = arith.constant 0 : index
    %c0_33 = arith.constant 0 : index
    %37 = vector.load %arg7[%c0_31, %c0_32, %c0_33] : memref<1x144x16xf32, #tpu.memory_space<vmem>>, vector<1x144x16xf32>
    %38 = vector.shape_cast %37 : vector<1x144x16xf32> to vector<144x16xf32>
    %39 = vector.shape_cast %36 : vector<144x16xf32> to vector<1x144x16xf32>
    tpu.vector_store %arg7[%c0_31, %c0_32, %c0_33], %39 {strides = array<i32>} : memref<1x144x16xf32, #tpu.memory_space<vmem>>, vector<1x144x16xf32>,
    return
  }
  func.func @transform_0(%arg0: i32) -> (i32, i32, i32) {
    %c0_i32 = arith.constant 0 : i32
    %c0_i32_0 = arith.constant 0 : i32
    %c0_i32_1 = arith.constant 0 : i32
    return %arg0, %c0_i32, %c0_i32_0 : i32, i32, i32
  }
  func.func @transform_1(%arg0: i32) -> (i32, i32, i32) {
    %c0_i32 = arith.constant 0 : i32
    %c0_i32_0 = arith.constant 0 : i32
    %c0_i32_1 = arith.constant 0 : i32
    %c0_i32_2 = arith.constant 0 : i32
    return %c0_i32, %c0_i32_0, %c0_i32_1 : i32, i32, i32
  }
  func.func @transform_2(%arg0: i32) -> (i32, i32) {
    %c0_i32 = arith.constant 0 : i32
    %c0_i32_0 = arith.constant 0 : i32
    %c0_i32_1 = arith.constant 0 : i32
    return %c0_i32, %c0_i32_0 : i32, i32
  }
  func.func @transform_3(%arg0: i32) -> (i32, i32) {
    %c0_i32 = arith.constant 0 : i32
    %c0_i32_0 = arith.constant 0 : i32
    %c0_i32_1 = arith.constant 0 : i32
    return %c0_i32, %c0_i32_0 : i32, i32
  }
  func.func @transform_4(%arg0: i32) -> (i32, i32) {
    %c0_i32 = arith.constant 0 : i32
    %c0_i32_0 = arith.constant 0 : i32
    %c0_i32_1 = arith.constant 0 : i32
    return %c0_i32, %c0_i32_0 : i32, i32
  }
  func.func @transform_5(%arg0: i32) -> (i32, i32) {
    %c0_i32 = arith.constant 0 : i32
    %c0_i32_0 = arith.constant 0 : i32
    %c0_i32_1 = arith.constant 0 : i32
    return %c0_i32, %c0_i32_0 : i32, i32
  }
  func.func @transform_6(%arg0: i32) -> (i32, i32, i32) {
    %c0_i32 = arith.constant 0 : i32
    %c0_i32_0 = arith.constant 0 : i32
    %c0_i32_1 = arith.constant 0 : i32
    return %arg0, %c0_i32, %c0_i32_0 : i32, i32, i32
  }
}

</mosaic_0001>

<bundles_post_ra>
// kernel: tile.46
= control target key start
LH: loop header
LB: loop body
LE: loop exit
PB: predicated region body
PF: predicated region fallthrough
CT: control target
= control target key end

     0   :  { %s22_s0 = inlined_call_operand.vmem [shape: f32[32], index: 0, kind: input, shape index: {}]   ;;  %s23_s1 = inlined_call_operand.vmem [shape: f32[4,32], index: 1, kind: output, shape index: {}]  }
   0x1   :  { %v4_v0 = vld [vmem:[%s22_s0] ss:$0 sm:$0xff] }
   0x2   :  { %5 = vst [vmem:[%s23_s1] sm:$0xf] %v4_v0 }

// kernel: tile.38
= control target key start
LH: loop header
LB: loop body
LE: loop exit
PB: predicated region body
PF: predicated region fallthrough
CT: control target
= control target key end

     0   :  { %s22_s0 = inlined_call_operand.vmem [shape: f32[4], index: 0, kind: input, shape index: {}]   ;;  %s23_s1 = inlined_call_operand.vmem [shape: f32[4,4], index: 1, kind: output, shape index: {}]  }
   0x1   :  { %v4_v0 = vld [vmem:[%s22_s0] ss:$0 sm:$0xff] }
   0x2   :  { %5 = vst [vmem:[%s23_s1] sm:$0xf] %v4_v0 }

// kernel: tile.49
= control target key start
LH: loop header
LB: loop body
LE: loop exit
PB: predicated region body
PF: predicated region fallthrough
CT: control target
= control target key end

     0   :  { %vm7_vm0 = vcmask 31744   ;;  %s37_s8 = smov 4   ;;  %s38_s9 = smov 8   ;;  %vm13_vm1 = vcmask 130144   ;;  %vm19_vm2 = vcmask 97344   ;;  %vm25_vm3 = vcmask 64544   ;;  %s55_s0 = inlined_call_operand.vmem [shape: f32[4,4], index: 0, kind: input, shape index: {}]   ;;  %s56_s1 = inlined_call_operand.vmem [shape: f32[1,16], index: 1, kind: output, shape index: {}]  }
   0x1   :  { %v4_v0 = vld [vmem:[%s55_s0] sm:$0xf]  ;;  %s36_s0 = smov 12  }
   0x2   :  { %5 = vst [vmem:[#allocation1] sm:$0xf] %v4_v0 }
   0x9   :  { %v10_v1 = vld [vmem:[#allocation1 + $0x3] sm:$0x1]   ;;  %v22_v2 = vld [vmem:[#allocation1 + $0x1] sm:$0x1]   ;;  %v6_v3 = vld [vmem:[#allocation1] sm:$0x1]  }
   0xa   :  { %11 = vrot.lane.b32.xlu0 %v10_v1, %s36_s0  ;;  %23 = vrot.lane.b32.xlu1 %v22_v2, %s37_s8  ;;  %v16_v4 = vld [vmem:[#allocation1 + $0x2] sm:$0x1]   ;;  %8 = vst.msk [vmem:[#allocation0] sm:$0x1] %vm7_vm0, %v6_v3  }
   0xe   :  { %17 = vrot.lane.b32.xlu0 %v16_v4, %s38_s9 }
  0x7c   :  { %v12_v5 = vpop.permute.xlu0 %11   ;;  %v24_v6 = vpop.permute.xlu1 %23  }
  0x7d   :  { %14 = vst.msk [vmem:[#allocation0] sm:$0x1] %vm13_vm1, %v12_v5  }
  0x80   :  { %v18_v7 = vpop.permute.xlu0 %17  }
  0x81   :  { %20 = vst.msk [vmem:[#allocation0] sm:$0x1] %vm19_vm2, %v18_v7  }
  0x82   :  { %26 = vst.msk [vmem:[#allocation0] sm:$0x1] %vm25_vm3, %v24_v6  }
  0x89   :  { %v30_v8 = vld [vmem:[#allocation0] sm:$0x1] }
  0x8a   :  { %32 = vst [vmem:[%s56_s1] sm:$0x1] %v30_v8 }

// kernel: tile.48
= control target key start
LH: loop header
LB: loop body
LE: loop exit
PB: predicated region body
PF: predicated region fallthrough
CT: control target
= control target key end

     0   :  { %vm7_vm0 = vcmask 261120   ;;  %s37_s8 = smov 32   ;;  %s38_s9 = smov 64   ;;  %vm13_vm1 = vcmask 1048320   ;;  %vm19_vm2 = vcmask 785920   ;;  %vm25_vm3 = vcmask 523520   ;;  %s55_s0 = inlined_call_operand.vmem [shape: f32[4,32], index: 0, kind: input, shape index: {}]   ;;  %s56_s1 = inlined_call_operand.vmem [shape: f32[1,128], index: 1, kind: output, shape index: {}]  }
   0x1   :  { %v4_v0 = vld [vmem:[%s55_s0] sm:$0xf]  ;;  %s36_s0 = smov 96  }
   0x2   :  { %5 = vst [vmem:[#allocation1] sm:$0xf] %v4_v0 }
   0x9   :  { %v10_v1 = vld [vmem:[#allocation1 + $0x3] sm:$0x1]   ;;  %v22_v2 = vld [vmem:[#allocation1 + $0x1] sm:$0x1]   ;;  %v6_v3 = vld [vmem:[#allocation1] sm:$0x1]  }
   0xa   :  { %11 = vrot.lane.b32.xlu0 %v10_v1, %s36_s0  ;;  %23 = vrot.lane.b32.xlu1 %v22_v2, %s37_s8  ;;  %v16_v4 = vld [vmem:[#allocation1 + $0x2] sm:$0x1]   ;;  %8 = vst.msk [vmem:[#allocation0] sm:$0x1] %vm7_vm0, %v6_v3  }
   0xe   :  { %17 = vrot.lane.b32.xlu0 %v16_v4, %s38_s9 }
  0x7c   :  { %v12_v5 = vpop.permute.xlu0 %11   ;;  %v24_v6 = vpop.permute.xlu1 %23  }
  0x7d   :  { %14 = vst.msk [vmem:[#allocation0] sm:$0x1] %vm13_vm1, %v12_v5  }
  0x80   :  { %v18_v7 = vpop.permute.xlu0 %17  }
  0x81   :  { %20 = vst.msk [vmem:[#allocation0] sm:$0x1] %vm19_vm2, %v18_v7  }
  0x82   :  { %26 = vst.msk [vmem:[#allocation0] sm:$0x1] %vm25_vm3, %v24_v6  }
  0x89   :  { %v30_v8 = vld [vmem:[#allocation0] sm:$0x1] }
  0x8a   :  { %32 = vst [vmem:[%s56_s1] sm:$0x1] %v30_v8 }

// kernel: detector_forward.4
= control target key start
LH: loop header
LB: loop body
LE: loop exit
PB: predicated region body
PF: predicated region fallthrough
CT: control target
= control target key end

     0   :  { %s1847_s15 = smov 0   ;;  %s2209_s0 = inlined_call_operand.vmem [shape: bf16[2,168,12], index: 0, kind: input, shape index: {}]   ;;  %s2210_s1 = inlined_call_operand.vmem [shape: bf16[4,12,32], index: 1, kind: input, shape index: {}]   ;;  %s2211_s2 = inlined_call_operand.vmem [shape: f32[1,32], index: 2, kind: input, shape index: {}]   ;;  %s2212_s3 = inlined_call_operand.vmem [shape: f32[1,32], index: 3, kind: input, shape index: {}]   ;;  %s2213_s4 = inlined_call_operand.vmem [shape: bf16[2,144,32], index: 4, kind: output, shape index: {}]  }
   0x1 LB: > { %s1363_s16 = sadd.s32 4294967295, %s1818_s15   ;;  %p1367_p0 = scmp.ge.s32.totalorder %s1818_s15, 1  ;;  %s1818_s15 = sphi %s1847_s15, %s14_s15  }
   0x2   : > { %p162_p1 = scmp.lt.s32.totalorder %s1818_s15, 3 }
   0x4   : > { %p163_p2 = pnand %p1367_p0, %p162_p1 }
   0x5   : > { %vm381_vm0 = vcmask (!%p163_p2), 1045504   ;;  %v1820_v0 = vmov (!%p163_p2), 0.0   ;;  %v1779_v1 = vld [vmem:[%s2210_s1 + $0x10] sm:$0x3f] (!%p163_p2)   ;;  %p188_p3 = scmp.lt.s32.totalorder (!%p163_p2), %s1363_s16, 1  ;;  %vm1821_vm1 = vmmov (!%p163_p2), 0  }
   0x6   : > { %166 = sbr.rel (%p163_p2) target bundleno = 386 (0x182), region = 36  ;;  %1601 = vmatprep.subr.bf16.mxu0 (!%p163_p2), %v1820_v0  ;;  %1525 = vmatprep.subr.bf16.mxu1 (!%p163_p2), %v1820_v0  ;;  %v1781_v2 = vld [vmem:[%s2210_s1 + $0x8] sm:$0x3f] (!%p163_p2)   ;;  %v720_v3 = vsel (!%p163_p2), %vm381_vm0, %v1779_v1, 0  ;;  %v1785_v5 = vld [vmem:[%s2210_s1 + $0x18] sm:$0x3f] (!%p163_p2)  }
   0x7   : > { %1603 = vmatprep.mubr.msk.bf16.mxu0 (!%p163_p2), %vm1821_vm1, %v1820_v0  ;;  %1527 = vmatprep.mubr.msk.bf16.mxu1 (!%p163_p2), %vm1821_vm1, %v1820_v0  ;;  %v383_v4 = vsel (!%p163_p2), %vm381_vm0, %v1781_v2, 0  ;;  %vm353_vm2 = vcmask (!%p163_p2), 97280   ;;  %v1024_v7 = vsel (!%p163_p2), %vm381_vm0, %v1785_v5, 0  ;;  %v1784_v14 = vld [vmem:[%s2210_s1] sm:$0x3f] (!%p163_p2)   ;;  %vm1289_vm4 = vcmask (!%p163_p2), 257024  }
   0x8   : > { %1602 = vmatpush3.bf16.msra.mxu0 (!%p163_p2), %v720_v3  ;;  %1526 = vmatpush3.bf16.msra.mxu1 (!%p163_p2), %v383_v4  ;;  %vm271_vm3 = vsmask.f32 (!%p163_p2), 7424  ;;  %v514_v21 = vsel (!%p163_p2), %vm381_vm0, %v1784_v14, 0 }
   0x9   : > { %1639 = vmatprep.subr.bf16.mxu0 (!%p163_p2), %v1820_v0  ;;  %1563 = vmatprep.subr.bf16.mxu1 (!%p163_p2), %v1820_v0 }
   0xd   : > { %s2215_s16 = smov (!%p188_p3, %s1363_s16), 1 }
   0xe   : > { %s1767_s21 = smul.u32 84, %s2215_s16 }
   0xf   : > { %s1768_s7 = smul.u32 72, %s2215_s16 }
  0x10   : > { %s1880_s26 = scalar_lea.vmem %s2209_s0, %s1767_s21 }
  0x11   : > { %v1780_v6 = vld [vmem:[%s1880_s26 + $0x8] sm:$0xff]   ;;  %v1886_v8 = vld [vmem:[%s1880_s26] sm:$0xff]   ;;  %v1897_v13 = vld [vmem:[%s1880_s26 + $0x10] sm:$0xff]   ;;  %s2136_s10 = scalar_lea.vmem %s2213_s4, %s1768_s7 }
  0x12   : > { %1604 = vmatmul.mubr.msk.bf16.vlgmr.msra.gmra.mrb[0].mxu0 %vm353_vm2, %v1780_v6  ;;  %v1889_v9 = vld [vmem:[%s1880_s26 + $0x8] sm:$0xff]   ;;  %v273_v10 = vshrl.u32 %v1886_v8, 16  ;;  %v275_v11 = vshll.u32 %v1886_v8, 16  ;;  %v1786_v17 = vld [vmem:[%s1880_s26 + $0x10] sm:$0xff]   ;;  %v288_v20 = vshll.u32 %v1897_v13, 16  ;;  %v1914_v25 = vld [vmem:[%s1880_s26 + $0x18] sm:$0xff]  }
  0x13   : > { %1607 = vmatprep.mubr.msk.bf16.mxu0 %vm1821_vm1, %v1820_v0  ;;  %1640 = vmatpush3.bf16.msra.mxu0 %v1024_v7  ;;  %v280_v12 = vshll.u32 %v1889_v9, 16  ;;  %v284_v19 = vshrl.u32 %v1889_v9, 16  ;;  %v1788_v26 = vld [vmem:[%s1880_s26 + $0x18] sm:$0xff]   ;;  %v1918_v27 = vld [vmem:[%s1880_s26 + $0x20] sm:$0xff]   ;;  %v292_v29 = vshrl.u32 %v1897_v13, 16  ;;  %v296_v30 = vshll.u32 %v1914_v25, 16 }
  0x14   : > { %v277_v15 = vrot.slane %v275_v11, 1  ;;  %v290_v24 = vrot.slane %v288_v20, 1  ;;  %v1925_v31 = vld [vmem:[%s1880_s26 + $0x40] sm:$0xff]   ;;  %v300_v32 = vshrl.u32 %v1914_v25, 16  ;;  %v304_v33 = vshll.u32 %v1918_v27, 16  ;;  %v1936_v37 = vld [vmem:[%s1880_s26 + $0x28] sm:$0xff]  }
  0x15   : > { %v282_v16 = vrot.slane %v280_v12, 1  ;;  %v298_v35 = vrot.slane %v296_v30, 1  ;;  %v1790_v36 = vld [vmem:[%s1880_s26 + $0x20] sm:$0xff]   ;;  %v336_v38 = vshll.u32 %v1925_v31, 16  ;;  %v340_v40 = vshrl.u32 %v1925_v31, 16  ;;  %v1803_v41 = vld [vmem:[%s1880_s26 + $0x10] sm:$0xff]  }
  0x16   : > { %v278_v18 = vor.u32 %v277_v15, %v273_v10  ;;  %v294_v34 = vor.u32 %v292_v29, %v290_v24  ;;  %v1801_v39 = vld [vmem:[%s1880_s26 + $0x48] ss:$0 sps:$4 sm:$0x11]   ;;  %v306_v44 = vrot.slane %v304_v33, 1  ;;  %v308_v45 = vshrl.u32 %v1918_v27, 16  ;;  %v1804_v47 = vld [vmem:[%s1880_s26 + $0x18] sm:$0xff]  }
  0x17   : > { %v286_v23 = vor.u32 %v284_v19, %v282_v16  ;;  %v1942_v42 = vrot.slane %v336_v38, 1  ;;  %v344_v43 = vshll.u32 %v1801_v39, 16  ;;  %v923_v46 = vshll.u32 %v1803_v41, 16  ;;  %v1805_v55 = vld [vmem:[%s1880_s26 + $0x20] sm:$0xff]   ;;  %v1806_v59 = vld [vmem:[%s1880_s26 + $0x28] sm:$0xff]   ;;  %v1807_v3 = vld [vmem:[%s1880_s26 + $0x30] sm:$0xff]  }
  0x18   : > { %v283_v22 = vsel %vm271_vm3, %v278_v18, %v282_v16  ;;  %v299_v48 = vsel %vm271_vm3, %v294_v34, %v298_v35  ;;  %v927_v51 = vshrl.u32 %v1803_v41, 16  ;;  %v312_v52 = vshll.u32 %v1936_v37, 16  ;;  %v1792_v63 = vld [vmem:[%s1880_s26 + $0x28] sm:$0xff]   ;;  %v1808_v10 = vld [vmem:[%s1880_s26 + $0x38] sm:$0xff]   ;;  %v1809_v16 = vld [vmem:[%s1880_s26 + $0x40] sm:$0xff]  }
  0x19   : > { %1528 = vmatmul.mubr.msk.bf16.vlgmr.msra.gmra.mrb[0].mxu1 %vm353_vm2, %v283_v22  ;;  %v291_v28 = vsel %vm271_vm3, %v286_v23, %v290_v24  ;;  %v342_v49 = vor.u32 %v340_v40, %v1942_v42  ;;  %v346_v50 = vrot.slane %v344_v43, 1  ;;  %v1949_v53 = vrot.slane %v923_v46, 1  ;;  %v1810_v24 = vld [vmem:[%s1880_s26 + $0x48] sm:$0xff]   ;;  %v1811_v30 = vld [vmem:[%s1880_s26 + $0x50] ss:$0 sps:$4 sm:$0x11]  }
  0x1a   : > { %1608 = vmatmul.mubr.msk.bf16.gmra.mrb[4].mxu0 %vm353_vm2, %v1786_v17  ;;  %1564 = vmatpush3.bf16.msra.mxu1 %v514_v21  ;;  %v931_v54 = vshll.u32 %v1804_v47, 16  ;;  %v302_v56 = vor.u32 %v300_v32, %v298_v35  ;;  %v935_v58 = vshrl.u32 %v1804_v47, 16  ;;  %v939_v62 = vshll.u32 %v1805_v55, 16  ;;  %v1989_v43 = vld [vmem:[%s1880_s26 + $0x30] sm:$0xff]  }
  0x1b   : > { %1611 = vmatprep.mubr.msk.bf16.mxu0 %vm1821_vm1, %v1820_v0  ;;  %1531 = vmatprep.mubr.msk.bf16.mxu1 %vm1821_vm1, %v1820_v0  ;;  %v1954_v57 = vsel %vm271_vm3, %v342_v49, %v346_v50  ;;  %v929_v60 = vor.u32 %v927_v51, %v1949_v53  ;;  %v943_v1 = vshrl.u32 %v1805_v55, 16  ;;  %v947_v2 = vshll.u32 %v1806_v59, 16  ;;  %v1794_v49 = vld [vmem:[%s1880_s26 + $0x30] sm:$0xff]  }
  0x1c   : > { %v933_v61 = vrot.slane %v931_v54, 1  ;;  %v951_v4 = vshrl.u32 %v1806_v59, 16  ;;  %v941_v7 = vrot.slane %v939_v62, 1  ;;  %v307_v11 = vsel %vm271_vm3, %v302_v56, %v306_v44 }
  0x1d   : > { %v949_v12 = vrot.slane %v947_v2, 1  ;;  %v955_v14 = vshll.u32 %v1807_v3, 16  ;;  %v959_v15 = vshrl.u32 %v1807_v3, 16  ;;  %v963_v19 = vshll.u32 %v1808_v10, 16 }
  0x1e   : > { %v1966_v5 = vsel %vm271_vm3, %v929_v60, %v933_v61  ;;  %v937_v6 = vor.u32 %v935_v58, %v933_v61  ;;  %v945_v18 = vor.u32 %v943_v1, %v941_v7  ;;  %v967_v20 = vshrl.u32 %v1808_v10, 16  ;;  %v2014_v60 = vld [vmem:[%s1880_s26 + $0x38] sm:$0xff]  }
  0x1f   : > { %v953_v21 = vor.u32 %v951_v4, %v949_v12  ;;  %v957_v22 = vrot.slane %v955_v14, 1  ;;  %v971_v23 = vshll.u32 %v1809_v16, 16  ;;  %v965_v29 = vrot.slane %v963_v19, 1  ;;  %v1796_v61 = vld [vmem:[%s1880_s26 + $0x38] sm:$0xff]   ;;  %v1798_v4 = vld [vmem:[%s1880_s26 + $0x40] sm:$0xff]   ;;  %v1800_v14 = vld [vmem:[%s1880_s26 + $0x48] sm:$0xff]  }
  0x20   : > { %v1972_v17 = vsel %vm271_vm3, %v937_v6, %v941_v7  ;;  %v979_v35 = vshll.u32 %v1810_v24, 16  ;;  %v983_v39 = vshrl.u32 %v1810_v24, 16  ;;  %v987_v40 = vshll.u32 %v1811_v30, 16  ;;  %v1802_v6 = vld [vmem:[%s1880_s26 + $0x8] sm:$0xff]  }
  0x21   : > { %1532 = vmatmul.mubr.msk.bf16.gmra.mrb[4].mxu1 %vm353_vm2, %v291_v28  ;;  %v1976_v28 = vsel %vm271_vm3, %v945_v18, %v949_v12  ;;  %v1981_v32 = vsel %vm271_vm3, %v953_v21, %v957_v22  ;;  %v961_v33 = vor.u32 %v959_v15, %v957_v22  ;;  %v973_v34 = vrot.slane %v971_v23, 1 }
  0x22   : > { %1612 = vmatmul.mubr.msk.bf16.gmra.mrb[8].mxu0 %vm353_vm2, %v1788_v26  ;;  %1535 = vmatprep.mubr.msk.bf16.mxu1 %vm1821_vm1, %v1820_v0  ;;  %v975_v26 = vshrl.u32 %v1809_v16, 16  ;;  %v969_v38 = vor.u32 %v967_v20, %v965_v29  ;;  %v314_v41 = vrot.slane %v312_v52, 1  ;;  %v316_v54 = vshrl.u32 %v1936_v37, 16 }
  0x23   : > { %1615 = vmatprep.mubr.msk.bf16.mxu0 %vm1821_vm1, %v1820_v0  ;;  %v1992_v46 = vsel %vm271_vm3, %v961_v33, %v965_v29  ;;  %v320_v55 = vshll.u32 %v1989_v43, 16  ;;  %v328_v1 = vshll.u32 %v2014_v60, 16  ;;  %v332_v10 = vshrl.u32 %v2014_v60, 16 }
  0x24   : > { %v977_v47 = vor.u32 %v975_v26, %v973_v34  ;;  %v318_v58 = vor.u32 %v316_v54, %v314_v41  ;;  %v916_v15 = vshrl.u32 %v1802_v6, 16 }
  0x25   : > { %v322_v59 = vrot.slane %v320_v55, 1  ;;  %v330_v3 = vrot.slane %v328_v1, 1 }
  0x27   : > { %v323_v62 = vsel %vm271_vm3, %v318_v58, %v322_v59  ;;  %v334_v12 = vor.u32 %v332_v10, %v330_v3 }
  0x29   : > { %1536 = vmatmul.mubr.msk.bf16.gmra.mrb[8].mxu1 %vm353_vm2, %v299_v48  ;;  %v981_v48 = vrot.slane %v979_v35, 1  ;;  %v339_v18 = vsel %vm271_vm3, %v334_v12, %v1942_v42  ;;  %v2121_v42 = vld [vmem:[%s2211_s2] ss:$0 sm:$0xff] }
  0x2a   : > { %1616 = vmatmul.mubr.msk.bf16.gmra.mrb[12].mxu0 %vm353_vm2, %v1790_v36  ;;  %1539 = vmatprep.mubr.msk.bf16.mxu1 %vm1821_vm1, %v1820_v0  ;;  %v310_v36 = vor.u32 %v308_v45, %v306_v44  ;;  %v1995_v44 = vsel %vm271_vm3, %v969_v38, %v973_v34  ;;  %v989_v45 = vrot.slane %v987_v40, 1 }
  0x2b   : > { %1619 = vmatprep.mubr.msk.bf16.mxu0 %vm1821_vm1, %v1820_v0  ;;  %v1999_v50 = vsel %vm271_vm3, %v977_v47, %v981_v48  ;;  %v985_v51 = vor.u32 %v983_v39, %v981_v48 }
  0x2c   : > { %v315_v52 = vsel %vm271_vm3, %v310_v36, %v314_v41 }
  0x2d   : > { %v2005_v56 = vsel %vm271_vm3, %v985_v51, %v989_v45 }
  0x31   : > { %1540 = vmatmul.mubr.msk.bf16.gmra.mrb[12].mxu1 %vm353_vm2, %v307_v11  ;;  %v918_v11 = vshll.u32 %v1802_v6, 16 }
  0x32   : > { %1620 = vmatmul.mubr.msk.bf16.gmra.mrb[16].mxu0 %vm353_vm2, %v1792_v63  ;;  %1543 = vmatprep.mubr.msk.bf16.mxu1 %vm1821_vm1, %v1820_v0  ;;  %v324_v63 = vshrl.u32 %v1989_v43, 16 }
  0x33   : > { %1623 = vmatprep.mubr.msk.bf16.mxu0 %vm1821_vm1, %v1820_v0  ;;  %v920_v16 = vrot.slane %v918_v11, 1 }
  0x34   : > { %v326_v2 = vor.u32 %v324_v63, %v322_v59 }
  0x35   : > { %v921_v19 = vor.u32 %v920_v16, %v916_v15 }
  0x36   : > { %v331_v7 = vsel %vm271_vm3, %v326_v2, %v330_v3 }
  0x37   : > { %v926_v20 = vsel %vm271_vm3, %v921_v19, %v1949_v53 }
  0x39   : > { %1544 = vmatmul.mubr.msk.bf16.gmra.mrb[16].mxu1 %vm353_vm2, %v315_v52 }
  0x3a   : > { %1624 = vmatmul.mubr.msk.bf16.gmra.mrb[20].mxu0 %vm353_vm2, %v1794_v49  ;;  %1547 = vmatprep.mubr.msk.bf16.mxu1 %vm1821_vm1, %v1820_v0 }
  0x3b   : > { %1627 = vmatprep.mubr.msk.bf16.mxu0 %vm1821_vm1, %v1820_v0 }
  0x41   : > { %1548 = vmatmul.mubr.msk.bf16.gmra.mrb[20].mxu1 %vm353_vm2, %v323_v62 }
  0x42   : > { %1628 = vmatmul.mubr.msk.bf16.gmra.mrb[24].mxu0 %vm353_vm2, %v1796_v61  ;;  %1551 = vmatprep.mubr.msk.bf16.mxu1 %vm1821_vm1, %v1820_v0 }
  0x43   : > { %1631 = vmatprep.mubr.msk.bf16.mxu0 %vm1821_vm1, %v1820_v0 }
  0x49   : > { %1552 = vmatmul.mubr.msk.bf16.gmra.mrb[24].mxu1 %vm353_vm2, %v331_v7 }
  0x4a   : > { %1632 = vmatmul.mubr.msk.bf16.gmra.mrb[28].mxu0 %vm353_vm2, %v1798_v4  ;;  %1555 = vmatprep.mubr.msk.bf16.mxu1 %vm1821_vm1, %v1820_v0 }
  0x4b   : > { %1635 = vmatprep.mubr.msk.bf16.mxu0 %vm1821_vm1, %v1820_v0 }
  0x51   : > { %1556 = vmatmul.mubr.msk.bf16.gmra.mrb[28].mxu1 %vm353_vm2, %v339_v18 }
  0x52   : > { %1636 = vmatmul.mubr.msk.bf16.gmra.mrb[32].mxu0 %vm353_vm2, %v1800_v14  ;;  %1559 = vmatprep.mubr.msk.bf16.mxu1 %vm1821_vm1, %v1820_v0 }
  0x53   : > { %1641 = vmatprep.mubr.msk.bf16.mxu0 %vm1821_vm1, %v1820_v0 }
  0x59   : > { %1560 = vmatmul.mubr.msk.bf16.gmra.mrb[32].mxu1 %vm353_vm2, %v1954_v57 }
  0x5a   : > { %1642 = vmatmul.mubr.msk.bf16.vlgmr.msra.gmra.mrb[0].mxu0 %vm353_vm2, %v926_v20  ;;  %1565 = vmatprep.mubr.msk.bf16.mxu1 %vm1821_vm1, %v1820_v0 }
  0x5b   : > { %1645 = vmatprep.mubr.msk.bf16.mxu0 %vm1821_vm1, %v1820_v0 }
  0x61   : > { %1566 = vmatmul.mubr.msk.bf16.vlgmr.msra.gmra.mrb[0].mxu1 %vm353_vm2, %v1886_v8 }
  0x62   : > { %1646 = vmatmul.mubr.msk.bf16.gmra.mrb[4].mxu0 %vm353_vm2, %v1966_v5  ;;  %1569 = vmatprep.mubr.msk.bf16.mxu1 %vm1821_vm1, %v1820_v0 }
  0x63   : > { %1649 = vmatprep.mubr.msk.bf16.mxu0 %vm1821_vm1, %v1820_v0 }
  0x69   : > { %1570 = vmatmul.mubr.msk.bf16.gmra.mrb[4].mxu1 %vm353_vm2, %v1889_v9 }
  0x6a   : > { %1650 = vmatmul.mubr.msk.bf16.gmra.mrb[8].mxu0 %vm353_vm2, %v1972_v17  ;;  %1573 = vmatprep.mubr.msk.bf16.mxu1 %vm1821_vm1, %v1820_v0 }
  0x6b   : > { %1653 = vmatprep.mubr.msk.bf16.mxu0 %vm1821_vm1, %v1820_v0 }
  0x71   : > { %1574 = vmatmul.mubr.msk.bf16.gmra.mrb[8].mxu1 %vm353_vm2, %v1897_v13 }
  0x72   : > { %1654 = vmatmul.mubr.msk.bf16.gmra.mrb[12].mxu0 %vm353_vm2, %v1976_v28  ;;  %1577 = vmatprep.mubr.msk.bf16.mxu1 %vm1821_vm1, %v1820_v0 }
  0x73   : > { %1657 = vmatprep.mubr.msk.bf16.mxu0 %vm1821_vm1, %v1820_v0 }
  0x79   : > { %1578 = vmatmul.mubr.msk.bf16.gmra.mrb[12].mxu1 %vm353_vm2, %v1914_v25 }
  0x7a   : > { %1658 = vmatmul.mubr.msk.bf16.gmra.mrb[16].mxu0 %vm353_vm2, %v1981_v32  ;;  %1581 = vmatprep.mubr.msk.bf16.mxu1 %vm1821_vm1, %v1820_v0 }
  0x7b   : > { %1661 = vmatprep.mubr.msk.bf16.mxu0 %vm1821_vm1, %v1820_v0 }
  0x81   : > { %1582 = vmatmul.mubr.msk.bf16.gmra.mrb[16].mxu1 %vm353_vm2, %v1918_v27 }
  0x82   : > { %1662 = vmatmul.mubr.msk.bf16.gmra.mrb[20].mxu0 %vm353_vm2, %v1992_v46  ;;  %1585 = vmatprep.mubr.msk.bf16.mxu1 %vm1821_vm1, %v1820_v0 }
  0x83   : > { %1665 = vmatprep.mubr.msk.bf16.mxu0 %vm1821_vm1, %v1820_v0 }
  0x89   : > { %1586 = vmatmul.mubr.msk.bf16.gmra.mrb[20].mxu1 %vm353_vm2, %v1936_v37 }
  0x8a   : > { %1666 = vmatmul.mubr.msk.bf16.gmra.mrb[24].mxu0 %vm353_vm2, %v1995_v44  ;;  %1589 = vmatprep.mubr.msk.bf16.mxu1 %vm1821_vm1, %v1820_v0 }
  0x8b   : > { %1669 = vmatprep.mubr.msk.bf16.mxu0 %vm1821_vm1, %v1820_v0 }
  0x91   : > { %1590 = vmatmul.mubr.msk.bf16.gmra.mrb[24].mxu1 %vm353_vm2, %v1989_v43 }
  0x92   : > { %1670 = vmatmul.mubr.msk.bf16.gmra.mrb[28].mxu0 %vm353_vm2, %v1999_v50  ;;  %1593 = vmatprep.mubr.msk.bf16.mxu1 %vm1821_vm1, %v1820_v0 }
  0x93   : > { %1673 = vmatprep.mubr.msk.bf16.mxu0 %vm1821_vm1, %v1820_v0 }
  0x99   : > { %1594 = vmatmul.mubr.msk.bf16.gmra.mrb[28].mxu1 %vm353_vm2, %v2014_v60 }
  0x9a   : > { %1674 = vmatmul.mubr.msk.bf16.gmra.mrb[32].mxu0 %vm353_vm2, %v2005_v56  ;;  %1597 = vmatprep.mubr.msk.bf16.mxu1 %vm1821_vm1, %v1820_v0  ;;  %v2126_v0 = vld [vmem:[%s2212_s3] ss:$0 sm:$0xff] }
  0xa1   : > { %1598 = vmatmul.mubr.msk.bf16.gmra.mrb[32].mxu1 %vm353_vm2, %v1925_v31 }
 0x12d   : > { %v1060_v8 = vpop.f32.mrb[0].mxu0 }
 0x12e   : > { %v1643_v9 = vpop.f32.mrb[1].mxu0 }
 0x12f   : > { %v1063_v13 = vpop.f32.mrb[2].mxu0 }
 0x130   : > { %v1644_v25 = vpop.f32.mrb[3].mxu0 }
 0x134   : > { %v550_v37 = vpop.f32.mrb[0].mxu1 }
 0x135   : > { %v1068_v27 = vpop.f32.mrb[4].mxu0  ;;  %v1677_v57 = vadd.f32 %v1060_v8, %v550_v37  ;;  %v1567_v5 = vpop.f32.mrb[1].mxu1 }
 0x136   : > { %v1647_v53 = vpop.f32.mrb[5].mxu0  ;;  %v553_v31 = vpop.f32.mrb[2].mxu1 }
 0x137   : > { %v1071_v17 = vpop.f32.mrb[6].mxu0  ;;  %v1156_v22 = vmul.f32 %v1677_v57, %v2121_v42  ;;  %v1678_v23 = vadd.f32 %v1063_v13, %v553_v31  ;;  %v1568_v24 = vpop.f32.mrb[3].mxu1 }
 0x138   : > { %v1648_v21 = vpop.f32.mrb[7].mxu0 }
 0x139   : > { %v1181_v26 = vadd.f32 %v2126_v0, %v1156_v22  ;;  %v1157_v28 = vmul.f32 %v1678_v23, %v2121_v42 }
 0x13b   : > { %v1199_v29 = vmax.f32 %v1181_v26, 0.0  ;;  %v1182_v30 = vadd.f32 %v2126_v0, %v1157_v28 }
 0x13c   : > { %v558_v33 = vpop.f32.mrb[4].mxu1 }
 0x13d   : > { %v1076_v32 = vpop.f32.mrb[8].mxu0  ;;  %v1467_v35 = vpack.c.bf16 %v1199_v29, %v1199_v29  ;;  %v1200_v36 = vmax.f32 %v1182_v30, 0.0  ;;  %v1679_v38 = vadd.f32 %v1068_v27, %v558_v33  ;;  %v1571_v39 = vpop.f32.mrb[5].mxu1 }
 0x13e   : > { %v1651_v34 = vpop.f32.mrb[9].mxu0  ;;  %v561_v41 = vpop.f32.mrb[6].mxu1 }
 0x13f   : > { %v1079_v40 = vpop.f32.mrb[10].mxu0  ;;  %1290 = vst.msk [vmem:[%s2136_s10] sm:$0xf] %vm1289_vm4, %v1467_v35  ;;  %v1468_v46 = vpack.c.bf16 %v1200_v36, %v1200_v36  ;;  %v1158_v47 = vmul.f32 %v1679_v38, %v2121_v42  ;;  %v1680_v48 = vadd.f32 %v1071_v17, %v561_v41  ;;  %v1572_v44 = vpop.f32.mrb[7].mxu1 }
 0x140   : > { %v1652_v43 = vpop.f32.mrb[11].mxu0 }
 0x141   : > { %1291 = vst.msk [vmem:[%s2136_s10 + $0x4] sm:$0xf] %vm1289_vm4, %v1468_v46  ;;  %v1183_v45 = vadd.f32 %v2126_v0, %v1158_v47  ;;  %v1159_v49 = vmul.f32 %v1680_v48, %v2121_v42 }
 0x143   : > { %v1201_v50 = vmax.f32 %v1183_v45, 0.0  ;;  %v1184_v51 = vadd.f32 %v2126_v0, %v1159_v49 }
 0x144   : > { %v566_v54 = vpop.f32.mrb[8].mxu1 }
 0x145   : > { %v1084_v52 = vpop.f32.mrb[12].mxu0  ;;  %v1469_v56 = vpack.c.bf16 %v1201_v50, %v1201_v50  ;;  %v1202_v58 = vmax.f32 %v1184_v51, 0.0  ;;  %v1681_v59 = vadd.f32 %v1076_v32, %v566_v54  ;;  %v1575_v60 = vpop.f32.mrb[9].mxu1 }
 0x146   : > { %v1655_v55 = vpop.f32.mrb[13].mxu0  ;;  %v569_v62 = vpop.f32.mrb[10].mxu1 }
 0x147   : > { %v1087_v61 = vpop.f32.mrb[14].mxu0  ;;  %1292 = vst.msk [vmem:[%s2136_s10 + $0x8] sm:$0xf] %vm1289_vm4, %v1469_v56  ;;  %v1470_v1 = vpack.c.bf16 %v1202_v58, %v1202_v58  ;;  %v1160_v2 = vmul.f32 %v1681_v59, %v2121_v42  ;;  %v1682_v3 = vadd.f32 %v1079_v40, %v569_v62  ;;  %v1576_v4 = vpop.f32.mrb[11].mxu1 }
 0x148   : > { %v1656_v63 = vpop.f32.mrb[15].mxu0 }
 0x149   : > { %1293 = vst.msk [vmem:[%s2136_s10 + $0xc] sm:$0xf] %vm1289_vm4, %v1470_v1  ;;  %v1185_v6 = vadd.f32 %v2126_v0, %v1160_v2  ;;  %v1161_v7 = vmul.f32 %v1682_v3, %v2121_v42 }
 0x14b   : > { %v1203_v10 = vmax.f32 %v1185_v6, 0.0  ;;  %v1186_v11 = vadd.f32 %v2126_v0, %v1161_v7 }
 0x14c   : > { %v574_v14 = vpop.f32.mrb[12].mxu1 }
 0x14d   : > { %v1092_v12 = vpop.f32.mrb[16].mxu0  ;;  %v1471_v16 = vpack.c.bf16 %v1203_v10, %v1203_v10  ;;  %v1204_v18 = vmax.f32 %v1186_v11, 0.0  ;;  %v1683_v19 = vadd.f32 %v1084_v52, %v574_v14  ;;  %v1579_v20 = vpop.f32.mrb[13].mxu1 }
 0x14e   : > { %v1659_v15 = vpop.f32.mrb[17].mxu0  ;;  %v577_v9 = vpop.f32.mrb[14].mxu1 }
 0x14f   : > { %v1095_v8 = vpop.f32.mrb[18].mxu0  ;;  %1294 = vst.msk [vmem:[%s2136_s10 + $0x10] sm:$0xf] %vm1289_vm4, %v1471_v16  ;;  %v1472_v25 = vpack.c.bf16 %v1204_v18, %v1204_v18  ;;  %v1162_v27 = vmul.f32 %v1683_v19, %v2121_v42  ;;  %v1684_v37 = vadd.f32 %v1087_v61, %v577_v9  ;;  %v1580_v53 = vpop.f32.mrb[15].mxu1 }
 0x150   : > { %v1660_v13 = vpop.f32.mrb[19].mxu0 }
 0x151   : > { %1295 = vst.msk [vmem:[%s2136_s10 + $0x14] sm:$0xf] %vm1289_vm4, %v1472_v25  ;;  %v1187_v57 = vadd.f32 %v2126_v0, %v1162_v27  ;;  %v1163_v5 = vmul.f32 %v1684_v37, %v2121_v42 }
 0x153   : > { %v1205_v17 = vmax.f32 %v1187_v57, 0.0  ;;  %v1188_v31 = vadd.f32 %v2126_v0, %v1163_v5 }
 0x154   : > { %v582_v22 = vpop.f32.mrb[16].mxu1 }
 0x155   : > { %v1100_v21 = vpop.f32.mrb[20].mxu0  ;;  %v1473_v24 = vpack.c.bf16 %v1205_v17, %v1205_v17  ;;  %v1206_v26 = vmax.f32 %v1188_v31, 0.0  ;;  %v1685_v28 = vadd.f32 %v1092_v12, %v582_v22  ;;  %v1583_v29 = vpop.f32.mrb[17].mxu1 }
 0x156   : > { %v1663_v23 = vpop.f32.mrb[21].mxu0  ;;  %v585_v32 = vpop.f32.mrb[18].mxu1 }
 0x157   : > { %v1103_v30 = vpop.f32.mrb[22].mxu0  ;;  %1296 = vst.msk [vmem:[%s2136_s10 + $0x18] sm:$0xf] %vm1289_vm4, %v1473_v24  ;;  %v1474_v34 = vpack.c.bf16 %v1206_v26, %v1206_v26  ;;  %v1164_v35 = vmul.f32 %v1685_v28, %v2121_v42  ;;  %v1686_v36 = vadd.f32 %v1095_v8, %v585_v32  ;;  %v1584_v38 = vpop.f32.mrb[19].mxu1 }
 0x158   : > { %v1664_v33 = vpop.f32.mrb[23].mxu0 }
 0x159   : > { %1297 = vst.msk [vmem:[%s2136_s10 + $0x1c] sm:$0xf] %vm1289_vm4, %v1474_v34  ;;  %v1189_v39 = vadd.f32 %v2126_v0, %v1164_v35  ;;  %v1165_v40 = vmul.f32 %v1686_v36, %v2121_v42 }
 0x15b   : > { %v1207_v41 = vmax.f32 %v1189_v39, 0.0  ;;  %v1190_v43 = vadd.f32 %v2126_v0, %v1165_v40 }
 0x15c   : > { %v590_v47 = vpop.f32.mrb[20].mxu1 }
 0x15d   : > { %v1108_v46 = vpop.f32.mrb[24].mxu0  ;;  %v1475_v44 = vpack.c.bf16 %v1207_v41, %v1207_v41  ;;  %v1208_v45 = vmax.f32 %v1190_v43, 0.0  ;;  %v1687_v49 = vadd.f32 %v1100_v21, %v590_v47  ;;  %v1587_v50 = vpop.f32.mrb[21].mxu1 }
 0x15e   : > { %v1667_v48 = vpop.f32.mrb[25].mxu0  ;;  %v593_v52 = vpop.f32.mrb[22].mxu1 }
 0x15f   : > { %v1111_v51 = vpop.f32.mrb[26].mxu0  ;;  %1298 = vst.msk [vmem:[%s2136_s10 + $0x20] sm:$0xf] %vm1289_vm4, %v1475_v44  ;;  %v1476_v55 = vpack.c.bf16 %v1208_v45, %v1208_v45  ;;  %v1166_v56 = vmul.f32 %v1687_v49, %v2121_v42  ;;  %v1688_v58 = vadd.f32 %v1103_v30, %v593_v52  ;;  %v1588_v59 = vpop.f32.mrb[23].mxu1 }
 0x160   : > { %v1668_v54 = vpop.f32.mrb[27].mxu0 }
 0x161   : > { %1299 = vst.msk [vmem:[%s2136_s10 + $0x24] sm:$0xf] %vm1289_vm4, %v1476_v55  ;;  %v1191_v60 = vadd.f32 %v2126_v0, %v1166_v56  ;;  %v1167_v61 = vmul.f32 %v1688_v58, %v2121_v42 }
 0x163   : > { %v1209_v62 = vmax.f32 %v1191_v60, 0.0  ;;  %v1192_v63 = vadd.f32 %v2126_v0, %v1167_v61 }
 0x164   : > { %v598_v2 = vpop.f32.mrb[24].mxu1 }
 0x165   : > { %v1116_v1 = vpop.f32.mrb[28].mxu0  ;;  %v1477_v4 = vpack.c.bf16 %v1209_v62, %v1209_v62  ;;  %v1210_v6 = vmax.f32 %v1192_v63, 0.0  ;;  %v1689_v7 = vadd.f32 %v1108_v46, %v598_v2  ;;  %v1591_v10 = vpop.f32.mrb[25].mxu1 }
 0x166   : > { %v1671_v3 = vpop.f32.mrb[29].mxu0  ;;  %v601_v12 = vpop.f32.mrb[26].mxu1 }
 0x167   : > { %v1119_v11 = vpop.f32.mrb[30].mxu0  ;;  %1300 = vst.msk [vmem:[%s2136_s10 + $0x28] sm:$0xf] %vm1289_vm4, %v1477_v4  ;;  %v1478_v15 = vpack.c.bf16 %v1210_v6, %v1210_v6  ;;  %v1168_v16 = vmul.f32 %v1689_v7, %v2121_v42  ;;  %v1690_v18 = vadd.f32 %v1111_v51, %v601_v12  ;;  %v1592_v19 = vpop.f32.mrb[27].mxu1 }
 0x168   : > { %v1672_v14 = vpop.f32.mrb[31].mxu0 }
 0x169   : > { %1301 = vst.msk [vmem:[%s2136_s10 + $0x2c] sm:$0xf] %vm1289_vm4, %v1478_v15  ;;  %v1193_v20 = vadd.f32 %v2126_v0, %v1168_v16  ;;  %v1169_v8 = vmul.f32 %v1690_v18, %v2121_v42 }
 0x16b   : > { %v1211_v9 = vmax.f32 %v1193_v20, 0.0  ;;  %v1194_v13 = vadd.f32 %v2126_v0, %v1169_v8 }
 0x16c   : > { %v606_v27 = vpop.f32.mrb[28].mxu1 }
 0x16d   : > { %v1124_v25 = vpop.f32.mrb[32].mxu0  ;;  %v1479_v53 = vpack.c.bf16 %v1211_v9, %v1211_v9  ;;  %v1212_v57 = vmax.f32 %v1194_v13, 0.0  ;;  %v1691_v5 = vadd.f32 %v1116_v1, %v606_v27  ;;  %v1595_v17 = vpop.f32.mrb[29].mxu1 }
 0x16e   : > { %v1675_v37 = vpop.f32.mrb[33].mxu0  ;;  %v609_v21 = vpop.f32.mrb[30].mxu1 }
 0x16f   : > { %v1127_v31 = vpop.f32.mrb[34].mxu0  ;;  %1302 = vst.msk [vmem:[%s2136_s10 + $0x30] sm:$0xf] %vm1289_vm4, %v1479_v53  ;;  %v1480_v23 = vpack.c.bf16 %v1212_v57, %v1212_v57  ;;  %v1170_v24 = vmul.f32 %v1691_v5, %v2121_v42  ;;  %v1692_v26 = vadd.f32 %v1119_v11, %v609_v21  ;;  %v1596_v28 = vpop.f32.mrb[31].mxu1 }
 0x170   : > { %v1676_v22 = vpop.f32.mrb[35].mxu0 }
 0x171   : > { %1303 = vst.msk [vmem:[%s2136_s10 + $0x34] sm:$0xf] %vm1289_vm4, %v1480_v23  ;;  %v1195_v29 = vadd.f32 %v2126_v0, %v1170_v24  ;;  %v1171_v30 = vmul.f32 %v1692_v26, %v2121_v42 }
 0x173   : > { %v1213_v32 = vmax.f32 %v1195_v29, 0.0  ;;  %v1196_v33 = vadd.f32 %v2126_v0, %v1171_v30 }
 0x174   : > { %v614_v34 = vpop.f32.mrb[32].mxu1 }
 0x175   : > { %v1481_v35 = vpack.c.bf16 %v1213_v32, %v1213_v32  ;;  %v1214_v36 = vmax.f32 %v1196_v33, 0.0  ;;  %v1693_v38 = vadd.f32 %v1124_v25, %v614_v34  ;;  %v1599_v39 = vpop.f32.mrb[33].mxu1 }
 0x176   : > { %v617_v40 = vpop.f32.mrb[34].mxu1 }
 0x177   : > { %1304 = vst.msk [vmem:[%s2136_s10 + $0x38] sm:$0xf] %vm1289_vm4, %v1481_v35  ;;  %v1482_v41 = vpack.c.bf16 %v1214_v36, %v1214_v36  ;;  %v1172_v43 = vmul.f32 %v1693_v38, %v2121_v42  ;;  %v1694_v46 = vadd.f32 %v1127_v31, %v617_v40  ;;  %v1600_v47 = vpop.f32.mrb[35].mxu1 }
 0x179   : > { %1305 = vst.msk [vmem:[%s2136_s10 + $0x3c] sm:$0xf] %vm1289_vm4, %v1482_v41  ;;  %v1197_v48 = vadd.f32 %v2126_v0, %v1172_v43  ;;  %v1173_v44 = vmul.f32 %v1694_v46, %v2121_v42 }
 0x17b   : > { %v1215_v45 = vmax.f32 %v1197_v48, 0.0  ;;  %v1198_v49 = vadd.f32 %v2126_v0, %v1173_v44 }
 0x17d   : > { %v1483_v50 = vpack.c.bf16 %v1215_v45, %v1215_v45  ;;  %v1216_v51 = vmax.f32 %v1198_v49, 0.0 }
 0x17f   : > { %1306 = vst.msk [vmem:[%s2136_s10 + $0x40] sm:$0xf] %vm1289_vm4, %v1483_v50  ;;  %v1484_v52 = vpack.c.bf16 %v1216_v51, %v1216_v51 }
 0x181   : > { %1307 = vst.msk [vmem:[%s2136_s10 + $0x44] sm:$0xf] %vm1289_vm4, %v1484_v52 }
 0x182 PF: > { %s14_s15 = sadd.s32 1, %s1818_s15  }
 0x183   : > { %p11_p4 = scmp.ge.s32.totalorder %s14_s15, 4  }
 0x185   :  { %13 = sbr.rel (!%p11_p4) target bundleno = 1 (0x1), region = 69 }

// kernel: detector_forward.5
= control target key start
LH: loop header
LB: loop body
LE: loop exit
PB: predicated region body
PF: predicated region fallthrough
CT: control target
= control target key end

     0   :  { %s1296_s15 = smov 0   ;;  %s1523_s0 = inlined_call_operand.vmem [shape: bf16[2,56,128], index: 0, kind: input, shape index: {}]   ;;  %s1524_s1 = inlined_call_operand.vmem [shape: bf16[4,128,64], index: 1, kind: input, shape index: {}]   ;;  %s1525_s2 = inlined_call_operand.vmem [shape: f32[1,64], index: 2, kind: input, shape index: {}]   ;;  %s1526_s3 = inlined_call_operand.vmem [shape: f32[1,64], index: 3, kind: input, shape index: {}]   ;;  %s1527_s4 = inlined_call_operand.vmem [shape: bf16[2,40,64], index: 4, kind: output, shape index: {}]  }
   0x1 LB: > { %s911_s16 = sadd.s32 4294967295, %s1267_s15   ;;  %p915_p0 = scmp.ge.s32.totalorder %s1267_s15, 1  ;;  %s1267_s15 = sphi %s1296_s15, %s14_s15  }
   0x2   : > { %p162_p1 = scmp.lt.s32.totalorder %s1267_s15, 3 }
   0x4   : > { %p163_p2 = pnand %p915_p0, %p162_p1 }
   0x5   : > { %v1219_v0 = vld [vmem:[%s1524_s1 + $0x40] sm:$0xff] (!%p163_p2)   ;;  %v1269_v1 = vmov (!%p163_p2), 0.0   ;;  %v1221_v3 = vld [vmem:[%s1524_s1 + $0x48] sm:$0xff] (!%p163_p2)   ;;  %vm1270_vm0 = vmmov (!%p163_p2), 0   ;;  %p188_p3 = scmp.lt.s32.totalorder (!%p163_p2), %s911_s16, 1  ;;  %v1223_v5 = vld [vmem:[%s1524_s1 + $0x50] sm:$0xff] (!%p163_p2)  }
   0x6   : > { %166 = sbr.rel (%p163_p2) target bundleno = 310 (0x136), region = 36  ;;  %1066 = vmatprep.subr.bf16.mxu1 (!%p163_p2), %v1269_v1  ;;  %1122 = vmatprep.subr.bf16.mxu0 (!%p163_p2), %v1269_v1  ;;  %v1220_v2 = vld [vmem:[%s1524_s1 + $0x80] sm:$0xff] (!%p163_p2)   ;;  %v1222_v4 = vld [vmem:[%s1524_s1 + $0x88] sm:$0xff] (!%p163_p2)   ;;  %v1224_v6 = vld [vmem:[%s1524_s1 + $0x90] sm:$0xff] (!%p163_p2)   ;;  %vm253_vm1 = vsmask.f32 (!%p163_p2), 7424 }
   0x7   : > { %1067 = vmatpush3.bf16.msra.mxu1 (!%p163_p2), %v1219_v0  ;;  %1082 = vmatprep.mubr.msk.bf16.mxu1 (!%p163_p2), %vm1270_vm0, %v1269_v1  ;;  %v1225_v7 = vld [vmem:[%s1524_s1 + $0x58] sm:$0xff] (!%p163_p2)   ;;  %v1227_v9 = vld [vmem:[%s1524_s1 + $0x60] sm:$0xff] (!%p163_p2)   ;;  %v1229_v16 = vld [vmem:[%s1524_s1 + $0x68] sm:$0xff] (!%p163_p2)   ;;  %vm850_vm2 = vcmask (!%p163_p2), 519168  }
   0x8   : > { %1123 = vmatpush3.bf16.msra.mxu0 (!%p163_p2), %v1220_v2  ;;  %1068 = vmatprep.subr.bf16.mxu1 (!%p163_p2), %v1269_v1  ;;  %v1226_v8 = vld [vmem:[%s1524_s1 + $0x98] sm:$0xff] (!%p163_p2)   ;;  %v1228_v10 = vld [vmem:[%s1524_s1 + $0xa0] sm:$0xff] (!%p163_p2)   ;;  %v1230_v18 = vld [vmem:[%s1524_s1 + $0xa8] sm:$0xff] (!%p163_p2)  }
   0x9   : > { %1124 = vmatprep.subr.bf16.mxu0 (!%p163_p2), %v1269_v1  ;;  %1138 = vmatprep.mubr.msk.bf16.mxu0 (!%p163_p2), %vm1270_vm0, %v1269_v1  ;;  %v1231_v20 = vld [vmem:[%s1524_s1 + $0x70] sm:$0xff] (!%p163_p2)   ;;  %v1233_v25 = vld [vmem:[%s1524_s1 + $0x78] sm:$0xff] (!%p163_p2)   ;;  %v1237_v33 = vld [vmem:[%s1524_s1] sm:$0xff] (!%p163_p2)  }
   0xa   : > { %v1232_v21 = vld [vmem:[%s1524_s1 + $0xb0] sm:$0xff] (!%p163_p2)   ;;  %v1234_v26 = vld [vmem:[%s1524_s1 + $0xb8] sm:$0xff] (!%p163_p2)   ;;  %v1239_v37 = vld [vmem:[%s1524_s1 + $0xc0] sm:$0xff] (!%p163_p2)  }
   0xb   : > { %1069 = vmatpush3.bf16.msra.mxu1 (!%p163_p2), %v1221_v3  ;;  %v1240_v38 = vld [vmem:[%s1524_s1 + $0x8] sm:$0xff] (!%p163_p2)   ;;  %v1242_v42 = vld [vmem:[%s1524_s1 + $0x10] sm:$0xff] (!%p163_p2)   ;;  %v1244_v47 = vld [vmem:[%s1524_s1 + $0x18] sm:$0xff] (!%p163_p2)  }
   0xc   : > { %1125 = vmatpush3.bf16.msra.mxu0 (!%p163_p2), %v1222_v4  ;;  %1070 = vmatprep.subr.bf16.mxu1 (!%p163_p2), %v1269_v1  ;;  %v1241_v39 = vld [vmem:[%s1524_s1 + $0xc8] sm:$0xff] (!%p163_p2)   ;;  %v1243_v45 = vld [vmem:[%s1524_s1 + $0xd0] sm:$0xff] (!%p163_p2)   ;;  %v1245_v48 = vld [vmem:[%s1524_s1 + $0xd8] sm:$0xff] (!%p163_p2)  }
   0xd   : > { %s1529_s16 = smov (!%p188_p3, %s911_s16), 1  ;;  %1126 = vmatprep.subr.bf16.mxu0 %v1269_v1  ;;  %v1248_v50 = vld [vmem:[%s1524_s1 + $0x20] sm:$0xff]   ;;  %v1250_v54 = vld [vmem:[%s1524_s1 + $0x28] sm:$0xff]   ;;  %v1253_v58 = vld [vmem:[%s1524_s1 + $0x30] sm:$0xff]  }
   0xe   : > { %s1207_s29 = smul.u32 28, %s1529_s16  ;;  %v1249_v52 = vld [vmem:[%s1524_s1 + $0xe0] sm:$0xff]   ;;  %v1251_v55 = vld [vmem:[%s1524_s1 + $0xe8] sm:$0xff]   ;;  %v1254_v59 = vld [vmem:[%s1524_s1 + $0xf0] sm:$0xff]  }
   0xf   : > { %1071 = vmatpush3.bf16.msra.mxu1 %v1223_v5  ;;  %v1255_v63 = vld [vmem:[%s1524_s1 + $0x38] sm:$0xff]   ;;  %s1208_s18 = smul.u32 20, %s1529_s16 }
  0x10   : > { %1127 = vmatpush3.bf16.msra.mxu0 %v1224_v6  ;;  %1072 = vmatprep.subr.bf16.mxu1 %v1269_v1  ;;  %s1346_s10 = scalar_lea.vmem %s1523_s0, %s1207_s29  ;;  %v1256_v0 = vld [vmem:[%s1524_s1 + $0xf8] sm:$0xff]  }
  0x11   : > { %1128 = vmatprep.subr.bf16.mxu0 %v1269_v1  ;;  %v199_v11 = vld [vmem:[%s1346_s10] sm:$0xf]  ;;  %v200_v12 = vld [vmem:[%s1346_s10 + $0x4] sm:$0xf]  ;;  %v201_v13 = vld [vmem:[%s1346_s10 + $0x8] sm:$0xf]  ;;  %s1508_s21 = scalar_lea.vmem %s1527_s4, %s1208_s18 }
  0x12   : > { %v1360_v14 = vld [vmem:[%s1346_s10 + $0xc] sm:$0xf]  ;;  %v1362_v15 = vcombine.low %v199_v11, %v200_v12  ;;  %v1393_v28 = vld [vmem:[%s1346_s10 + $0x10] sm:$0xf]  ;;  %v220_v30 = vld [vmem:[%s1346_s10 + $0x14] sm:$0x1]  ;;  %v970_v34 = vcombine.low %v200_v12, %v201_v13 }
  0x13   : > { %1073 = vmatpush3.bf16.msra.mxu1 %v1225_v7  ;;  %v1368_v17 = vcombine.low %v201_v13, %v1360_v14  ;;  %v936_v31 = vcombine.low %v1393_v28, %v220_v30  ;;  %v971_v44 = vcombine.low %v1360_v14, %v1393_v28  ;;  %v1252_v51 = vld [vmem:[%s1346_s10 + $0x14] ss:$0 sps:$4 sm:$0xff]   ;;  %v1257_v53 = vld [vmem:[%s1346_s10 + $0x4] sm:$0xff]   ;;  %v1258_v56 = vld [vmem:[%s1346_s10 + $0xc] sm:$0xff]   ;;  %v945_v12 = vcombine.low %v1393_v28, %v1393_v28 }
  0x14   : > { %1129 = vmatpush3.bf16.msra.mxu0 %v1226_v8  ;;  %1074 = vmatprep.subr.bf16.mxu1 %v1269_v1  ;;  %v257_v19 = vshll.u32 %v1362_v15, 16  ;;  %v255_v23 = vshrl.u32 %v1362_v15, 16  ;;  %v668_v57 = vshll.u32 %v1257_v53, 16  ;;  %v666_v60 = vshrl.u32 %v1257_v53, 16  ;;  %v1259_v4 = vld [vmem:[%s1346_s10 + $0x14] sm:$0x1f]  }
  0x15   : > { %1130 = vmatprep.subr.bf16.mxu0 %v1269_v1  ;;  %v262_v22 = vshll.u32 %v1368_v17, 16  ;;  %v266_v35 = vshrl.u32 %v1368_v17, 16  ;;  %v270_v36 = vshll.u32 %v936_v31, 16  ;;  %v274_v46 = vshrl.u32 %v936_v31, 16 }
  0x16   : > { %v259_v24 = vrot.slane %v257_v19, 1  ;;  %v670_v61 = vrot.slane %v668_v57, 1  ;;  %v673_v62 = vshll.u32 %v1258_v56, 16  ;;  %v677_v6 = vshrl.u32 %v1258_v56, 16 }
  0x17   : > { %1075 = vmatpush3.bf16.msra.mxu1 %v1227_v9  ;;  %v264_v27 = vrot.slane %v262_v22, 1  ;;  %v272_v41 = vrot.slane %v270_v36, 1  ;;  %v681_v7 = vshll.u32 %v1259_v4, 16  ;;  %v685_v11 = vshrl.u32 %v1259_v4, 16 }
  0x18   : > { %1131 = vmatpush3.bf16.msra.mxu0 %v1228_v10  ;;  %1076 = vmatprep.subr.bf16.mxu1 %v1269_v1  ;;  %v260_v29 = vor.u32 %v259_v24, %v255_v23  ;;  %v671_v2 = vor.u32 %v670_v61, %v666_v60  ;;  %v675_v3 = vrot.slane %v673_v62, 1 }
  0x19   : > { %1132 = vmatprep.subr.bf16.mxu0 %v1269_v1  ;;  %v268_v40 = vor.u32 %v266_v35, %v264_v27  ;;  %v276_v49 = vor.u32 %v274_v46, %v272_v41  ;;  %v683_v9 = vrot.slane %v681_v7, 1 }
  0x1a   : > { %v265_v32 = vsel %vm253_vm1, %v260_v29, %v264_v27  ;;  %v676_v5 = vsel %vm253_vm1, %v671_v2, %v675_v3  ;;  %v679_v8 = vor.u32 %v677_v6, %v675_v3 }
  0x1b   : > { %1077 = vmatpush3.bf16.msra.mxu1 %v1229_v16  ;;  %v273_v43 = vsel %vm253_vm1, %v268_v40, %v272_v41  ;;  %v687_v13 = vor.u32 %v685_v11, %v683_v9  ;;  %v1008_v16 = vld [vmem:[%s1525_s2] ss:$0 sm:$0xff] }
  0x1c   : > { %1133 = vmatpush3.bf16.msra.mxu0 %v1230_v18  ;;  %1078 = vmatprep.subr.bf16.mxu1 %v1269_v1  ;;  %v684_v10 = vsel %vm253_vm1, %v679_v8, %v683_v9 }
  0x1d   : > { %1134 = vmatprep.subr.bf16.mxu0 %v1269_v1 }
  0x1f   : > { %1079 = vmatpush3.bf16.msra.mxu1 %v1231_v20 }
  0x20   : > { %1135 = vmatpush3.bf16.msra.mxu0 %v1232_v21  ;;  %1080 = vmatprep.subr.bf16.mxu1 %v1269_v1 }
  0x21   : > { %1136 = vmatprep.subr.bf16.mxu0 %v1269_v1 }
  0x23   : > { %1081 = vmatpush3.bf16.msra.mxu1 %v1233_v25 }
  0x24   : > { %1137 = vmatpush3.bf16.msra.mxu0 %v1234_v26  ;;  %1094 = vmatprep.subr.bf16.mxu1 %v1269_v1 }
  0x25   : > { %1150 = vmatprep.subr.bf16.mxu0 %v1269_v1 }
  0x26   : > { %1083 = vmatmul.mubr.bf16.vlgmr.msra.gmra.mrb[0].mxu1 %v265_v32 }
  0x27   : > { %1095 = vmatpush3.bf16.msra.mxu1 %v1237_v33  ;;  %1139 = vmatmul.mubr.bf16.vlgmr.msra.gmra.mrb[0].mxu0 %v970_v34 }
  0x28   : > { %1151 = vmatpush3.bf16.msra.mxu0 %v1239_v37  ;;  %1096 = vmatprep.subr.bf16.mxu1 %v1269_v1 }
  0x29   : > { %1152 = vmatprep.subr.bf16.mxu0 %v1269_v1  ;;  %1086 = vmatprep.mubr.msk.bf16.mxu1 %vm1270_vm0, %v1269_v1 }
  0x2a   : > { %1142 = vmatprep.mubr.msk.bf16.mxu0 %vm1270_vm0, %v1269_v1 }
  0x2b   : > { %1097 = vmatpush3.bf16.msra.mxu1 %v1240_v38 }
  0x2c   : > { %1153 = vmatpush3.bf16.msra.mxu0 %v1241_v39  ;;  %1098 = vmatprep.subr.bf16.mxu1 %v1269_v1 }
  0x2d   : > { %1154 = vmatprep.subr.bf16.mxu0 %v1269_v1 }
  0x2e   : > { %1087 = vmatmul.mubr.bf16.gmra.mrb[4].mxu1 %v273_v43 }
  0x2f   : > { %1099 = vmatpush3.bf16.msra.mxu1 %v1242_v42  ;;  %1143 = vmatmul.mubr.bf16.gmra.mrb[4].mxu0 %v971_v44 }
  0x30   : > { %1155 = vmatpush3.bf16.msra.mxu0 %v1243_v45  ;;  %1100 = vmatprep.subr.bf16.mxu1 %v1269_v1 }
  0x31   : > { %1156 = vmatprep.subr.bf16.mxu0 %v1269_v1  ;;  %1090 = vmatprep.mubr.msk.bf16.mxu1 %vm1270_vm0, %v1269_v1 }
  0x32   : > { %1146 = vmatprep.mubr.msk.bf16.mxu0 %vm1270_vm0, %v1269_v1 }
  0x33   : > { %1101 = vmatpush3.bf16.msra.mxu1 %v1244_v47 }
  0x34   : > { %1157 = vmatpush3.bf16.msra.mxu0 %v1245_v48  ;;  %1102 = vmatprep.subr.bf16.mxu1 %v1269_v1 }
  0x35   : > { %1158 = vmatprep.subr.bf16.mxu0 %v1269_v1 }
  0x36   : > { %1091 = vmatmul.mubr.bf16.gmra.mrb[8].mxu1 %v276_v49 }
  0x37   : > { %1103 = vmatpush3.bf16.msra.mxu1 %v1248_v50  ;;  %1147 = vmatmul.mubr.bf16.gmra.mrb[8].mxu0 %v1252_v51 }
  0x38   : > { %1159 = vmatpush3.bf16.msra.mxu0 %v1249_v52  ;;  %1104 = vmatprep.subr.bf16.mxu1 %v1269_v1 }
  0x39   : > { %1160 = vmatprep.subr.bf16.mxu0 %v1269_v1  ;;  %1110 = vmatprep.mubr.msk.bf16.mxu1 %vm1270_vm0, %v1269_v1 }
  0x3a   : > { %1166 = vmatprep.mubr.msk.bf16.mxu0 %vm1270_vm0, %v1269_v1 }
  0x3b   : > { %1105 = vmatpush3.bf16.msra.mxu1 %v1250_v54 }
  0x3c   : > { %1161 = vmatpush3.bf16.msra.mxu0 %v1251_v55  ;;  %1106 = vmatprep.subr.bf16.mxu1 %v1269_v1 }
  0x3d   : > { %1162 = vmatprep.subr.bf16.mxu0 %v1269_v1 }
  0x3f   : > { %1107 = vmatpush3.bf16.msra.mxu1 %v1253_v58 }
  0x40   : > { %1163 = vmatpush3.bf16.msra.mxu0 %v1254_v59  ;;  %1108 = vmatprep.subr.bf16.mxu1 %v1269_v1 }
  0x41   : > { %1164 = vmatprep.subr.bf16.mxu0 %v1269_v1 }
  0x43   : > { %1109 = vmatpush3.bf16.msra.mxu1 %v1255_v63 }
  0x44   : > { %1165 = vmatpush3.bf16.msra.mxu0 %v1256_v0 }
  0x46   : > { %1111 = vmatmul.mubr.bf16.vlgmr.msra.gmra.mrb[0].mxu1 %v1362_v15 }
  0x47   : > { %1167 = vmatmul.mubr.bf16.vlgmr.msra.gmra.mrb[0].mxu0 %v676_v5  ;;  %1114 = vmatprep.mubr.msk.bf16.mxu1 %vm1270_vm0, %v1269_v1 }
  0x48   : > { %1170 = vmatprep.mubr.msk.bf16.mxu0 %vm1270_vm0, %v1269_v1 }
  0x4e   : > { %1115 = vmatmul.mubr.bf16.gmra.mrb[4].mxu1 %v1368_v17 }
  0x4f   : > { %1171 = vmatmul.mubr.bf16.gmra.mrb[4].mxu0 %v684_v10  ;;  %1118 = vmatprep.mubr.msk.bf16.mxu1 %vm1270_vm0, %v1269_v1 }
  0x50   : > { %1174 = vmatprep.mubr.msk.bf16.mxu0 %vm1270_vm0, %v1269_v1  ;;  %v1009_v1 = vld [vmem:[%s1526_s3] ss:$0 sm:$0xff] }
  0x56   : > { %1119 = vmatmul.mubr.bf16.gmra.mrb[8].mxu1 %v945_v12 }
  0x57   : > { %1175 = vmatmul.mubr.bf16.gmra.mrb[8].mxu0 %v687_v13 }
 0x119   : > { %v470_v14 = vpop.f32.mrb[0].mxu1 }
 0x11a   : > { %v773_v15 = vpop.f32.mrb[0].mxu0  ;;  %v1112_v17 = vpop.f32.mrb[1].mxu1 }
 0x11b   : > { %v1178_v18 = vadd.f32 %v773_v15, %v470_v14  ;;  %v1168_v19 = vpop.f32.mrb[1].mxu0  ;;  %v473_v20 = vpop.f32.mrb[2].mxu1 }
 0x11c   : > { %v776_v21 = vpop.f32.mrb[2].mxu0  ;;  %v1113_v22 = vpop.f32.mrb[3].mxu1 }
 0x11d   : > { %v807_v23 = vmul.f32 %v1178_v18, %v1008_v16  ;;  %v1179_v24 = vadd.f32 %v776_v21, %v473_v20  ;;  %v1169_v25 = vpop.f32.mrb[3].mxu0 }
 0x11f   : > { %v819_v26 = vadd.f32 %v1009_v1, %v807_v23  ;;  %v808_v27 = vmul.f32 %v1179_v24, %v1008_v16 }
 0x121   : > { %v824_v28 = vmax.f32 %v819_v26, 0.0  ;;  %v820_v29 = vadd.f32 %v1009_v1, %v808_v27  ;;  %v478_v30 = vpop.f32.mrb[4].mxu1 }
 0x122   : > { %v781_v31 = vpop.f32.mrb[4].mxu0  ;;  %v1116_v32 = vpop.f32.mrb[5].mxu1 }
 0x123   : > { %v1017_v33 = vpack.c.bf16 %v824_v28, %v824_v28  ;;  %v825_v34 = vmax.f32 %v820_v29, 0.0  ;;  %v1180_v35 = vadd.f32 %v781_v31, %v478_v30  ;;  %v1172_v36 = vpop.f32.mrb[5].mxu0  ;;  %v481_v37 = vpop.f32.mrb[6].mxu1 }
 0x124   : > { %v784_v38 = vpop.f32.mrb[6].mxu0  ;;  %v1117_v39 = vpop.f32.mrb[7].mxu1 }
 0x125   : > { %851 = vst.msk [vmem:[%s1508_s21] sm:$0xf] %vm850_vm2, %v1017_v33  ;;  %v1018_v40 = vpack.c.bf16 %v825_v34, %v825_v34  ;;  %v809_v41 = vmul.f32 %v1180_v35, %v1008_v16  ;;  %v1181_v42 = vadd.f32 %v784_v38, %v481_v37  ;;  %v1173_v43 = vpop.f32.mrb[7].mxu0 }
 0x127   : > { %852 = vst.msk [vmem:[%s1508_s21 + $0x4] sm:$0xf] %vm850_vm2, %v1018_v40  ;;  %v821_v44 = vadd.f32 %v1009_v1, %v809_v41  ;;  %v810_v45 = vmul.f32 %v1181_v42, %v1008_v16 }
 0x129   : > { %v826_v46 = vmax.f32 %v821_v44, 0.0  ;;  %v822_v47 = vadd.f32 %v1009_v1, %v810_v45  ;;  %v486_v48 = vpop.f32.mrb[8].mxu1 }
 0x12a   : > { %v789_v49 = vpop.f32.mrb[8].mxu0  ;;  %v1120_v50 = vpop.f32.mrb[9].mxu1 }
 0x12b   : > { %v1019_v51 = vpack.c.bf16 %v826_v46, %v826_v46  ;;  %v827_v52 = vmax.f32 %v822_v47, 0.0  ;;  %v1182_v53 = vadd.f32 %v789_v49, %v486_v48  ;;  %v1176_v54 = vpop.f32.mrb[9].mxu0  ;;  %v489_v55 = vpop.f32.mrb[10].mxu1 }
 0x12c   : > { %v792_v56 = vpop.f32.mrb[10].mxu0  ;;  %v1121_v57 = vpop.f32.mrb[11].mxu1 }
 0x12d   : > { %853 = vst.msk [vmem:[%s1508_s21 + $0x8] sm:$0xf] %vm850_vm2, %v1019_v51  ;;  %v1020_v58 = vpack.c.bf16 %v827_v52, %v827_v52  ;;  %v811_v59 = vmul.f32 %v1182_v53, %v1008_v16  ;;  %v1177_v60 = vpop.f32.mrb[11].mxu0 }
 0x12f   : > { %854 = vst.msk [vmem:[%s1508_s21 + $0xc] sm:$0xf] %vm850_vm2, %v1020_v58  ;;  %v823_v61 = vadd.f32 %v1009_v1, %v811_v59 }
 0x131   : > { %v828_v62 = vmax.f32 %v823_v61, 0.0 }
 0x133   : > { %v1021_v63 = vpack.c.bf16 %v828_v62, %v828_v62 }
 0x135   : > { %855 = vst.msk [vmem:[%s1508_s21 + $0x10] sm:$0xf] %vm850_vm2, %v1021_v63 }
 0x136 PF: > { %s14_s15 = sadd.s32 1, %s1267_s15  }
 0x137   : > { %p11_p4 = scmp.ge.s32.totalorder %s14_s15, 4  }
 0x139   :  { %13 = sbr.rel (!%p11_p4) target bundleno = 1 (0x1), region = 69 }

// kernel: detector_forward.6
= control target key start
LH: loop header
LB: loop body
LE: loop exit
PB: predicated region body
PF: predicated region fallthrough
CT: control target
= control target key end

     0   :  { %s1109_s15 = smov 0   ;;  %s1268_s0 = inlined_call_operand.vmem [shape: bf16[2,56,64], index: 0, kind: input, shape index: {}]   ;;  %s1269_s1 = inlined_call_operand.vmem [shape: bf16[4,64,128], index: 1, kind: input, shape index: {}]   ;;  %s1270_s2 = inlined_call_operand.vmem [shape: f32[1,128], index: 2, kind: input, shape index: {}]   ;;  %s1271_s3 = inlined_call_operand.vmem [shape: f32[1,128], index: 3, kind: input, shape index: {}]   ;;  %s1272_s4 = inlined_call_operand.vmem [shape: bf16[2,40,128], index: 4, kind: output, shape index: {}]  }
   0x1 LB: > { %s805_s16 = sadd.s32 4294967295, %s1080_s15   ;;  %p809_p0 = scmp.ge.s32.totalorder %s1080_s15, 1  ;;  %s1080_s15 = sphi %s1109_s15, %s14_s15  }
   0x2   : > { %p162_p1 = scmp.lt.s32.totalorder %s1080_s15, 3 }
   0x4   : > { %p163_p2 = pnand %p809_p0, %p162_p1 }
   0x5   : > { %v1048_v0 = vld [vmem:[%s1269_s1 + $0x20] sm:$0xff] (!%p163_p2)   ;;  %v1082_v1 = vmov (!%p163_p2), 0.0   ;;  %v1050_v3 = vld [vmem:[%s1269_s1 + $0x28] sm:$0xff] (!%p163_p2)   ;;  %vm1083_vm0 = vmmov (!%p163_p2), 0   ;;  %p188_p3 = scmp.lt.s32.totalorder (!%p163_p2), %s805_s16, 1  ;;  %v1052_v5 = vld [vmem:[%s1269_s1 + $0x30] sm:$0xff] (!%p163_p2)  }
   0x6   : > { %166 = sbr.rel (%p163_p2) target bundleno = 290 (0x122), region = 36  ;;  %927 = vmatprep.subr.bf16.mxu1 (!%p163_p2), %v1082_v1  ;;  %967 = vmatprep.subr.bf16.mxu0 (!%p163_p2), %v1082_v1  ;;  %v1049_v2 = vld [vmem:[%s1269_s1 + $0x40] sm:$0xff] (!%p163_p2)   ;;  %v1051_v4 = vld [vmem:[%s1269_s1 + $0x48] sm:$0xff] (!%p163_p2)   ;;  %v1053_v6 = vld [vmem:[%s1269_s1 + $0x50] sm:$0xff] (!%p163_p2)   ;;  %vm237_vm1 = vsmask.f32 (!%p163_p2), 7424 }
   0x7   : > { %928 = vmatpush3.bf16.msra.mxu1 (!%p163_p2), %v1048_v0  ;;  %935 = vmatprep.mubr.msk.bf16.mxu1 (!%p163_p2), %vm1083_vm0, %v1082_v1  ;;  %v1054_v10 = vld [vmem:[%s1269_s1 + $0x38] sm:$0xff] (!%p163_p2)   ;;  %vm285_vm2 = vcmask (!%p163_p2), 523264   ;;  %v1059_v20 = vld [vmem:[%s1269_s1] sm:$0xff] (!%p163_p2)   ;;  %v1061_v30 = vld [vmem:[%s1269_s1 + $0x8] sm:$0xff] (!%p163_p2)  }
   0x8   : > { %968 = vmatpush3.bf16.msra.mxu0 (!%p163_p2), %v1049_v2  ;;  %929 = vmatprep.subr.bf16.mxu1 (!%p163_p2), %v1082_v1  ;;  %v1055_v13 = vld [vmem:[%s1269_s1 + $0x58] sm:$0xff] (!%p163_p2)   ;;  %v1060_v21 = vld [vmem:[%s1269_s1 + $0x60] sm:$0xff] (!%p163_p2)   ;;  %v1062_v31 = vld [vmem:[%s1269_s1 + $0x68] sm:$0xff] (!%p163_p2)  }
   0x9   : > { %969 = vmatprep.subr.bf16.mxu0 (!%p163_p2), %v1082_v1  ;;  %975 = vmatprep.mubr.msk.bf16.mxu0 (!%p163_p2), %vm1083_vm0, %v1082_v1  ;;  %v1066_v35 = vld [vmem:[%s1269_s1 + $0x70] sm:$0xff] (!%p163_p2)   ;;  %v1069_v40 = vld [vmem:[%s1269_s1 + $0x78] sm:$0xff] (!%p163_p2)   ;;  %v874_v63 = vld [vmem:[%s1270_s2] ss:$0 sm:$0xff] (!%p163_p2) }
   0xa   : > { %v1065_v38 = vld [vmem:[%s1269_s1 + $0x10] sm:$0xff] (!%p163_p2)   ;;  %v1068_v43 = vld [vmem:[%s1269_s1 + $0x18] sm:$0xff] (!%p163_p2)  }
   0xb   : > { %930 = vmatpush3.bf16.msra.mxu1 (!%p163_p2), %v1050_v3 }
   0xc   : > { %970 = vmatpush3.bf16.msra.mxu0 (!%p163_p2), %v1051_v4  ;;  %931 = vmatprep.subr.bf16.mxu1 (!%p163_p2), %v1082_v1 }
   0xd   : > { %s1274_s16 = smov (!%p188_p3, %s805_s16), 1  ;;  %971 = vmatprep.subr.bf16.mxu0 %v1082_v1 }
   0xe   : > { %s1036_s27 = smul.u32 28, %s1274_s16 }
   0xf   : > { %932 = vmatpush3.bf16.msra.mxu1 %v1052_v5  ;;  %s1037_s7 = smul.u32 20, %s1274_s16 }
  0x10   : > { %s1151_s6 = scalar_lea.vmem %s1268_s0, %s1036_s27  ;;  %972 = vmatpush3.bf16.msra.mxu0 %v1053_v6  ;;  %933 = vmatprep.subr.bf16.mxu1 %v1082_v1 }
  0x11   : > { %v199_v7 = vld [vmem:[%s1151_s6] sm:$0xf]  ;;  %v200_v8 = vld [vmem:[%s1151_s6 + $0x4] sm:$0xf]  ;;  %v201_v9 = vld [vmem:[%s1151_s6 + $0x8] sm:$0xf]  ;;  %973 = vmatprep.subr.bf16.mxu0 %v1082_v1  ;;  %s197_s10 = scalar_lea.vmem %s1272_s4, %s1037_s7 }
  0x12   : > { %v202_v11 = vld [vmem:[%s1151_s6 + $0xc] sm:$0xf]  ;;  %v1160_v12 = vcombine.low %v199_v7, %v200_v8  ;;  %v846_v19 = vcombine.low %v200_v8, %v201_v9  ;;  %v1179_v22 = vld [vmem:[%s1151_s6 + $0x10] sm:$0xf]  ;;  %v212_v23 = vld [vmem:[%s1151_s6 + $0x14] sm:$0x1] }
  0x13   : > { %v1166_v14 = vcombine.low %v201_v9, %v202_v11  ;;  %934 = vmatpush3.bf16.msra.mxu1 %v1054_v10  ;;  %v822_v25 = vcombine.low %v1179_v22, %v212_v23  ;;  %v847_v34 = vcombine.low %v202_v11, %v1179_v22  ;;  %v1070_v36 = vld [vmem:[%s1151_s6 + $0x4] sm:$0xff]   ;;  %v1071_v41 = vld [vmem:[%s1151_s6 + $0xc] sm:$0xff]   ;;  %v1067_v44 = vld [vmem:[%s1151_s6 + $0x14] ss:$0 sps:$4 sm:$0xff]   ;;  %v830_v60 = vcombine.low %v1179_v22, %v1179_v22 }
  0x14   : > { %v239_v15 = vshrl.u32 %v1160_v12, 16  ;;  %v241_v16 = vshll.u32 %v1160_v12, 16  ;;  %974 = vmatpush3.bf16.msra.mxu0 %v1055_v13  ;;  %947 = vmatprep.subr.bf16.mxu1 %v1082_v1  ;;  %v581_v42 = vshll.u32 %v1070_v36, 16  ;;  %v579_v46 = vshrl.u32 %v1070_v36, 16  ;;  %v1072_v51 = vld [vmem:[%s1151_s6 + $0x14] sm:$0x1f]  }
  0x15   : > { %v246_v17 = vshll.u32 %v1166_v14, 16  ;;  %v250_v26 = vshrl.u32 %v1166_v14, 16  ;;  %987 = vmatprep.subr.bf16.mxu0 %v1082_v1  ;;  %v254_v28 = vshll.u32 %v822_v25, 16  ;;  %v258_v39 = vshrl.u32 %v822_v25, 16 }
  0x16   : > { %v243_v18 = vrot.slane %v241_v16, 1  ;;  %v583_v47 = vrot.slane %v581_v42, 1  ;;  %v586_v48 = vshll.u32 %v1071_v41, 16  ;;  %v590_v53 = vshrl.u32 %v1071_v41, 16 }
  0x17   : > { %v248_v24 = vrot.slane %v246_v17, 1  ;;  %976 = vmatmul.mubr.msk.bf16.vlgmr.msra.gmra.mrb[0].mxu0 %vm285_vm2, %v846_v19  ;;  %v256_v32 = vrot.slane %v254_v28, 1  ;;  %v594_v54 = vshll.u32 %v1072_v51, 16  ;;  %v598_v58 = vshrl.u32 %v1072_v51, 16 }
  0x18   : > { %v244_v27 = vor.u32 %v243_v18, %v239_v15  ;;  %988 = vmatpush3.bf16.msra.mxu0 %v1060_v21  ;;  %979 = vmatprep.mubr.msk.bf16.mxu0 %vm1083_vm0, %v1082_v1  ;;  %v584_v49 = vor.u32 %v583_v47, %v579_v46  ;;  %v588_v50 = vrot.slane %v586_v48, 1 }
  0x19   : > { %989 = vmatprep.subr.bf16.mxu0 %v1082_v1  ;;  %v252_v33 = vor.u32 %v250_v26, %v248_v24  ;;  %v260_v45 = vor.u32 %v258_v39, %v256_v32  ;;  %v596_v56 = vrot.slane %v594_v54, 1 }
  0x1a   : > { %v249_v29 = vsel %vm237_vm1, %v244_v27, %v248_v24  ;;  %v589_v52 = vsel %vm237_vm1, %v584_v49, %v588_v50  ;;  %v592_v55 = vor.u32 %v590_v53, %v588_v50 }
  0x1b   : > { %936 = vmatmul.mubr.msk.bf16.vlgmr.msra.gmra.mrb[0].mxu1 %vm285_vm2, %v249_v29  ;;  %v257_v37 = vsel %vm237_vm1, %v252_v33, %v256_v32  ;;  %v600_v59 = vor.u32 %v598_v58, %v596_v56 }
  0x1c   : > { %948 = vmatpush3.bf16.msra.mxu1 %v1059_v20  ;;  %939 = vmatprep.mubr.msk.bf16.mxu1 %vm1083_vm0, %v1082_v1  ;;  %v597_v57 = vsel %vm237_vm1, %v592_v55, %v596_v56 }
  0x1d   : > { %949 = vmatprep.subr.bf16.mxu1 %v1082_v1  ;;  %990 = vmatpush3.bf16.msra.mxu0 %v1062_v31 }
  0x1e   : > { %991 = vmatprep.subr.bf16.mxu0 %v1082_v1 }
  0x1f   : > { %980 = vmatmul.mubr.msk.bf16.gmra.mrb[4].mxu0 %vm285_vm2, %v847_v34 }
  0x20   : > { %950 = vmatpush3.bf16.msra.mxu1 %v1061_v30  ;;  %983 = vmatprep.mubr.msk.bf16.mxu0 %vm1083_vm0, %v1082_v1 }
  0x21   : > { %951 = vmatprep.subr.bf16.mxu1 %v1082_v1  ;;  %992 = vmatpush3.bf16.msra.mxu0 %v1066_v35 }
  0x22   : > { %993 = vmatprep.subr.bf16.mxu0 %v1082_v1 }
  0x23   : > { %940 = vmatmul.mubr.msk.bf16.gmra.mrb[4].mxu1 %vm285_vm2, %v257_v37 }
  0x24   : > { %952 = vmatpush3.bf16.msra.mxu1 %v1065_v38  ;;  %943 = vmatprep.mubr.msk.bf16.mxu1 %vm1083_vm0, %v1082_v1 }
  0x25   : > { %953 = vmatprep.subr.bf16.mxu1 %v1082_v1  ;;  %994 = vmatpush3.bf16.msra.mxu0 %v1069_v40 }
  0x27   : > { %984 = vmatmul.mubr.msk.bf16.gmra.mrb[8].mxu0 %vm285_vm2, %v1067_v44 }
  0x28   : > { %954 = vmatpush3.bf16.msra.mxu1 %v1068_v43  ;;  %995 = vmatprep.mubr.msk.bf16.mxu0 %vm1083_vm0, %v1082_v1 }
  0x2b   : > { %944 = vmatmul.mubr.msk.bf16.gmra.mrb[8].mxu1 %vm285_vm2, %v260_v45 }
  0x2c   : > { %955 = vmatprep.mubr.msk.bf16.mxu1 %vm1083_vm0, %v1082_v1 }
  0x2f   : > { %996 = vmatmul.mubr.msk.bf16.vlgmr.msra.gmra.mrb[0].mxu0 %vm285_vm2, %v589_v52 }
  0x30   : > { %999 = vmatprep.mubr.msk.bf16.mxu0 %vm1083_vm0, %v1082_v1 }
  0x33   : > { %956 = vmatmul.mubr.msk.bf16.vlgmr.msra.gmra.mrb[0].mxu1 %vm285_vm2, %v1160_v12 }
  0x34   : > { %959 = vmatprep.mubr.msk.bf16.mxu1 %vm1083_vm0, %v1082_v1 }
  0x37   : > { %1000 = vmatmul.mubr.msk.bf16.gmra.mrb[4].mxu0 %vm285_vm2, %v597_v57 }
  0x38   : > { %1003 = vmatprep.mubr.msk.bf16.mxu0 %vm1083_vm0, %v1082_v1 }
  0x3b   : > { %960 = vmatmul.mubr.msk.bf16.gmra.mrb[4].mxu1 %vm285_vm2, %v1166_v14 }
  0x3c   : > { %963 = vmatprep.mubr.msk.bf16.mxu1 %vm1083_vm0, %v1082_v1  ;;  %v875_v1 = vld [vmem:[%s1271_s3] ss:$0 sm:$0xff] }
  0x3f   : > { %1004 = vmatmul.mubr.msk.bf16.gmra.mrb[8].mxu0 %vm285_vm2, %v600_v59 }
  0x43   : > { %964 = vmatmul.mubr.msk.bf16.gmra.mrb[8].mxu1 %vm285_vm2, %v830_v60 }
 0x102   : > { %v668_v61 = vpop.f32.mrb[0].mxu0 }
 0x103   : > { %v997_v0 = vpop.f32.mrb[1].mxu0 }
 0x104   : > { %v671_v4 = vpop.f32.mrb[2].mxu0 }
 0x105   : > { %v998_v6 = vpop.f32.mrb[3].mxu0 }
 0x106   : > { %v417_v62 = vpop.f32.mrb[0].mxu1 }
 0x107   : > { %v1007_v2 = vadd.f32 %v668_v61, %v417_v62  ;;  %v957_v3 = vpop.f32.mrb[1].mxu1 }
 0x108   : > { %v420_v5 = vpop.f32.mrb[2].mxu1 }
 0x109   : > { %v702_v7 = vmul.f32 %v1007_v2, %v874_v63  ;;  %v1008_v8 = vadd.f32 %v671_v4, %v420_v5  ;;  %v958_v9 = vpop.f32.mrb[3].mxu1 }
 0x10a   : > { %v676_v13 = vpop.f32.mrb[4].mxu0 }
 0x10b   : > { %v714_v10 = vadd.f32 %v875_v1, %v702_v7  ;;  %v703_v11 = vmul.f32 %v1008_v8, %v874_v63  ;;  %v1001_v15 = vpop.f32.mrb[5].mxu0 }
 0x10c   : > { %v679_v20 = vpop.f32.mrb[6].mxu0 }
 0x10d   : > { %v715_v12 = vadd.f32 %v875_v1, %v703_v11  ;;  %v719_v16 = vmax.f32 %v714_v10, 0.0  ;;  %v1002_v22 = vpop.f32.mrb[7].mxu0 }
 0x10e   : > { %v425_v14 = vpop.f32.mrb[4].mxu1 }
 0x10f   : > { %v720_v17 = vmax.f32 %v715_v12, 0.0  ;;  %v1009_v18 = vadd.f32 %v676_v13, %v425_v14  ;;  %v961_v19 = vpop.f32.mrb[5].mxu1 }
 0x110   : > { %v428_v21 = vpop.f32.mrb[6].mxu1 }
 0x111   : > { %v891_v23 = vpack.c.bf16 %v720_v17, %v719_v16  ;;  %v704_v24 = vmul.f32 %v1009_v18, %v874_v63  ;;  %v1010_v25 = vadd.f32 %v679_v20, %v428_v21  ;;  %v962_v26 = vpop.f32.mrb[7].mxu1 }
 0x112   : > { %v684_v30 = vpop.f32.mrb[8].mxu0 }
 0x113   : > { %892 = vst [vmem:[%s197_s10] sm:$0xff] %v891_v23   ;;  %v716_v27 = vadd.f32 %v875_v1, %v704_v24  ;;  %v705_v28 = vmul.f32 %v1010_v25, %v874_v63  ;;  %v1005_v32 = vpop.f32.mrb[9].mxu0 }
 0x114   : > { %v687_v37 = vpop.f32.mrb[10].mxu0 }
 0x115   : > { %v717_v29 = vadd.f32 %v875_v1, %v705_v28  ;;  %v721_v33 = vmax.f32 %v716_v27, 0.0  ;;  %v1006_v39 = vpop.f32.mrb[11].mxu0 }
 0x116   : > { %v433_v31 = vpop.f32.mrb[8].mxu1 }
 0x117   : > { %v722_v34 = vmax.f32 %v717_v29, 0.0  ;;  %v1011_v35 = vadd.f32 %v684_v30, %v433_v31  ;;  %v965_v36 = vpop.f32.mrb[9].mxu1 }
 0x118   : > { %v436_v38 = vpop.f32.mrb[10].mxu1 }
 0x119   : > { %v896_v40 = vpack.c.bf16 %v722_v34, %v721_v33  ;;  %v706_v41 = vmul.f32 %v1011_v35, %v874_v63  ;;  %v966_v42 = vpop.f32.mrb[11].mxu1 }
 0x11b   : > { %898 = vst [vmem:[%s197_s10 + $0x8] sm:$0xff] %v896_v40   ;;  %v718_v43 = vadd.f32 %v875_v1, %v706_v41 }
 0x11d   : > { %v723_v44 = vmax.f32 %v718_v43, 0.0 }
 0x11f   : > { %v887_v45 = vpack.c.bf16 %v723_v44, %v723_v44 }
 0x121   : > { %749 = vst [vmem:[%s197_s10 + $0x10] sm:$0xf] %v887_v45 }
 0x122 PF: > { %s14_s15 = sadd.s32 1, %s1080_s15  }
 0x123   : > { %p11_p4 = scmp.ge.s32.totalorder %s14_s15, 4  }
 0x125   :  { %13 = sbr.rel (!%p11_p4) target bundleno = 1 (0x1), region = 69 }

// kernel: detector_forward.7
= control target key start
LH: loop header
LB: loop body
LE: loop exit
PB: predicated region body
PF: predicated region fallthrough
CT: control target
= control target key end

     0   :  { %s2127_s21 = smov 0   ;;  %s2592_s0 = inlined_call_operand.vmem [shape: bf16[2,168,32], index: 0, kind: input, shape index: {}]   ;;  %s2593_s1 = inlined_call_operand.vmem [shape: bf16[4,32,128], index: 1, kind: input, shape index: {}]   ;;  %s2594_s2 = inlined_call_operand.vmem [shape: f32[1,128], index: 2, kind: input, shape index: {}]   ;;  %s2595_s3 = inlined_call_operand.vmem [shape: f32[1,128], index: 3, kind: input, shape index: {}]   ;;  %s2596_s4 = inlined_call_operand.vmem [shape: bf16[128,16], index: 4, kind: input, shape index: {}]   ;;  %s2597_s5 = inlined_call_operand.vmem [shape: f32[1,16], index: 5, kind: input, shape index: {}]   ;;  %s2598_s6 = inlined_call_operand.vmem [shape: f32[2,144,16], index: 6, kind: output, shape index: {}]  }
   0x1 LB: > { %s1553_s22 = sadd.s32 4294967295, %s2088_s21   ;;  %p1557_p0 = scmp.ge.s32.totalorder %s2088_s21, 1  ;;  %s2088_s21 = sphi %s2127_s21, %s16_s21  }
   0x2   : > { %p212_p1 = scmp.lt.s32.totalorder %s2088_s21, 3 }
   0x4   : > { %p213_p2 = pnand %p1557_p0, %p212_p1 }
   0x5   : > { %v2037_v0 = vld [vmem:[%s2593_s1] sm:$0xff] (!%p213_p2)   ;;  %v2090_v1 = vmov (!%p213_p2), 0.0   ;;  %v2038_v2 = vld [vmem:[%s2593_s1 + $0x8] sm:$0xff] (!%p213_p2)   ;;  %vm2091_vm0 = vmmov (!%p213_p2), 0   ;;  %p242_p3 = scmp.lt.s32.totalorder (!%p213_p2), %s1553_s22, 1  ;;  %v2046_v3 = vld [vmem:[%s2593_s1 + $0x10] sm:$0xff] (!%p213_p2)  }
   0x6   : > { %216 = sbr.rel (%p213_p2) target bundleno = 635 (0x27b), region = 44  ;;  %1759 = vmatprep.subr.bf16.mxu0 (!%p213_p2), %v2090_v1  ;;  %1719 = vmatprep.subr.bf16.mxu1 (!%p213_p2), %v2090_v1  ;;  %vm418_vm1 = vcmask (!%p213_p2), 261120   ;;  %v2040_v4 = vld [vmem:[%s2593_s1 + $0x20] sm:$0xff] (!%p213_p2)   ;;  %v2049_v5 = vld [vmem:[%s2593_s1 + $0x18] sm:$0xff] (!%p213_p2)   ;;  %v2043_v7 = vld [vmem:[%s2593_s1 + $0x28] sm:$0xff] (!%p213_p2)   ;;  %vm1479_vm3 = vcmask (!%p213_p2), 130048  }
   0x7   : > { %1760 = vmatpush3.bf16.msra.mxu0 (!%p213_p2), %v2037_v0  ;;  %1763 = vmatprep.mubr.msk.bf16.mxu0 (!%p213_p2), %vm2091_vm0, %v2090_v1  ;;  %vm329_vm2 = vsmask.f32 (!%p213_p2), 7424 }
   0x8   : > { %1761 = vmatprep.subr.bf16.mxu0 (!%p213_p2), %v2090_v1  ;;  %1723 = vmatprep.mubr.msk.bf16.mxu1 (!%p213_p2), %vm2091_vm0, %v2090_v1 }
   0x9   : > { %1720 = vmatpush3.bf16.msra.mxu1 (!%p213_p2), %v2046_v3 }
   0xa   : > { %1721 = vmatprep.subr.bf16.mxu1 (!%p213_p2), %v2090_v1 }
   0xb   : > { %1762 = vmatpush3.bf16.msra.mxu0 (!%p213_p2), %v2038_v2 }
   0xc   : > { %1799 = vmatprep.subr.bf16.mxu0 (!%p213_p2), %v2090_v1 }
   0xd   : > { %s2600_s22 = smov (!%p242_p3, %s1553_s22), 1  ;;  %1722 = vmatpush3.bf16.msra.mxu1 %v2049_v5 }
   0xe   : > { %s2025_s29 = smul.u32 84, %s2600_s22  ;;  %1931 = vmatprep.subr.bf16.mxu1 %v2090_v1 }
   0xf   : > { %s2026_s17 = smul.u32 144, %s2600_s22 }
  0x10   : > { %s2164_s12 = scalar_lea.vmem %s2592_s0, %s2025_s29 }
  0x11   : > { %v2039_v6 = vld [vmem:[%s2164_s12] sm:$0xff]   ;;  %v2041_v8 = vld [vmem:[%s2164_s12 + $0x8] sm:$0xff]   ;;  %v2042_v12 = vld [vmem:[%s2164_s12 + $0x10] sm:$0xff]   ;;  %s2533_s24 = scalar_lea.vmem %s2598_s6, %s2026_s17 }
  0x12   : > { %1764 = vmatmul.mubr.msk.bf16.vlgmr.msra.gmra.mrb[0].mxu0 %vm418_vm1, %v2039_v6  ;;  %v331_v9 = vshrl.u32 %v2039_v6, 16  ;;  %v333_v10 = vshll.u32 %v2039_v6, 16  ;;  %v338_v11 = vshll.u32 %v2041_v8, 16  ;;  %v342_v16 = vshrl.u32 %v2041_v8, 16  ;;  %v2044_v19 = vld [vmem:[%s2164_s12 + $0x18] sm:$0xff]   ;;  %v2188_v22 = vld [vmem:[%s2164_s12 + $0x20] sm:$0xff]  }
  0x13   : > { %1800 = vmatpush3.bf16.msra.mxu0 %v2040_v4  ;;  %1767 = vmatprep.mubr.msk.bf16.mxu0 %vm2091_vm0, %v2090_v1  ;;  %v346_v17 = vshll.u32 %v2042_v12, 16  ;;  %v354_v23 = vshll.u32 %v2044_v19, 16  ;;  %v350_v24 = vshrl.u32 %v2042_v12, 16  ;;  %v362_v26 = vshll.u32 %v2188_v22, 16  ;;  %v2194_v27 = vld [vmem:[%s2164_s12 + $0x28] sm:$0xff]   ;;  %v2201_v31 = vld [vmem:[%s2164_s12 + $0x40] sm:$0xff]  }
  0x14   : > { %1801 = vmatprep.subr.bf16.mxu0 %v2090_v1  ;;  %v335_v13 = vrot.slane %v333_v10, 1  ;;  %v340_v14 = vrot.slane %v338_v11, 1  ;;  %v358_v29 = vshrl.u32 %v2044_v19, 16  ;;  %v366_v30 = vshrl.u32 %v2188_v22, 16  ;;  %v2064_v38 = vld [vmem:[%s2164_s12 + $0x8] sm:$0xff]   ;;  %v2065_v41 = vld [vmem:[%s2164_s12 + $0x10] sm:$0xff]  }
  0x15   : > { %v348_v21 = vrot.slane %v346_v17, 1  ;;  %v356_v28 = vrot.slane %v354_v23, 1  ;;  %v2207_v33 = vrot.slane %v362_v26, 1  ;;  %v370_v34 = vshll.u32 %v2194_v27, 16  ;;  %v2066_v44 = vld [vmem:[%s2164_s12 + $0x18] sm:$0xff]   ;;  %v2067_v50 = vld [vmem:[%s2164_s12 + $0x20] sm:$0xff]  }
  0x16   : > { %v336_v15 = vor.u32 %v335_v13, %v331_v9  ;;  %v344_v20 = vor.u32 %v342_v16, %v340_v14  ;;  %v394_v35 = vshll.u32 %v2201_v31, 16  ;;  %v2063_v36 = vld [vmem:[%s2164_s12 + $0x48] ss:$0 sps:$4 sm:$0x11]   ;;  %v398_v37 = vshrl.u32 %v2201_v31, 16  ;;  %v2069_v63 = vld [vmem:[%s2164_s12 + $0x30] sm:$0xff]  }
  0x17   : > { %1802 = vmatpush3.bf16.msra.mxu0 %v2043_v7  ;;  %v352_v32 = vor.u32 %v350_v24, %v348_v21  ;;  %v402_v40 = vshll.u32 %v2063_v36, 16  ;;  %v989_v42 = vshrl.u32 %v2064_v38, 16  ;;  %v991_v43 = vshll.u32 %v2064_v38, 16  ;;  %v2068_v51 = vld [vmem:[%s2164_s12 + $0x28] sm:$0xff]   ;;  %v2070_v7 = vld [vmem:[%s2164_s12 + $0x38] sm:$0xff]  }
  0x18   : > { %1839 = vmatprep.subr.bf16.mxu0 %v2090_v1  ;;  %v341_v18 = vsel %vm329_vm2, %v336_v15, %v340_v14  ;;  %v349_v25 = vsel %vm329_vm2, %v344_v20, %v348_v21  ;;  %v2214_v39 = vrot.slane %v394_v35, 1  ;;  %v360_v46 = vor.u32 %v358_v29, %v356_v28  ;;  %v2249_v21 = vld [vmem:[%s2164_s12 + $0x30] sm:$0xff]   ;;  %v2072_v35 = vld [vmem:[%s2164_s12 + $0x48] sm:$0xff]  }
  0x19   : > { %1724 = vmatmul.mubr.msk.bf16.vlgmr.msra.gmra.mrb[0].mxu1 %vm418_vm1, %v341_v18  ;;  %v357_v45 = vsel %vm329_vm2, %v352_v32, %v356_v28  ;;  %v404_v48 = vrot.slane %v402_v40, 1  ;;  %v993_v49 = vrot.slane %v991_v43, 1  ;;  %v996_v52 = vshll.u32 %v2065_v41, 16 }
  0x1a   : > { %1768 = vmatmul.mubr.msk.bf16.gmra.mrb[4].mxu0 %vm418_vm1, %v2041_v8  ;;  %1727 = vmatprep.mubr.msk.bf16.mxu1 %vm2091_vm0, %v2090_v1  ;;  %v400_v47 = vor.u32 %v398_v37, %v2214_v39  ;;  %v1000_v53 = vshrl.u32 %v2065_v41, 16  ;;  %v1004_v54 = vshll.u32 %v2066_v44, 16  ;;  %v1008_v55 = vshrl.u32 %v2066_v44, 16  ;;  %v2047_v41 = vld [vmem:[%s2164_s12 + $0x8] sm:$0xff]  }
  0x1b   : > { %1771 = vmatprep.mubr.msk.bf16.mxu0 %vm2091_vm0, %v2090_v1  ;;  %1933 = vmatpush3.bf16.msra.mxu1 %v2037_v0  ;;  %v994_v57 = vor.u32 %v993_v49, %v989_v42  ;;  %v1012_v58 = vshll.u32 %v2067_v50, 16  ;;  %v1016_v59 = vshrl.u32 %v2067_v50, 16  ;;  %v998_v60 = vrot.slane %v996_v52, 1  ;;  %v2048_v42 = vld [vmem:[%s2593_s1 + $0x30] sm:$0xff]  }
  0x1c   : > { %1932 = vmatprep.subr.bf16.mxu1 %v2090_v1  ;;  %v2225_v56 = vsel %vm329_vm2, %v400_v47, %v404_v48  ;;  %v1006_v61 = vrot.slane %v1004_v54, 1  ;;  %v1020_v62 = vshll.u32 %v2068_v51, 16  ;;  %v365_v8 = vsel %vm329_vm2, %v360_v46, %v2207_v33  ;;  %v2059_v48 = vld [vmem:[%s2164_s12 + $0x38] sm:$0xff]   ;;  %v2073_v49 = vld [vmem:[%s2164_s12 + $0x50] ss:$0 sps:$4 sm:$0x11]  }
  0x1d   : > { %v1014_v0 = vrot.slane %v1012_v58, 1  ;;  %v2233_v3 = vsel %vm329_vm2, %v994_v57, %v998_v60  ;;  %v1002_v4 = vor.u32 %v1000_v53, %v998_v60  ;;  %v1028_v10 = vshll.u32 %v2069_v63, 16  ;;  %v2050_v53 = vld [vmem:[%s2164_s12 + $0x10] sm:$0xff]  }
  0x1e   : > { %v1010_v5 = vor.u32 %v1008_v55, %v1006_v61  ;;  %v1022_v6 = vrot.slane %v1020_v62, 1  ;;  %v1032_v11 = vshrl.u32 %v2069_v63, 16  ;;  %v1036_v16 = vshll.u32 %v2070_v7, 16  ;;  %v2051_v62 = vld [vmem:[%s2164_s12 + $0x18] sm:$0xff]  }
  0x1f   : > { %1934 = vmatpush3.bf16.msra.mxu1 %v2038_v2  ;;  %v1024_v2 = vshrl.u32 %v2068_v51, 16  ;;  %v1018_v9 = vor.u32 %v1016_v59, %v1014_v0  ;;  %v2240_v13 = vsel %vm329_vm2, %v1002_v4, %v1006_v61  ;;  %v1030_v18 = vrot.slane %v1028_v10, 1  ;;  %v2052_v4 = vld [vmem:[%s2164_s12 + $0x20] sm:$0xff]   ;;  %v2077_v10 = vld [vmem:[%s2596_s4 + $0x18] sm:$0xff]  }
  0x20   : > { %1879 = vmatprep.subr.bf16.mxu1 %v2090_v1  ;;  %v2243_v14 = vsel %vm329_vm2, %v1010_v5, %v1014_v0  ;;  %v1038_v23 = vrot.slane %v1036_v16, 1  ;;  %v372_v24 = vrot.slane %v370_v34, 1  ;;  %v368_v29 = vor.u32 %v366_v30, %v2207_v33 }
  0x21   : > { %1728 = vmatmul.mubr.msk.bf16.gmra.mrb[4].mxu1 %vm418_vm1, %v349_v25  ;;  %v1026_v15 = vor.u32 %v1024_v2, %v1022_v6  ;;  %v2246_v17 = vsel %vm329_vm2, %v1018_v9, %v1022_v6  ;;  %v1034_v26 = vor.u32 %v1032_v11, %v1030_v18  ;;  %v1052_v40 = vshll.u32 %v2072_v35, 16  ;;  %v2053_v6 = vld [vmem:[%s2164_s12 + $0x28] sm:$0xff]  }
  0x22   : > { %1772 = vmatmul.mubr.msk.bf16.gmra.mrb[8].mxu0 %vm418_vm1, %v2042_v12  ;;  %1731 = vmatprep.mubr.msk.bf16.mxu1 %vm2091_vm0, %v2090_v1  ;;  %v2071_v12 = vld [vmem:[%s2164_s12 + $0x40] sm:$0xff]   ;;  %v374_v30 = vshrl.u32 %v2194_v27, 16  ;;  %v378_v33 = vshll.u32 %v2249_v21, 16  ;;  %v1056_v50 = vshrl.u32 %v2072_v35, 16  ;;  %v1060_v52 = vshll.u32 %v2073_v49, 16  ;;  %v2075_v9 = vld [vmem:[%s2596_s4 + $0x8] sm:$0xff]  }
  0x23   : > { %1775 = vmatprep.mubr.msk.bf16.mxu0 %vm2091_vm0, %v2090_v1  ;;  %v1044_v20 = vshll.u32 %v2071_v12, 16  ;;  %v2255_v25 = vsel %vm329_vm2, %v1026_v15, %v1030_v18  ;;  %v1048_v36 = vshrl.u32 %v2071_v12, 16  ;;  %v2266_v34 = vsel %vm329_vm2, %v1034_v26, %v1038_v23  ;;  %v2079_v11 = vld [vmem:[%s2596_s4 + $0x28] sm:$0xff]   ;;  %v2080_v12 = vld [vmem:[%s2596_s4 + $0x30] sm:$0xff]  }
  0x24   : > { %v1054_v43 = vrot.slane %v1052_v40, 1  ;;  %v376_v46 = vor.u32 %v374_v30, %v372_v24  ;;  %v380_v47 = vrot.slane %v378_v33, 1  ;;  %v382_v55 = vshrl.u32 %v2249_v21, 16 }
  0x25   : > { %v1046_v28 = vrot.slane %v1044_v20, 1  ;;  %v386_v57 = vshll.u32 %v2059_v48, 16  ;;  %v1062_v58 = vrot.slane %v1060_v52, 1  ;;  %v390_v0 = vshrl.u32 %v2059_v48, 16 }
  0x26   : > { %v1058_v51 = vor.u32 %v1056_v50, %v1054_v43  ;;  %v381_v54 = vsel %vm329_vm2, %v376_v46, %v380_v47  ;;  %v384_v60 = vor.u32 %v382_v55, %v380_v47 }
  0x27   : > { %v1050_v38 = vor.u32 %v1048_v36, %v1046_v28  ;;  %v388_v61 = vrot.slane %v386_v57, 1 }
  0x28   : > { %v2297_v59 = vsel %vm329_vm2, %v1058_v51, %v1062_v58  ;;  %v2458_v58 = vld [vmem:[%s2595_s3] ss:$0 sm:$0xff] }
  0x29   : > { %1732 = vmatmul.mubr.msk.bf16.gmra.mrb[8].mxu1 %vm418_vm1, %v357_v45  ;;  %v2279_v44 = vsel %vm329_vm2, %v1050_v38, %v1054_v43  ;;  %v2054_v45 = vld [vmem:[%s2593_s1 + $0x38] sm:$0xff]   ;;  %v389_v63 = vsel %vm329_vm2, %v384_v60, %v388_v61  ;;  %v392_v2 = vor.u32 %v390_v0, %v388_v61 }
  0x2a   : > { %1776 = vmatmul.mubr.msk.bf16.gmra.mrb[12].mxu0 %vm418_vm1, %v2044_v19  ;;  %1735 = vmatprep.mubr.msk.bf16.mxu1 %vm2091_vm0, %v2090_v1  ;;  %v1040_v19 = vshrl.u32 %v2070_v7, 16  ;;  %v2060_v7 = vld [vmem:[%s2164_s12 + $0x40] sm:$0xff]  }
  0x2b   : > { %1779 = vmatprep.mubr.msk.bf16.mxu0 %vm2091_vm0, %v2090_v1  ;;  %v397_v5 = vsel %vm329_vm2, %v392_v2, %v2214_v39  ;;  %v2056_v39 = vld [vmem:[%s2164_s12 + $0x30] sm:$0xff]  }
  0x2c   : > { %v1042_v32 = vor.u32 %v1040_v19, %v1038_v23 }
  0x2e   : > { %v2269_v37 = vsel %vm329_vm2, %v1042_v32, %v1046_v28 }
  0x31   : > { %1736 = vmatmul.mubr.msk.bf16.gmra.mrb[12].mxu1 %vm418_vm1, %v365_v8  ;;  %v2074_v8 = vld [vmem:[%s2596_s4] sm:$0xff]  }
  0x32   : > { %1780 = vmatmul.mubr.msk.bf16.gmra.mrb[16].mxu0 %vm418_vm1, %v2188_v22  ;;  %1739 = vmatprep.mubr.msk.bf16.mxu1 %vm2091_vm0, %v2090_v1  ;;  %v373_v22 = vsel %vm329_vm2, %v368_v29, %v372_v24 }
  0x33   : > { %1803 = vmatprep.mubr.msk.bf16.mxu0 %vm2091_vm0, %v2090_v1 }
  0x39   : > { %1740 = vmatmul.mubr.msk.bf16.gmra.mrb[16].mxu1 %vm418_vm1, %v373_v22 }
  0x3a   : > { %1804 = vmatmul.mubr.msk.bf16.vlgmr.msra.gmra.mrb[0].mxu0 %vm418_vm1, %v2047_v41  ;;  %1743 = vmatprep.mubr.msk.bf16.mxu1 %vm2091_vm0, %v2090_v1 }
  0x3b   : > { %1840 = vmatpush3.bf16.msra.mxu0 %v2048_v42  ;;  %1807 = vmatprep.mubr.msk.bf16.mxu0 %vm2091_vm0, %v2090_v1 }
  0x3c   : > { %1841 = vmatprep.subr.bf16.mxu0 %v2090_v1 }
  0x3f   : > { %1842 = vmatpush3.bf16.msra.mxu0 %v2054_v45 }
  0x41   : > { %1744 = vmatmul.mubr.msk.bf16.gmra.mrb[20].mxu1 %vm418_vm1, %v381_v54  ;;  %v2453_v54 = vld [vmem:[%s2594_s2] ss:$0 sm:$0xff] }
  0x42   : > { %1808 = vmatmul.mubr.msk.bf16.gmra.mrb[4].mxu0 %vm418_vm1, %v2050_v53  ;;  %1747 = vmatprep.mubr.msk.bf16.mxu1 %vm2091_vm0, %v2090_v1 }
  0x43   : > { %1811 = vmatprep.mubr.msk.bf16.mxu0 %vm2091_vm0, %v2090_v1 }
  0x49   : > { %1748 = vmatmul.mubr.msk.bf16.gmra.mrb[24].mxu1 %vm418_vm1, %v389_v63 }
  0x4a   : > { %1812 = vmatmul.mubr.msk.bf16.gmra.mrb[8].mxu0 %vm418_vm1, %v2051_v62  ;;  %1751 = vmatprep.mubr.msk.bf16.mxu1 %vm2091_vm0, %v2090_v1 }
  0x4b   : > { %1815 = vmatprep.mubr.msk.bf16.mxu0 %vm2091_vm0, %v2090_v1 }
  0x51   : > { %1752 = vmatmul.mubr.msk.bf16.gmra.mrb[28].mxu1 %vm418_vm1, %v397_v5 }
  0x52   : > { %1816 = vmatmul.mubr.msk.bf16.gmra.mrb[12].mxu0 %vm418_vm1, %v2052_v4  ;;  %1755 = vmatprep.mubr.msk.bf16.mxu1 %vm2091_vm0, %v2090_v1 }
  0x53   : > { %1819 = vmatprep.mubr.msk.bf16.mxu0 %vm2091_vm0, %v2090_v1 }
  0x59   : > { %1756 = vmatmul.mubr.msk.bf16.gmra.mrb[32].mxu1 %vm418_vm1, %v2225_v56  ;;  %v2058_v56 = vld [vmem:[%s2164_s12 + $0x38] sm:$0xff]  }
  0x5a   : > { %1820 = vmatmul.mubr.msk.bf16.gmra.mrb[16].mxu0 %vm418_vm1, %v2053_v6  ;;  %1783 = vmatprep.mubr.msk.bf16.mxu1 %vm2091_vm0, %v2090_v1 }
  0x5b   : > { %1823 = vmatprep.mubr.msk.bf16.mxu0 %vm2091_vm0, %v2090_v1 }
  0x61   : > { %1784 = vmatmul.mubr.msk.bf16.vlgmr.msra.gmra.mrb[20].mxu1 %vm418_vm1, %v2194_v27  ;;  %v2062_v27 = vld [vmem:[%s2164_s12 + $0x48] sm:$0xff]  }
  0x62   : > { %1824 = vmatmul.mubr.msk.bf16.gmra.mrb[20].mxu0 %vm418_vm1, %v2056_v39  ;;  %1787 = vmatprep.mubr.msk.bf16.mxu1 %vm2091_vm0, %v2090_v1 }
  0x63   : > { %1827 = vmatprep.mubr.msk.bf16.mxu0 %vm2091_vm0, %v2090_v1  ;;  %1880 = vmatpush3.bf16.msra.mxu1 %v2074_v8 }
  0x64   : > { %1881 = vmatprep.subr.bf16.mxu1 %v2090_v1 }
  0x67   : > { %1882 = vmatpush3.bf16.msra.mxu1 %v2075_v9 }
  0x68   : > { %1883 = vmatprep.subr.bf16.mxu1 %v2090_v1 }
  0x69   : > { %1788 = vmatmul.mubr.msk.bf16.gmra.mrb[24].mxu1 %vm418_vm1, %v2249_v21 }
  0x6a   : > { %1828 = vmatmul.mubr.msk.bf16.gmra.mrb[24].mxu0 %vm418_vm1, %v2058_v56  ;;  %1791 = vmatprep.mubr.msk.bf16.mxu1 %vm2091_vm0, %v2090_v1 }
  0x6b   : > { %1831 = vmatprep.mubr.msk.bf16.mxu0 %vm2091_vm0, %v2090_v1 }
  0x71   : > { %1792 = vmatmul.mubr.msk.bf16.gmra.mrb[28].mxu1 %vm418_vm1, %v2059_v48 }
  0x72   : > { %1832 = vmatmul.mubr.msk.bf16.gmra.mrb[28].mxu0 %vm418_vm1, %v2060_v7  ;;  %1795 = vmatprep.mubr.msk.bf16.mxu1 %vm2091_vm0, %v2090_v1 }
  0x73   : > { %1835 = vmatprep.mubr.msk.bf16.mxu0 %vm2091_vm0, %v2090_v1 }
  0x79   : > { %1796 = vmatmul.mubr.msk.bf16.gmra.mrb[32].mxu1 %vm418_vm1, %v2201_v31  ;;  %v2076_v31 = vld [vmem:[%s2596_s4 + $0x10] sm:$0xff]  }
  0x7a   : > { %1836 = vmatmul.mubr.msk.bf16.gmra.mrb[32].mxu0 %vm418_vm1, %v2062_v27  ;;  %1895 = vmatprep.mubr.msk.bf16.mxu1 %vm2091_vm0, %v2090_v1 }
  0x7b   : > { %1843 = vmatprep.mubr.msk.bf16.mxu0 %vm2091_vm0, %v2090_v1  ;;  %1884 = vmatpush3.bf16.msra.mxu1 %v2076_v31 }
  0x7c   : > { %1885 = vmatprep.subr.bf16.mxu1 %v2090_v1 }
  0x7f   : > { %1886 = vmatpush3.bf16.msra.mxu1 %v2077_v10 }
  0x80   : > { %1887 = vmatprep.subr.bf16.mxu1 %v2090_v1 }
  0x82   : > { %1844 = vmatmul.mubr.msk.bf16.vlgmr.msra.gmra.mrb[0].mxu0 %vm418_vm1, %v2233_v3  ;;  %v2078_v3 = vld [vmem:[%s2596_s4 + $0x20] sm:$0xff]  }
  0x83   : > { %1847 = vmatprep.mubr.msk.bf16.mxu0 %vm2091_vm0, %v2090_v1  ;;  %1888 = vmatpush3.bf16.msra.mxu1 %v2078_v3 }
  0x84   : > { %1889 = vmatprep.subr.bf16.mxu1 %v2090_v1 }
  0x87   : > { %1890 = vmatpush3.bf16.msra.mxu1 %v2079_v11 }
  0x88   : > { %1891 = vmatprep.subr.bf16.mxu1 %v2090_v1 }
  0x8a   : > { %1848 = vmatmul.mubr.msk.bf16.gmra.mrb[4].mxu0 %vm418_vm1, %v2240_v13  ;;  %v2081_v13 = vld [vmem:[%s2596_s4 + $0x38] sm:$0xff]  }
  0x8b   : > { %1851 = vmatprep.mubr.msk.bf16.mxu0 %vm2091_vm0, %v2090_v1  ;;  %1892 = vmatpush3.bf16.msra.mxu1 %v2080_v12 }
  0x8c   : > { %1893 = vmatprep.subr.bf16.mxu1 %v2090_v1 }
  0x8f   : > { %1894 = vmatpush3.bf16.msra.mxu1 %v2081_v13 }
  0x92   : > { %1852 = vmatmul.mubr.msk.bf16.gmra.mrb[8].mxu0 %vm418_vm1, %v2243_v14 }
  0x93   : > { %1855 = vmatprep.mubr.msk.bf16.mxu0 %vm2091_vm0, %v2090_v1 }
  0x9a   : > { %1856 = vmatmul.mubr.msk.bf16.gmra.mrb[12].mxu0 %vm418_vm1, %v2246_v17 }
  0x9b   : > { %1859 = vmatprep.mubr.msk.bf16.mxu0 %vm2091_vm0, %v2090_v1 }
  0xa2   : > { %1860 = vmatmul.mubr.msk.bf16.gmra.mrb[16].mxu0 %vm418_vm1, %v2255_v25 }
  0xa3   : > { %1863 = vmatprep.mubr.msk.bf16.mxu0 %vm2091_vm0, %v2090_v1 }
  0xaa   : > { %1864 = vmatmul.mubr.msk.bf16.gmra.mrb[20].mxu0 %vm418_vm1, %v2266_v34 }
  0xab   : > { %1867 = vmatprep.mubr.msk.bf16.mxu0 %vm2091_vm0, %v2090_v1 }
  0xb2   : > { %1868 = vmatmul.mubr.msk.bf16.gmra.mrb[24].mxu0 %vm418_vm1, %v2269_v37 }
  0xb3   : > { %1871 = vmatprep.mubr.msk.bf16.mxu0 %vm2091_vm0, %v2090_v1 }
  0xba   : > { %1872 = vmatmul.mubr.msk.bf16.gmra.mrb[28].mxu0 %vm418_vm1, %v2279_v44 }
  0xbb   : > { %1875 = vmatprep.mubr.msk.bf16.mxu0 %vm2091_vm0, %v2090_v1 }
  0xc2   : > { %1876 = vmatmul.mubr.msk.bf16.gmra.mrb[32].mxu0 %vm418_vm1, %v2297_v59 }
  0xec   : > { %v480_v14 = vpop.f32.mrb[0].mxu1 }
  0xed   : > { %v1725_v15 = vpop.f32.mrb[1].mxu1 }
  0xee   : > { %v483_v16 = vpop.f32.mrb[2].mxu1 }
  0xef   : > { %v1726_v17 = vpop.f32.mrb[3].mxu1 }
  0xf4   : > { %v488_v18 = vpop.f32.mrb[4].mxu1 }
  0xf5   : > { %v1729_v19 = vpop.f32.mrb[5].mxu1 }
  0xf6   : > { %v491_v20 = vpop.f32.mrb[6].mxu1 }
  0xf7   : > { %v1730_v21 = vpop.f32.mrb[7].mxu1 }
  0xfc   : > { %v496_v23 = vpop.f32.mrb[8].mxu1 }
  0xfd   : > { %v1733_v24 = vpop.f32.mrb[9].mxu1 }
  0xfe   : > { %v499_v25 = vpop.f32.mrb[10].mxu1 }
  0xff   : > { %v1734_v26 = vpop.f32.mrb[11].mxu1 }
 0x104   : > { %v2426_v28 = vpop.f32.mrb[12].mxu1 }
 0x105   : > { %v1737_v29 = vpop.f32.mrb[13].mxu1 }
 0x106   : > { %v2428_v32 = vpop.f32.mrb[14].mxu1 }
 0x107   : > { %v1738_v35 = vpop.f32.mrb[15].mxu1 }
 0x10c   : > { %v2430_v36 = vpop.f32.mrb[16].mxu1 }
 0x10d   : > { %v1741_v34 = vpop.f32.mrb[17].mxu1 }
 0x10e   : > { %v2432_v37 = vpop.f32.mrb[18].mxu1 }
 0x10f   : > { %v1742_v38 = vpop.f32.mrb[19].mxu1 }
 0x134   : > { %v2434_v40 = vpop.f32.mrb[20].mxu1 }
 0x135   : > { %v1785_v41 = vpop.f32.mrb[21].mxu1 }
 0x136   : > { %v2436_v42 = vpop.f32.mrb[22].mxu1 }
 0x137   : > { %v1786_v22 = vpop.f32.mrb[23].mxu1 }
 0x13c   : > { %v2438_v30 = vpop.f32.mrb[24].mxu1 }
 0x13d   : > { %v1789_v33 = vpop.f32.mrb[25].mxu1 }
 0x13e   : > { %v2440_v43 = vpop.f32.mrb[26].mxu1 }
 0x13f   : > { %v1790_v44 = vpop.f32.mrb[27].mxu1 }
 0x144   : > { %v2442_v45 = vpop.f32.mrb[28].mxu1 }
 0x145   : > { %v1793_v46 = vpop.f32.mrb[29].mxu1 }
 0x146   : > { %v2444_v47 = vpop.f32.mrb[30].mxu1 }
 0x147   : > { %v1794_v48 = vpop.f32.mrb[31].mxu1 }
 0x14c   : > { %v2446_v49 = vpop.f32.mrb[32].mxu1 }
 0x14d   : > { %v1797_v50 = vpop.f32.mrb[33].mxu1 }
 0x14e   : > { %v2448_v51 = vpop.f32.mrb[34].mxu1 }
 0x14f   : > { %v1798_v52 = vpop.f32.mrb[35].mxu1 }
 0x155   : > { %v1137_v53 = vpop.f32.mrb[0].mxu0 }
 0x156   : > { %v1935_v55 = vadd.f32 %v1137_v53, %v480_v14  ;;  %v1845_v57 = vpop.f32.mrb[1].mxu0 }
 0x157   : > { %v1140_v59 = vpop.f32.mrb[2].mxu0 }
 0x158   : > { %v1233_v60 = vmul.f32 %v1935_v55, %v2453_v54  ;;  %v1936_v61 = vadd.f32 %v1140_v59, %v483_v16  ;;  %v1846_v62 = vpop.f32.mrb[3].mxu0 }
 0x15a   : > { %v1258_v63 = vadd.f32 %v2458_v58, %v1233_v60  ;;  %v1234_v0 = vmul.f32 %v1936_v61, %v2453_v54 }
 0x15c   : > { %v1259_v2 = vadd.f32 %v2458_v58, %v1234_v0  ;;  %v1276_v5 = vmax.f32 %v1258_v63, 0.0 }
 0x15d   : > { %v1145_v4 = vpop.f32.mrb[4].mxu0 }
 0x15e   : > { %v1277_v6 = vmax.f32 %v1259_v2, 0.0  ;;  %v1937_v39 = vadd.f32 %v1145_v4, %v488_v18  ;;  %v1849_v56 = vpop.f32.mrb[5].mxu0 }
 0x15f   : > { %v1148_v7 = vpop.f32.mrb[6].mxu0 }
 0x160   : > { %v1294_v27 = vpack.c.bf16 %v1277_v6, %v1276_v5  ;;  %v1235_v8 = vmul.f32 %v1937_v39, %v2453_v54  ;;  %v1938_v9 = vadd.f32 %v1148_v7, %v491_v20  ;;  %v1850_v31 = vpop.f32.mrb[7].mxu0 }
 0x162   : > { %v1260_v10 = vadd.f32 %v2458_v58, %v1235_v8  ;;  %v1236_v3 = vmul.f32 %v1938_v9, %v2453_v54  ;;  %1896 = vmatmul.mubr.bf16.vlgmr.msra.gmra.mrb[36].mxu1 %v1294_v27 }
 0x163   : > { %1899 = vmatprep.mubr.msk.bf16.mxu1 %vm2091_vm0, %v2090_v1 }
 0x164   : > { %v1261_v11 = vadd.f32 %v2458_v58, %v1236_v3  ;;  %v1278_v13 = vmax.f32 %v1260_v10, 0.0 }
 0x165   : > { %v1153_v12 = vpop.f32.mrb[8].mxu0 }
 0x166   : > { %v1279_v14 = vmax.f32 %v1261_v11, 0.0  ;;  %v1939_v15 = vadd.f32 %v1153_v12, %v496_v23  ;;  %v1853_v16 = vpop.f32.mrb[9].mxu0 }
 0x167   : > { %v1156_v17 = vpop.f32.mrb[10].mxu0 }
 0x168   : > { %v1237_v18 = vmul.f32 %v1939_v15, %v2453_v54  ;;  %v1940_v19 = vadd.f32 %v1156_v17, %v499_v25  ;;  %v1854_v20 = vpop.f32.mrb[11].mxu0  ;;  %v1295_v21 = vpack.c.bf16 %v1279_v14, %v1278_v13 }
 0x16a   : > { %v1262_v24 = vadd.f32 %v2458_v58, %v1237_v18  ;;  %v1238_v26 = vmul.f32 %v1940_v19, %v2453_v54  ;;  %1900 = vmatmul.mubr.bf16.gmra.mrb[40].mxu1 %v1295_v21 }
 0x16b   : > { %1903 = vmatprep.mubr.msk.bf16.mxu1 %vm2091_vm0, %v2090_v1 }
 0x16c   : > { %v1263_v29 = vadd.f32 %v2458_v58, %v1238_v26  ;;  %v1280_v34 = vmax.f32 %v1262_v24, 0.0 }
 0x16d   : > { %v1161_v35 = vpop.f32.mrb[12].mxu0 }
 0x16e   : > { %v1281_v23 = vmax.f32 %v1263_v29, 0.0  ;;  %v1941_v38 = vadd.f32 %v1161_v35, %v2426_v28  ;;  %v1857_v41 = vpop.f32.mrb[13].mxu0 }
 0x16f   : > { %v1164_v22 = vpop.f32.mrb[14].mxu0 }
 0x170   : > { %v1239_v25 = vmul.f32 %v1941_v38, %v2453_v54  ;;  %v1942_v33 = vadd.f32 %v1164_v22, %v2428_v32  ;;  %v1858_v44 = vpop.f32.mrb[15].mxu0  ;;  %v1296_v46 = vpack.c.bf16 %v1281_v23, %v1280_v34 }
 0x172   : > { %v1264_v48 = vadd.f32 %v2458_v58, %v1239_v25  ;;  %v1240_v50 = vmul.f32 %v1942_v33, %v2453_v54  ;;  %1904 = vmatmul.mubr.bf16.gmra.mrb[44].mxu1 %v1296_v46 }
 0x173   : > { %1907 = vmatprep.mubr.msk.bf16.mxu1 %vm2091_vm0, %v2090_v1 }
 0x174   : > { %v1265_v52 = vadd.f32 %v2458_v58, %v1240_v50  ;;  %v1282_v28 = vmax.f32 %v1264_v48, 0.0 }
 0x175   : > { %v1169_v53 = vpop.f32.mrb[16].mxu0 }
 0x176   : > { %v1283_v55 = vmax.f32 %v1265_v52, 0.0  ;;  %v1943_v57 = vadd.f32 %v1169_v53, %v2430_v36  ;;  %v1861_v59 = vpop.f32.mrb[17].mxu0 }
 0x177   : > { %v1172_v60 = vpop.f32.mrb[18].mxu0 }
 0x178   : > { %v1241_v32 = vmul.f32 %v1943_v57, %v2453_v54  ;;  %v1944_v61 = vadd.f32 %v1172_v60, %v2432_v37  ;;  %v1862_v62 = vpop.f32.mrb[19].mxu0  ;;  %v1297_v63 = vpack.c.bf16 %v1283_v55, %v1282_v28 }
 0x17a   : > { %v1266_v0 = vadd.f32 %v2458_v58, %v1241_v32  ;;  %v1242_v2 = vmul.f32 %v1944_v61, %v2453_v54  ;;  %1908 = vmatmul.mubr.bf16.gmra.mrb[48].mxu1 %v1297_v63 }
 0x17b   : > { %1911 = vmatprep.mubr.msk.bf16.mxu1 %vm2091_vm0, %v2090_v1 }
 0x17c   : > { %v1267_v4 = vadd.f32 %v2458_v58, %v1242_v2  ;;  %v1284_v36 = vmax.f32 %v1266_v0, 0.0 }
 0x17d   : > { %v1177_v5 = vpop.f32.mrb[20].mxu0 }
 0x17e   : > { %v1285_v6 = vmax.f32 %v1267_v4, 0.0  ;;  %v1945_v39 = vadd.f32 %v1177_v5, %v2434_v40  ;;  %v1865_v56 = vpop.f32.mrb[21].mxu0 }
 0x17f   : > { %v1180_v7 = vpop.f32.mrb[22].mxu0 }
 0x180   : > { %v1243_v37 = vmul.f32 %v1945_v39, %v2453_v54  ;;  %v1946_v27 = vadd.f32 %v1180_v7, %v2436_v42  ;;  %v1866_v8 = vpop.f32.mrb[23].mxu0  ;;  %v1298_v9 = vpack.c.bf16 %v1285_v6, %v1284_v36 }
 0x182   : > { %v1268_v31 = vadd.f32 %v2458_v58, %v1243_v37  ;;  %v1244_v10 = vmul.f32 %v1946_v27, %v2453_v54  ;;  %1912 = vmatmul.mubr.bf16.gmra.mrb[52].mxu1 %v1298_v9 }
 0x183   : > { %1915 = vmatprep.mubr.msk.bf16.mxu1 %vm2091_vm0, %v2090_v1 }
 0x184   : > { %v1269_v3 = vadd.f32 %v2458_v58, %v1244_v10  ;;  %v1286_v40 = vmax.f32 %v1268_v31, 0.0 }
 0x185   : > { %v1185_v11 = vpop.f32.mrb[24].mxu0 }
 0x186   : > { %v1287_v12 = vmax.f32 %v1269_v3, 0.0  ;;  %v1947_v13 = vadd.f32 %v1185_v11, %v2438_v30  ;;  %v1869_v14 = vpop.f32.mrb[25].mxu0 }
 0x187   : > { %v1188_v15 = vpop.f32.mrb[26].mxu0 }
 0x188   : > { %v1245_v42 = vmul.f32 %v1947_v13, %v2453_v54  ;;  %v1948_v16 = vadd.f32 %v1188_v15, %v2440_v43  ;;  %v1870_v17 = vpop.f32.mrb[27].mxu0  ;;  %v1299_v18 = vpack.c.bf16 %v1287_v12, %v1286_v40 }
 0x18a   : > { %v1270_v19 = vadd.f32 %v2458_v58, %v1245_v42  ;;  %v1246_v20 = vmul.f32 %v1948_v16, %v2453_v54  ;;  %1916 = vmatmul.mubr.bf16.gmra.mrb[56].mxu1 %v1299_v18 }
 0x18b   : > { %1919 = vmatprep.mubr.msk.bf16.mxu1 %vm2091_vm0, %v2090_v1 }
 0x18c   : > { %v1271_v21 = vadd.f32 %v2458_v58, %v1246_v20  ;;  %v1288_v30 = vmax.f32 %v1270_v19, 0.0 }
 0x18d   : > { %v1193_v24 = vpop.f32.mrb[28].mxu0 }
 0x18e   : > { %v1289_v26 = vmax.f32 %v1271_v21, 0.0  ;;  %v1949_v29 = vadd.f32 %v1193_v24, %v2442_v45  ;;  %v1873_v35 = vpop.f32.mrb[29].mxu0 }
 0x18f   : > { %v1196_v34 = vpop.f32.mrb[30].mxu0 }
 0x190   : > { %v1247_v43 = vmul.f32 %v1949_v29, %v2453_v54  ;;  %v1950_v23 = vadd.f32 %v1196_v34, %v2444_v47  ;;  %v1874_v38 = vpop.f32.mrb[31].mxu0  ;;  %v1300_v41 = vpack.c.bf16 %v1289_v26, %v1288_v30 }
 0x192   : > { %v1272_v22 = vadd.f32 %v2458_v58, %v1247_v43  ;;  %v1248_v25 = vmul.f32 %v1950_v23, %v2453_v54  ;;  %1920 = vmatmul.mubr.bf16.gmra.mrb[60].mxu1 %v1300_v41 }
 0x193   : > { %1923 = vmatprep.mubr.msk.bf16.mxu1 %vm2091_vm0, %v2090_v1 }
 0x194   : > { %v1273_v33 = vadd.f32 %v2458_v58, %v1248_v25  ;;  %v1290_v45 = vmax.f32 %v1272_v22, 0.0 }
 0x195   : > { %v1201_v44 = vpop.f32.mrb[32].mxu0 }
 0x196   : > { %v1291_v46 = vmax.f32 %v1273_v33, 0.0  ;;  %v1951_v48 = vadd.f32 %v1201_v44, %v2446_v49  ;;  %v1877_v50 = vpop.f32.mrb[33].mxu0 }
 0x197   : > { %v1204_v47 = vpop.f32.mrb[34].mxu0 }
 0x198   : > { %v1249_v52 = vmul.f32 %v1951_v48, %v2453_v54  ;;  %v1952_v53 = vadd.f32 %v1204_v47, %v2448_v51  ;;  %v1878_v28 = vpop.f32.mrb[35].mxu0  ;;  %v1301_v55 = vpack.c.bf16 %v1291_v46, %v1290_v45  ;;  %v2528_v51 = vld [vmem:[%s2597_s5] ss:$0 sm:$0xff] }
 0x19a   : > { %v1274_v57 = vadd.f32 %v2458_v58, %v1249_v52  ;;  %v1250_v59 = vmul.f32 %v1952_v53, %v2453_v54  ;;  %1924 = vmatmul.mubr.bf16.gmra.mrb[64].mxu1 %v1301_v55 }
 0x19b   : > { %1927 = vmatprep.mubr.msk.bf16.mxu1 %vm2091_vm0, %v2090_v1 }
 0x19c   : > { %v1275_v60 = vadd.f32 %v2458_v58, %v1250_v59  ;;  %v1292_v49 = vmax.f32 %v1274_v57, 0.0 }
 0x19e   : > { %v1293_v32 = vmax.f32 %v1275_v60, 0.0 }
 0x1a0   : > { %v1302_v61 = vpack.c.bf16 %v1293_v32, %v1292_v49 }
 0x1a2   : > { %1928 = vmatmul.mubr.bf16.gmra.mrb[68].mxu1 %v1302_v61 }
 0x235   : > { %v1408_v1 = vpop.f32.mrb[36].mxu1 }
 0x236   : > { %v1409_v54 = vadd.f32 %v2528_v51, %v1408_v1  ;;  %v1897_v58 = vpop.f32.mrb[37].mxu1 }
 0x237   : > { %v1411_v62 = vpop.f32.mrb[38].mxu1 }
 0x238   : > { %1480 = vst.msk [vmem:[%s2533_s24] sm:$0xff] %vm1479_vm3, %v1409_v54  ;;  %v1412_v63 = vadd.f32 %v2528_v51, %v1411_v62  ;;  %v1898_v0 = vpop.f32.mrb[39].mxu1 }
 0x23a   : > { %1481 = vst.msk [vmem:[%s2533_s24 + $0x8] sm:$0xff] %vm1479_vm3, %v1412_v63 }
 0x23d   : > { %v1416_v2 = vpop.f32.mrb[40].mxu1 }
 0x23e   : > { %v1417_v4 = vadd.f32 %v2528_v51, %v1416_v2  ;;  %v1901_v5 = vpop.f32.mrb[41].mxu1 }
 0x23f   : > { %v1419_v36 = vpop.f32.mrb[42].mxu1 }
 0x240   : > { %1482 = vst.msk [vmem:[%s2533_s24 + $0x10] sm:$0xff] %vm1479_vm3, %v1417_v4  ;;  %v1420_v6 = vadd.f32 %v2528_v51, %v1419_v36  ;;  %v1902_v39 = vpop.f32.mrb[43].mxu1 }
 0x242   : > { %1483 = vst.msk [vmem:[%s2533_s24 + $0x18] sm:$0xff] %vm1479_vm3, %v1420_v6 }
 0x245   : > { %v1424_v56 = vpop.f32.mrb[44].mxu1 }
 0x246   : > { %v1425_v7 = vadd.f32 %v2528_v51, %v1424_v56  ;;  %v1905_v37 = vpop.f32.mrb[45].mxu1 }
 0x247   : > { %v1427_v27 = vpop.f32.mrb[46].mxu1 }
 0x248   : > { %1484 = vst.msk [vmem:[%s2533_s24 + $0x20] sm:$0xff] %vm1479_vm3, %v1425_v7  ;;  %v1428_v8 = vadd.f32 %v2528_v51, %v1427_v27  ;;  %v1906_v9 = vpop.f32.mrb[47].mxu1 }
 0x24a   : > { %1485 = vst.msk [vmem:[%s2533_s24 + $0x28] sm:$0xff] %vm1479_vm3, %v1428_v8 }
 0x24d   : > { %v1432_v31 = vpop.f32.mrb[48].mxu1 }
 0x24e   : > { %v1433_v10 = vadd.f32 %v2528_v51, %v1432_v31  ;;  %v1909_v3 = vpop.f32.mrb[49].mxu1 }
 0x24f   : > { %v1435_v11 = vpop.f32.mrb[50].mxu1 }
 0x250   : > { %1486 = vst.msk [vmem:[%s2533_s24 + $0x30] sm:$0xff] %vm1479_vm3, %v1433_v10  ;;  %v1436_v40 = vadd.f32 %v2528_v51, %v1435_v11  ;;  %v1910_v12 = vpop.f32.mrb[51].mxu1 }
 0x252   : > { %1487 = vst.msk [vmem:[%s2533_s24 + $0x38] sm:$0xff] %vm1479_vm3, %v1436_v40 }
 0x255   : > { %v1440_v13 = vpop.f32.mrb[52].mxu1 }
 0x256   : > { %v1441_v14 = vadd.f32 %v2528_v51, %v1440_v13  ;;  %v1913_v15 = vpop.f32.mrb[53].mxu1 }
 0x257   : > { %v1443_v42 = vpop.f32.mrb[54].mxu1 }
 0x258   : > { %1488 = vst.msk [vmem:[%s2533_s24 + $0x40] sm:$0xff] %vm1479_vm3, %v1441_v14  ;;  %v1444_v16 = vadd.f32 %v2528_v51, %v1443_v42  ;;  %v1914_v17 = vpop.f32.mrb[55].mxu1 }
 0x25a   : > { %1489 = vst.msk [vmem:[%s2533_s24 + $0x48] sm:$0xff] %vm1479_vm3, %v1444_v16 }
 0x25d   : > { %v1448_v18 = vpop.f32.mrb[56].mxu1 }
 0x25e   : > { %v1449_v19 = vadd.f32 %v2528_v51, %v1448_v18  ;;  %v1917_v20 = vpop.f32.mrb[57].mxu1 }
 0x25f   : > { %v1451_v21 = vpop.f32.mrb[58].mxu1 }
 0x260   : > { %1490 = vst.msk [vmem:[%s2533_s24 + $0x50] sm:$0xff] %vm1479_vm3, %v1449_v19  ;;  %v1452_v24 = vadd.f32 %v2528_v51, %v1451_v21  ;;  %v1918_v30 = vpop.f32.mrb[59].mxu1 }
 0x262   : > { %1491 = vst.msk [vmem:[%s2533_s24 + $0x58] sm:$0xff] %vm1479_vm3, %v1452_v24 }
 0x265   : > { %v1456_v26 = vpop.f32.mrb[60].mxu1 }
 0x266   : > { %v1457_v29 = vadd.f32 %v2528_v51, %v1456_v26  ;;  %v1921_v35 = vpop.f32.mrb[61].mxu1 }
 0x267   : > { %v1459_v34 = vpop.f32.mrb[62].mxu1 }
 0x268   : > { %1492 = vst.msk [vmem:[%s2533_s24 + $0x60] sm:$0xff] %vm1479_vm3, %v1457_v29  ;;  %v1460_v43 = vadd.f32 %v2528_v51, %v1459_v34  ;;  %v1922_v23 = vpop.f32.mrb[63].mxu1 }
 0x26a   : > { %1493 = vst.msk [vmem:[%s2533_s24 + $0x68] sm:$0xff] %vm1479_vm3, %v1460_v43 }
 0x26d   : > { %v1464_v38 = vpop.f32.mrb[64].mxu1 }
 0x26e   : > { %v1465_v41 = vadd.f32 %v2528_v51, %v1464_v38  ;;  %v1925_v22 = vpop.f32.mrb[65].mxu1 }
 0x26f   : > { %v1467_v25 = vpop.f32.mrb[66].mxu1 }
 0x270   : > { %1494 = vst.msk [vmem:[%s2533_s24 + $0x70] sm:$0xff] %vm1479_vm3, %v1465_v41  ;;  %v1468_v33 = vadd.f32 %v2528_v51, %v1467_v25  ;;  %v1926_v44 = vpop.f32.mrb[67].mxu1 }
 0x272   : > { %1495 = vst.msk [vmem:[%s2533_s24 + $0x78] sm:$0xff] %vm1479_vm3, %v1468_v33 }
 0x275   : > { %v1472_v45 = vpop.f32.mrb[68].mxu1 }
 0x276   : > { %v1473_v46 = vadd.f32 %v2528_v51, %v1472_v45  ;;  %v1929_v48 = vpop.f32.mrb[69].mxu1 }
 0x277   : > { %v1475_v50 = vpop.f32.mrb[70].mxu1 }
 0x278   : > { %1496 = vst.msk [vmem:[%s2533_s24 + $0x80] sm:$0xff] %vm1479_vm3, %v1473_v46  ;;  %v1476_v47 = vadd.f32 %v2528_v51, %v1475_v50  ;;  %v1930_v52 = vpop.f32.mrb[71].mxu1 }
 0x27a   : > { %1497 = vst.msk [vmem:[%s2533_s24 + $0x88] sm:$0xff] %vm1479_vm3, %v1476_v47 }
 0x27b PF: > { %s16_s21 = sadd.s32 1, %s2088_s21  }
 0x27c   : > { %p13_p4 = scmp.ge.s32.totalorder %s16_s21, 4  }
 0x27e   :  { %15 = sbr.rel (!%p13_p4) target bundleno = 1 (0x1), region = 77 }

</bundles_post_ra>
